<compile_context>
chip_gen: v6e
topology: v6e:2x2x1
jax: 0.10.0
libtpu: 0.0.40
codegen_flags: <defaults>
</compile_context>

<pallas_src>
import functools

import jax
import jax.numpy as jnp
from jax.experimental import pallas as pl
from jax.experimental.pallas import tpu as pltpu

_EPS = 1e-5


# --------------------------------------------------------------------------------------
# in-kernel helper: coarse-grid tap extraction on the lane-flattened spatial axis
# --------------------------------------------------------------------------------------

def _coarse_taps(a, row, col, offsets, h, w):
    """a: (C, H*W) activation on the coarse grid (spatial flattened on lanes).
    row/col: (1, H*W) int32 index maps (i, j of each lane).
    Returns (len(offsets)*C, H*W): block t holds a[c, (i+qi)*W + (j+qj)], zero where the
    source coarse pixel is out of bounds.  Only static lane slices / concats / selects."""
    c, hw = a.shape
    outs = []
    for qi, qj in offsets:
        if qi == 0 and qj == 0:
            outs.append(a)
            continue
        s = qi * w + qj
        if s > 0:
            t = jnp.concatenate([a[:, s:], jnp.zeros((c, s), a.dtype)], axis=1)
        else:
            t = jnp.concatenate([jnp.zeros((c, -s), a.dtype), a[:, :hw + s]], axis=1)
        valid = ((row + qi >= 0) & (row + qi < h) & (col + qj >= 0) & (col + qj < w))
        outs.append(jnp.where(valid, t, 0.0))
    return jnp.concatenate(outs, axis=0)


# --------------------------------------------------------------------------------------
# Pallas kernels
# --------------------------------------------------------------------------------------

def _skip_kernel(x_ref, w_ref, b_ref, o_ref, s_ref, sq_ref):
    """ConvTranspose2d(k=2, s=2, p=0) as one lane-dense MXU dot; output is phase-packed.
    Epilogue: per-step per-channel sum / sumsq of the *input* x (BN1 batch-stat partials).
    x: (1,Cin,HW) f32  w: (4*Cout,Cin) bf16  b: (4*Cout,1) f32
    o: (1,4*Cout,HW) f32  s/sq: (1,Cin,1) f32 (per-step partials)."""
    x = x_ref[0]                                                    # (Cin, HW)
    s_ref[0] = jnp.sum(x, axis=1, keepdims=True)
    sq_ref[0] = jnp.sum(x * x, axis=1, keepdims=True)
    d = jnp.dot(w_ref[...], x.astype(jnp.bfloat16),
                preferred_element_type=jnp.float32)                 # (4*Cout, HW)
    o_ref[0] = d + b_ref[...]


def _convt3_kernel(x_ref, scale_ref, shift_ref, row_ref, col_ref, w_ref, b_ref,
                   o_ref, s_ref, sq_ref, *, h, w):
    """relu(x*scale+shift) -> polyphase ConvTranspose2d(k=3, s=2, p=1, op=1); phase-packed out.
    Epilogue: per-step per-(phase,channel) sum / sumsq of the output (BN2 batch-stat partials).
    x: (1,Cin,HW)  scale/shift: (Cin,1)  w: (4*Cout,4*Cin) bf16  b: (4*Cout,1)
    o: (1,4*Cout,HW)  s/sq: (1,4*Cout,1)."""
    a = jnp.maximum(x_ref[0] * scale_ref[...] + shift_ref[...], 0.0)          # (Cin, HW) f32
    pm = _coarse_taps(a, row_ref[...], col_ref[...],
                      ((0, 0), (0, 1), (1, 0), (1, 1)), h, w)                 # (4*Cin, HW)
    d = jnp.dot(w_ref[...], pm.astype(jnp.bfloat16),
                preferred_element_type=jnp.float32) + b_ref[...]              # (4*Cout, HW)
    s_ref[0] = jnp.sum(d, axis=1, keepdims=True)
    sq_ref[0] = jnp.sum(d * d, axis=1, keepdims=True)
    o_ref[0] = d


def _conv3_kernel(x_ref, scale_ref, shift_ref, row_ref, col_ref, w_ref, b_ref, *rest,
                  h, w, has_res, emit_stats):
    """relu(x*scale+shift) -> Conv2d(3x3, pad=1) on the fine 2Hx2W grid, evaluated directly on
    the phase-packed coarse layout via 9 coarse taps and a repacked (4Cout x 36Cout) weight.
    Optionally fuses a residual add and a per-step sum/sumsq epilogue.
    x: (1,4C,HW)  scale/shift: (4C,1)  w: (4C,36C) bf16  b: (4C,1)
    [res: (1,4C,HW)]  o: (1,4C,HW)  [s/sq: (1,4C,1)]."""
    idx = 0
    res_ref = None
    if has_res:
        res_ref = rest[idx]
        idx += 1
    o_ref = rest[idx]
    idx += 1
    s_ref = sq_ref = None
    if emit_stats:
        s_ref, sq_ref = rest[idx], rest[idx + 1]

    a = jnp.maximum(x_ref[0] * scale_ref[...] + shift_ref[...], 0.0)          # (4C, HW) f32
    offs = tuple((qi, qj) for qi in (-1, 0, 1) for qj in (-1, 0, 1))
    pm = _coarse_taps(a, row_ref[...], col_ref[...], offs, h, w)              # (36C, HW)
    acc = jnp.dot(w_ref[...], pm.astype(jnp.bfloat16),
                  preferred_element_type=jnp.float32) + b_ref[...]            # (4C, HW) f32
    if has_res:
        acc = acc + res_ref[0]
    if emit_stats:
        s_ref[0] = jnp.sum(acc, axis=1, keepdims=True)
        sq_ref[0] = jnp.sum(acc * acc, axis=1, keepdims=True)
    o_ref[0] = acc


# --------------------------------------------------------------------------------------
# weight repacking (host/XLA side, tiny tensors) -- all weights emitted as bf16
# --------------------------------------------------------------------------------------

def _skip_weights(w_pt, bias):
    # ConvTranspose2d(k=2,s=2,p=0): y[co,2i+a,2j+b] = sum_ci x[ci,i,j]*w_pt[ci,co,a,b] + bias[co]
    # Packed weight rows = (2a+b)*Cout + co, cols = ci.
    ci, co = w_pt.shape[0], w_pt.shape[1]
    wpk = jnp.transpose(w_pt, (2, 3, 1, 0)).reshape(4 * co, ci)
    bpk = jnp.tile(bias, 4).reshape(4 * co, 1)
    return wpk.astype(jnp.bfloat16), bpk.astype(jnp.float32)


def _convt3_weights(w_pt, bias):
    # Polyphase ConvTranspose2d(k=3,s=2,p=1,op=1).  Row blocks = output phases (0,0),(0,1),(1,0),(1,1);
    # column blocks = coarse taps x[i,j], x[i,j+1], x[i+1,j], x[i+1,j+1].
    ci, co = w_pt.shape[0], w_pt.shape[1]
    t = lambda r, c: jnp.transpose(w_pt[:, :, r, c])               # (Cout, Cin)
    z = jnp.zeros((co, ci), w_pt.dtype)
    rows = [
        jnp.concatenate([t(1, 1), z,       z,       z      ], axis=1),   # phase (0,0)
        jnp.concatenate([t(1, 2), t(1, 0), z,       z      ], axis=1),   # phase (0,1)
        jnp.concatenate([t(2, 1), z,       t(0, 1), z      ], axis=1),   # phase (1,0)
        jnp.concatenate([t(2, 2), t(2, 0), t(0, 2), t(0, 0)], axis=1),   # phase (1,1)
    ]
    wpk = jnp.concatenate(rows, axis=0)                            # (4*Cout, 4*Cin)
    bpk = jnp.tile(bias, 4).reshape(4 * co, 1)
    return wpk.astype(jnp.bfloat16), bpk.astype(jnp.float32)


def _packed_conv3_weights(w_pt, bias):
    # Conv2d(3x3,pad=1) on the fine 2Hx2W grid, expressed on the phase-packed coarse grid:
    # fine row 2i+a+di = 2(i+qi)+a2 with qi=floor((a+di)/2), a2=(a+di) mod 2 (same for columns).
    # Rows = out phase (a,b) x co2; cols = coarse tap (qi,qj) x in phase (a2,b2) x co.
    co = w_pt.shape[0]
    z = jnp.zeros((co, co), w_pt.dtype)
    rows = []
    for a in (0, 1):
        for b in (0, 1):
            cols = []
            for qi in (-1, 0, 1):
                for qj in (-1, 0, 1):
                    for a2 in (0, 1):
                        for b2 in (0, 1):
                            di = 2 * qi + a2 - a
                            dj = 2 * qj + b2 - b
                            if -1 <= di <= 1 and -1 <= dj <= 1:
                                cols.append(w_pt[:, :, di + 1, dj + 1])
                            else:
                                cols.append(z)
            rows.append(jnp.concatenate(cols, axis=1))
    wpk = jnp.concatenate(rows, axis=0)                            # (4*Cout, 36*Cout)
    bpk = jnp.tile(bias, 4).reshape(4 * co, 1)
    return wpk.astype(jnp.bfloat16), bpk.astype(jnp.float32)


def _bn_affine(s, sq, count, gamma, beta):
    # Fold training-mode BatchNorm (biased var) into a per-channel affine y = x*scale + shift.
    mean = s / count
    var = jnp.maximum(sq / count - mean * mean, 0.0)
    scale = gamma / jnp.sqrt(var + _EPS)
    shift = beta - mean * scale
    return scale, shift                                            # (C,), (C,)


def _tile4(v, c):
    # per-fine-channel vector -> phase-packed (4C, 1) column
    return jnp.tile(v, 4).reshape(4 * c, 1).astype(jnp.float32)


def _fold_packed_stats(s_part, q_part, co):
    # (N, 4C, 1) per-step partials -> per-fine-channel totals (C,)
    s = jnp.sum(s_part, axis=0).reshape(4, co).sum(axis=0)
    q = jnp.sum(q_part, axis=0).reshape(4, co).sum(axis=0)
    return s, q


# --------------------------------------------------------------------------------------
# pallas_call wrappers
# --------------------------------------------------------------------------------------

def _skip_conv(x_flat, w_pk, b_pk):
    n, ci, hw = x_flat.shape
    c4 = w_pk.shape[0]
    return pl.pallas_call(
        _skip_kernel,
        grid=(n,),
        in_specs=[
            pl.BlockSpec((1, ci, hw), lambda b: (b, 0, 0)),
            pl.BlockSpec((c4, ci), lambda b: (0, 0)),
            pl.BlockSpec((c4, 1), lambda b: (0, 0)),
        ],
        out_specs=(
            pl.BlockSpec((1, c4, hw), lambda b: (b, 0, 0)),
            pl.BlockSpec((1, ci, 1), lambda b: (b, 0, 0)),
            pl.BlockSpec((1, ci, 1), lambda b: (b, 0, 0)),
        ),
        out_shape=(
            jax.ShapeDtypeStruct((n, c4, hw), jnp.float32),
            jax.ShapeDtypeStruct((n, ci, 1), jnp.float32),
            jax.ShapeDtypeStruct((n, ci, 1), jnp.float32),
        ),
        compiler_params=pltpu.CompilerParams(dimension_semantics=("parallel",)),
    )(x_flat, w_pk, b_pk)


def _convt3_up(x_flat, scale, shift, row_map, col_map, w_pk, b_pk, h, w):
    n, ci, hw = x_flat.shape
    c4 = w_pk.shape[0]
    kern = functools.partial(_convt3_kernel, h=h, w=w)
    return pl.pallas_call(
        kern,
        grid=(n,),
        in_specs=[
            pl.BlockSpec((1, ci, hw), lambda b: (b, 0, 0)),
            pl.BlockSpec((ci, 1), lambda b: (0, 0)),
            pl.BlockSpec((ci, 1), lambda b: (0, 0)),
            pl.BlockSpec((1, hw), lambda b: (0, 0)),
            pl.BlockSpec((1, hw), lambda b: (0, 0)),
            pl.BlockSpec(w_pk.shape, lambda b: (0, 0)),
            pl.BlockSpec((c4, 1), lambda b: (0, 0)),
        ],
        out_specs=(
            pl.BlockSpec((1, c4, hw), lambda b: (b, 0, 0)),
            pl.BlockSpec((1, c4, 1), lambda b: (b, 0, 0)),
            pl.BlockSpec((1, c4, 1), lambda b: (b, 0, 0)),
        ),
        out_shape=(
            jax.ShapeDtypeStruct((n, c4, hw), jnp.float32),
            jax.ShapeDtypeStruct((n, c4, 1), jnp.float32),
            jax.ShapeDtypeStruct((n, c4, 1), jnp.float32),
        ),
        compiler_params=pltpu.CompilerParams(dimension_semantics=("parallel",)),
    )(x_flat, scale, shift, row_map, col_map, w_pk, b_pk)


def _conv3_packed(x_pk, scale_pk, shift_pk, row_map, col_map, w_pk, b_pk, h, w,
                  residual=None, want_stats=False):
    n, c4, hw = x_pk.shape
    kern = functools.partial(_conv3_kernel, h=h, w=w,
                             has_res=residual is not None, emit_stats=want_stats)
    in_specs = [
        pl.BlockSpec((1, c4, hw), lambda b: (b, 0, 0)),
        pl.BlockSpec((c4, 1), lambda b: (0, 0)),
        pl.BlockSpec((c4, 1), lambda b: (0, 0)),
        pl.BlockSpec((1, hw), lambda b: (0, 0)),
        pl.BlockSpec((1, hw), lambda b: (0, 0)),
        pl.BlockSpec(w_pk.shape, lambda b: (0, 0)),
        pl.BlockSpec((c4, 1), lambda b: (0, 0)),
    ]
    inputs = [x_pk, scale_pk, shift_pk, row_map, col_map, w_pk, b_pk]
    if residual is not None:
        in_specs.append(pl.BlockSpec((1, c4, hw), lambda b: (b, 0, 0)))
        inputs.append(residual)
    out_specs = [pl.BlockSpec((1, c4, hw), lambda b: (b, 0, 0))]
    out_shape = [jax.ShapeDtypeStruct((n, c4, hw), jnp.float32)]
    if want_stats:
        out_specs += [pl.BlockSpec((1, c4, 1), lambda b: (b, 0, 0))] * 2
        out_shape += [jax.ShapeDtypeStruct((n, c4, 1), jnp.float32)] * 2
    res = pl.pallas_call(
        kern,
        grid=(n,),
        in_specs=in_specs,
        out_specs=tuple(out_specs),
        out_shape=tuple(out_shape),
        compiler_params=pltpu.CompilerParams(dimension_semantics=("parallel",)),
    )(*inputs)
    if want_stats:
        return res[0], res[1], res[2]
    return res[0]


# --------------------------------------------------------------------------------------
# the Up module
# --------------------------------------------------------------------------------------

def init_params(key, in_channels, out_channels):
    ci, co = in_channels, out_channels
    ks = jax.random.split(key, 10)

    def u(k, shape, fan_in):
        b = 1.0 / jnp.sqrt(float(fan_in))
        return jax.random.uniform(k, shape, jnp.float32, -b, b)

    ones = lambda c: jnp.ones((c,), jnp.float32)
    zeros = lambda c: jnp.zeros((c,), jnp.float32)
    # NOTE: PyTorch fan_in for ConvTranspose2d weights/bias is weight.size(1)*k*k = Cout*k*k.
    return dict(
        # net1
        bn1_g=ones(ci), bn1_b=zeros(ci),
        ct1_w=u(ks[0], (ci, co, 3, 3), co * 9), ct1_b=u(ks[1], (co,), co * 9),
        bn2_g=ones(co), bn2_b=zeros(co),
        c1_w=u(ks[2], (co, co, 3, 3), co * 9), c1_b=u(ks[3], (co,), co * 9),
        # net2
        bn3_g=ones(co), bn3_b=zeros(co),
        c2_w=u(ks[4], (co, co, 3, 3), co * 9), c2_b=u(ks[5], (co,), co * 9),
        bn4_g=ones(co), bn4_b=zeros(co),
        c3_w=u(ks[6], (co, co, 3, 3), co * 9), c3_b=u(ks[7], (co,), co * 9),
        # skip
        skip_w=u(ks[8], (ci, co, 2, 2), co * 4), skip_b=u(ks[9], (co,), co * 4),
    )


def up_forward(x_nchw, p):
    x = x_nchw.astype(jnp.float32)
    n, ci, h, w = x.shape
    co = p["c1_w"].shape[0]
    hw = h * w
    x_flat = x.reshape(n, ci, hw)             # NCHW -> channel-sublane / spatial-lane (free view)

    # static coarse-grid row/col index maps for tap masking (tiny, computed once)
    pos = jnp.arange(hw, dtype=jnp.int32)
    row_map = (pos // w).reshape(1, hw)
    col_map = (pos % w).reshape(1, hw)

    cnt_in = float(n * hw)
    cnt_out = float(n * 4 * hw)

    # skip: ConvT(2,s=2) on raw x (phase-packed out); epilogue gives BN1 input-stat partials
    wsk, bsk = _skip_weights(p["skip_w"], p["skip_b"])
    out2, s1p, q1p = _skip_conv(x_flat, wsk, bsk)
    s1 = jnp.sum(s1p, axis=0).reshape(ci)
    q1 = jnp.sum(q1p, axis=0).reshape(ci)
    sc1, sh1 = _bn_affine(s1, q1, cnt_in, p["bn1_g"], p["bn1_b"])

    # net1 head: BN1+ReLU fused into polyphase ConvT(3,s=2,p=1,op=1); epilogue -> BN2 stat partials
    wct, bct = _convt3_weights(p["ct1_w"], p["ct1_b"])
    t, s2p, q2p = _convt3_up(x_flat, sc1.reshape(ci, 1), sh1.reshape(ci, 1),
                             row_map, col_map, wct, bct, h, w)
    s2, q2 = _fold_packed_stats(s2p, q2p, co)
    sc2, sh2 = _bn_affine(s2, q2, cnt_out, p["bn2_g"], p["bn2_b"])

    # net1 tail: BN2+ReLU+Conv3x3 on the packed layout, fused skip residual -> out3; BN3 partials
    wc1, bc1 = _packed_conv3_weights(p["c1_w"], p["c1_b"])
    out3, s3p, q3p = _conv3_packed(t, _tile4(sc2, co), _tile4(sh2, co), row_map, col_map,
                                   wc1, bc1, h, w, residual=out2, want_stats=True)
    s3, q3 = _fold_packed_stats(s3p, q3p, co)
    sc3, sh3 = _bn_affine(s3, q3, cnt_out, p["bn3_g"], p["bn3_b"])

    # net2 first conv: BN3+ReLU+Conv3x3; BN4 partials
    wc2, bc2 = _packed_conv3_weights(p["c2_w"], p["c2_b"])
    u_, s4p, q4p = _conv3_packed(out3, _tile4(sc3, co), _tile4(sh3, co), row_map, col_map,
                                 wc2, bc2, h, w, residual=None, want_stats=True)
    s4, q4 = _fold_packed_stats(s4p, q4p, co)
    sc4, sh4 = _bn_affine(s4, q4, cnt_out, p["bn4_g"], p["bn4_b"])

    # net2 second conv: BN4+ReLU+Conv3x3, fused residual add of out3 -> out5
    wc3, bc3 = _packed_conv3_weights(p["c3_w"], p["c3_b"])
    out5 = _conv3_packed(u_, _tile4(sc4, co), _tile4(sh4, co), row_map, col_map,
                         wc3, bc3, h, w, residual=out3, want_stats=False)

    # single depth-to-space in the wrapper: phase-packed (N,4Cout,HW) -> NCHW (N,Cout,2H,2W)
    y = out5.reshape(n, 2, 2, co, h, w)
    y = jnp.transpose(y, (0, 3, 4, 1, 5, 2)).reshape(n, co, 2 * h, 2 * w)
    return y


# --------------------------------------------------------------------------------------
# pure-JAX reference (loose numerical sanity check)
# --------------------------------------------------------------------------------------

def _ref_forward(x_nchw, p):
    x = jnp.transpose(x_nchw, (0, 2, 3, 1)).astype(jnp.float32)

    def bn_relu(v, g, b):
        m = jnp.mean(v, axis=(0, 1, 2), keepdims=True)
        var = jnp.var(v, axis=(0, 1, 2), keepdims=True)
        return jnp.maximum((v - m) / jnp.sqrt(var + _EPS) * g + b, 0.0)

    def convt(v, w_pt, bias, k, pad, opad):
        wc = jnp.transpose(w_pt[:, :, ::-1, ::-1], (2, 3, 0, 1))   # (K, K, Cin, Cout)
        lo, hi = k - 1 - pad, k - 1 - pad + opad
        y = jax.lax.conv_general_dilated(
            v, wc, window_strides=(1, 1), padding=((lo, hi), (lo, hi)),
            lhs_dilation=(2, 2), dimension_numbers=("NHWC", "HWIO", "NHWC"),
            precision=jax.lax.Precision.HIGHEST)
        return y + bias

    def conv(v, w_pt, bias):
        wc = jnp.transpose(w_pt, (2, 3, 1, 0))
        y = jax.lax.conv_general_dilated(
            v, wc, window_strides=(1, 1), padding=((1, 1), (1, 1)),
            dimension_numbers=("NHWC", "HWIO", "NHWC"),
            precision=jax.lax.Precision.HIGHEST)
        return y + bias

    a = bn_relu(x, p["bn1_g"], p["bn1_b"])
    t = convt(a, p["ct1_w"], p["ct1_b"], 3, 1, 1)
    t = bn_relu(t, p["bn2_g"], p["bn2_b"])
    out1 = conv(t, p["c1_w"], p["c1_b"])
    out2 = convt(x, p["skip_w"], p["skip_b"], 2, 0, 0)
    out3 = out1 + out2
    u_ = bn_relu(out3, p["bn3_g"], p["bn3_b"])
    u_ = conv(u_, p["c2_w"], p["c2_b"])
    u_ = bn_relu(u_, p["bn4_g"], p["bn4_b"])
    out4 = conv(u_, p["c3_w"], p["c3_b"])
    return jnp.transpose(out3 + out4, (0, 3, 1, 2))


if __name__ == "__main__":
    key = jax.random.PRNGKey(0)
    kx, kp = jax.random.split(key)
    N, C_IN, C_OUT, H, W = 2, 4, 8, 16, 16
    x = jax.random.normal(kx, (N, C_IN, H, W), jnp.float32)
    params = init_params(kp, C_IN, C_OUT)

    out = jax.jit(up_forward)(x, params)
    jax.block_until_ready(out)
    assert out.shape == (N, C_OUT, 2 * H, 2 * W), out.shape
    assert out.dtype == jnp.float32

    # sanity check against a pure-JAX reference (loose tolerance: bf16 MXU operands vs the
    # HIGHEST-precision f32 XLA conv reference).
    ref = _ref_forward(x, params)
    assert jnp.allclose(out, ref, atol=1e-1, rtol=1e-1), float(jnp.max(jnp.abs(out - ref)))

    print("KERNEL_OK")
</pallas_src>

<mosaic_0001>
module attributes {stable_mosaic.version = 11 : i64} {
  func.func @_skip_kernel(%arg0: i32, %arg1: memref<1x4x256xf32, #tpu.memory_space<vmem>>, %arg2: memref<32x4xbf16, #tpu.memory_space<vmem>>, %arg3: memref<32x1xf32, #tpu.memory_space<vmem>>, %arg4: memref<1x32x256xf32, #tpu.memory_space<vmem>>, %arg5: memref<1x4x1xf32, #tpu.memory_space<vmem>>, %arg6: memref<1x4x1xf32, #tpu.memory_space<vmem>>) attributes {dimension_semantics = [#tpu.dimension_semantics<parallel>], iteration_bounds = array<i64: 2>, scalar_prefetch = 0 : i64, scratch_operands = 0 : i64, tpu.core_type = #tpu.core_type<tc>, window_params = [{transform_indices = @transform_0, window_bounds = array<i64: 1, 4, 256>}, {pipeline_mode = #tpu.pipeline_mode<synchronous>, transform_indices = @transform_1, window_bounds = array<i64: 32, 4>}, {pipeline_mode = #tpu.pipeline_mode<synchronous>, transform_indices = @transform_2, window_bounds = array<i64: 32, 1>}, {transform_indices = @transform_3, window_bounds = array<i64: 1, 32, 256>}, {transform_indices = @transform_4, window_bounds = array<i64: 1, 4, 1>}, {transform_indices = @transform_5, window_bounds = array<i64: 1, 4, 1>}]} {
    %c0 = arith.constant 0 : index
    %c0_0 = arith.constant 0 : index
    %c0_1 = arith.constant 0 : index
    %0 = vector.load %arg1[%c0, %c0_0, %c0_1] : memref<1x4x256xf32, #tpu.memory_space<vmem>>, vector<1x4x256xf32>
    %1 = vector.shape_cast %0 : vector<1x4x256xf32> to vector<4x256xf32>
    %cst = arith.constant dense<0.000000e+00> : vector<4xf32>
    %2 = vector.multi_reduction <add>, %1, %cst [1] : vector<4x256xf32> to vector<4xf32>
    %3 = vector.shape_cast %2 : vector<4xf32> to vector<4x1xf32>
    %c0_2 = arith.constant 0 : index
    %c0_3 = arith.constant 0 : index
    %c0_4 = arith.constant 0 : index
    %4 = vector.load %arg5[%c0_2, %c0_3, %c0_4] : memref<1x4x1xf32, #tpu.memory_space<vmem>>, vector<1x4x1xf32>
    %5 = vector.shape_cast %4 : vector<1x4x1xf32> to vector<4x1xf32>
    %6 = vector.shape_cast %3 : vector<4x1xf32> to vector<1x4x1xf32>
    tpu.vector_store %arg5[%c0_2, %c0_3, %c0_4], %6 {strides = array<i32>} : memref<1x4x1xf32, #tpu.memory_space<vmem>>, vector<1x4x1xf32>,
    %7 = arith.mulf %1, %1 : vector<4x256xf32>
    %cst_5 = arith.constant dense<0.000000e+00> : vector<4xf32>
    %8 = vector.multi_reduction <add>, %7, %cst_5 [1] : vector<4x256xf32> to vector<4xf32>
    %9 = vector.shape_cast %8 : vector<4xf32> to vector<4x1xf32>
    %c0_6 = arith.constant 0 : index
    %c0_7 = arith.constant 0 : index
    %c0_8 = arith.constant 0 : index
    %10 = vector.load %arg6[%c0_6, %c0_7, %c0_8] : memref<1x4x1xf32, #tpu.memory_space<vmem>>, vector<1x4x1xf32>
    %11 = vector.shape_cast %10 : vector<1x4x1xf32> to vector<4x1xf32>
    %12 = vector.shape_cast %9 : vector<4x1xf32> to vector<1x4x1xf32>
    tpu.vector_store %arg6[%c0_6, %c0_7, %c0_8], %12 {strides = array<i32>} : memref<1x4x1xf32, #tpu.memory_space<vmem>>, vector<1x4x1xf32>,
    %c0_9 = arith.constant 0 : index
    %c0_10 = arith.constant 0 : index
    %13 = vector.load %arg2[%c0_9, %c0_10] : memref<32x4xbf16, #tpu.memory_space<vmem>>, vector<32x4xbf16>
    %14 = arith.truncf %1 : vector<4x256xf32> to vector<4x256xbf16>
    %cst_11 = arith.constant dense<0.000000e+00> : vector<32x256xf32>
    %15 = tpu.matmul %13, %14, %cst_11 {dimension_numbers = #tpu.dot_dimension_numbers<[1], [0], [0], [1], [0, 0, 1, 1], [], []>} : vector<32x4xbf16>, vector<4x256xbf16>, vector<32x256xf32> -> vector<32x256xf32>
    %c0_12 = arith.constant 0 : index
    %c0_13 = arith.constant 0 : index
    %16 = vector.load %arg3[%c0_12, %c0_13] : memref<32x1xf32, #tpu.memory_space<vmem>>, vector<32x1xf32>
    %17 = vector.broadcast %16 : vector<32x1xf32> to vector<32x256xf32>
    %18 = arith.addf %15, %17 : vector<32x256xf32>
    %c0_14 = arith.constant 0 : index
    %c0_15 = arith.constant 0 : index
    %c0_16 = arith.constant 0 : index
    %19 = vector.load %arg4[%c0_14, %c0_15, %c0_16] : memref<1x32x256xf32, #tpu.memory_space<vmem>>, vector<1x32x256xf32>
    %20 = vector.shape_cast %19 : vector<1x32x256xf32> to vector<32x256xf32>
    %21 = vector.shape_cast %18 : vector<32x256xf32> to vector<1x32x256xf32>
    tpu.vector_store %arg4[%c0_14, %c0_15, %c0_16], %21 {strides = array<i32>} : memref<1x32x256xf32, #tpu.memory_space<vmem>>, vector<1x32x256xf32>,
    return
  }
  func.func @transform_0(%arg0: i32) -> (i32, i32, i32) {
    %c0_i32 = arith.constant 0 : i32
    %c0_i32_0 = arith.constant 0 : i32
    %c0_i32_1 = arith.constant 0 : i32
    return %arg0, %c0_i32, %c0_i32_0 : i32, i32, i32
  }
  func.func @transform_1(%arg0: i32) -> (i32, i32) {
    %c0_i32 = arith.constant 0 : i32
    %c0_i32_0 = arith.constant 0 : i32
    %c0_i32_1 = arith.constant 0 : i32
    return %c0_i32, %c0_i32_0 : i32, i32
  }
  func.func @transform_2(%arg0: i32) -> (i32, i32) {
    %c0_i32 = arith.constant 0 : i32
    %c0_i32_0 = arith.constant 0 : i32
    %c0_i32_1 = arith.constant 0 : i32
    return %c0_i32, %c0_i32_0 : i32, i32
  }
  func.func @transform_3(%arg0: i32) -> (i32, i32, i32) {
    %c0_i32 = arith.constant 0 : i32
    %c0_i32_0 = arith.constant 0 : i32
    %c0_i32_1 = arith.constant 0 : i32
    return %arg0, %c0_i32, %c0_i32_0 : i32, i32, i32
  }
  func.func @transform_4(%arg0: i32) -> (i32, i32, i32) {
    %c0_i32 = arith.constant 0 : i32
    %c0_i32_0 = arith.constant 0 : i32
    %c0_i32_1 = arith.constant 0 : i32
    return %arg0, %c0_i32, %c0_i32_0 : i32, i32, i32
  }
  func.func @transform_5(%arg0: i32) -> (i32, i32, i32) {
    %c0_i32 = arith.constant 0 : i32
    %c0_i32_0 = arith.constant 0 : i32
    %c0_i32_1 = arith.constant 0 : i32
    return %arg0, %c0_i32, %c0_i32_0 : i32, i32, i32
  }
}

module attributes {stable_mosaic.version = 11 : i64} {
  func.func @_convt3_kernel(%arg0: i32, %arg1: memref<1x4x256xf32, #tpu.memory_space<vmem>>, %arg2: memref<4x1xf32, #tpu.memory_space<vmem>>, %arg3: memref<4x1xf32, #tpu.memory_space<vmem>>, %arg4: memref<1x256xi32, #tpu.memory_space<vmem>>, %arg5: memref<1x256xi32, #tpu.memory_space<vmem>>, %arg6: memref<32x16xbf16, #tpu.memory_space<vmem>>, %arg7: memref<32x1xf32, #tpu.memory_space<vmem>>, %arg8: memref<1x32x256xf32, #tpu.memory_space<vmem>>, %arg9: memref<1x32x1xf32, #tpu.memory_space<vmem>>, %arg10: memref<1x32x1xf32, #tpu.memory_space<vmem>>) attributes {dimension_semantics = [#tpu.dimension_semantics<parallel>], iteration_bounds = array<i64: 2>, scalar_prefetch = 0 : i64, scratch_operands = 0 : i64, tpu.core_type = #tpu.core_type<tc>, window_params = [{transform_indices = @transform_0, window_bounds = array<i64: 1, 4, 256>}, {pipeline_mode = #tpu.pipeline_mode<synchronous>, transform_indices = @transform_1, window_bounds = array<i64: 4, 1>}, {pipeline_mode = #tpu.pipeline_mode<synchronous>, transform_indices = @transform_2, window_bounds = array<i64: 4, 1>}, {pipeline_mode = #tpu.pipeline_mode<synchronous>, transform_indices = @transform_3, window_bounds = array<i64: 1, 256>}, {pipeline_mode = #tpu.pipeline_mode<synchronous>, transform_indices = @transform_4, window_bounds = array<i64: 1, 256>}, {pipeline_mode = #tpu.pipeline_mode<synchronous>, transform_indices = @transform_5, window_bounds = array<i64: 32, 16>}, {pipeline_mode = #tpu.pipeline_mode<synchronous>, transform_indices = @transform_6, window_bounds = array<i64: 32, 1>}, {transform_indices = @transform_7, window_bounds = array<i64: 1, 32, 256>}, {transform_indices = @transform_8, window_bounds = array<i64: 1, 32, 1>}, {transform_indices = @transform_9, window_bounds = array<i64: 1, 32, 1>}]} {
    %c0 = arith.constant 0 : index
    %c0_0 = arith.constant 0 : index
    %c0_1 = arith.constant 0 : index
    %0 = vector.load %arg1[%c0, %c0_0, %c0_1] : memref<1x4x256xf32, #tpu.memory_space<vmem>>, vector<1x4x256xf32>
    %1 = vector.shape_cast %0 : vector<1x4x256xf32> to vector<4x256xf32>
    %c0_2 = arith.constant 0 : index
    %c0_3 = arith.constant 0 : index
    %2 = vector.load %arg2[%c0_2, %c0_3] : memref<4x1xf32, #tpu.memory_space<vmem>>, vector<4x1xf32>
    %3 = vector.broadcast %2 : vector<4x1xf32> to vector<4x256xf32>
    %4 = arith.mulf %1, %3 : vector<4x256xf32>
    %c0_4 = arith.constant 0 : index
    %c0_5 = arith.constant 0 : index
    %5 = vector.load %arg3[%c0_4, %c0_5] : memref<4x1xf32, #tpu.memory_space<vmem>>, vector<4x1xf32>
    %6 = vector.broadcast %5 : vector<4x1xf32> to vector<4x256xf32>
    %7 = arith.addf %4, %6 : vector<4x256xf32>
    %cst = arith.constant 0.000000e+00 : f32
    %8 = vector.broadcast %cst : f32 to vector<4x256xf32>
    %9 = arith.maximumf %7, %8 : vector<4x256xf32>
    %c0_6 = arith.constant 0 : index
    %c0_7 = arith.constant 0 : index
    %10 = vector.load %arg4[%c0_6, %c0_7] : memref<1x256xi32, #tpu.memory_space<vmem>>, vector<1x256xi32>
    %c0_8 = arith.constant 0 : index
    %c0_9 = arith.constant 0 : index
    %11 = vector.load %arg5[%c0_8, %c0_9] : memref<1x256xi32, #tpu.memory_space<vmem>>, vector<1x256xi32>
    %12 = vector.extract_strided_slice %9 {offsets = [0, 1], sizes = [4, 255], strides = [1, 1]} : vector<4x256xf32> to vector<4x255xf32>
    %cst_10 = arith.constant 0.000000e+00 : f32
    %13 = vector.broadcast %cst_10 : f32 to vector<4x1xf32>
    %14 = tpu.concatenate %12, %13 in 1 : vector<4x255xf32>, vector<4x1xf32> -> vector<4x256xf32>
    %c0_i32 = arith.constant 0 : i32
    %15 = vector.broadcast %c0_i32 : i32 to vector<1x256xi32>
    %16 = arith.addi %10, %15 : vector<1x256xi32>
    %c0_i32_11 = arith.constant 0 : i32
    %17 = vector.broadcast %c0_i32_11 : i32 to vector<1x256xi32>
    %18 = arith.cmpi sge, %16, %17 : vector<1x256xi32>
    %c0_i32_12 = arith.constant 0 : i32
    %19 = vector.broadcast %c0_i32_12 : i32 to vector<1x256xi32>
    %20 = arith.addi %10, %19 : vector<1x256xi32>
    %c16_i32 = arith.constant 16 : i32
    %21 = vector.broadcast %c16_i32 : i32 to vector<1x256xi32>
    %22 = arith.cmpi slt, %20, %21 : vector<1x256xi32>
    %23 = arith.andi %18, %22 : vector<1x256xi1>
    %c1_i32 = arith.constant 1 : i32
    %24 = vector.broadcast %c1_i32 : i32 to vector<1x256xi32>
    %25 = arith.addi %11, %24 : vector<1x256xi32>
    %c0_i32_13 = arith.constant 0 : i32
    %26 = vector.broadcast %c0_i32_13 : i32 to vector<1x256xi32>
    %27 = arith.cmpi sge, %25, %26 : vector<1x256xi32>
    %28 = arith.andi %23, %27 : vector<1x256xi1>
    %c1_i32_14 = arith.constant 1 : i32
    %29 = vector.broadcast %c1_i32_14 : i32 to vector<1x256xi32>
    %30 = arith.addi %11, %29 : vector<1x256xi32>
    %c16_i32_15 = arith.constant 16 : i32
    %31 = vector.broadcast %c16_i32_15 : i32 to vector<1x256xi32>
    %32 = arith.cmpi slt, %30, %31 : vector<1x256xi32>
    %33 = arith.andi %28, %32 : vector<1x256xi1>
    %cst_16 = arith.constant 0.000000e+00 : f32
    %34 = vector.shape_cast %33 : vector<1x256xi1> to vector<1x256xi1>
    %35 = vector.broadcast %34 : vector<1x256xi1> to vector<4x256xi1>
    %36 = vector.broadcast %cst_16 : f32 to vector<4x256xf32>
    %37 = arith.select %35, %14, %36 : vector<4x256xi1>, vector<4x256xf32>
    %38 = vector.extract_strided_slice %9 {offsets = [0, 16], sizes = [4, 240], strides = [1, 1]} : vector<4x256xf32> to vector<4x240xf32>
    %cst_17 = arith.constant 0.000000e+00 : f32
    %39 = vector.broadcast %cst_17 : f32 to vector<4x16xf32>
    %40 = tpu.concatenate %38, %39 in 1 : vector<4x240xf32>, vector<4x16xf32> -> vector<4x256xf32>
    %c1_i32_18 = arith.constant 1 : i32
    %41 = vector.broadcast %c1_i32_18 : i32 to vector<1x256xi32>
    %42 = arith.addi %10, %41 : vector<1x256xi32>
    %c0_i32_19 = arith.constant 0 : i32
    %43 = vector.broadcast %c0_i32_19 : i32 to vector<1x256xi32>
    %44 = arith.cmpi sge, %42, %43 : vector<1x256xi32>
    %c1_i32_20 = arith.constant 1 : i32
    %45 = vector.broadcast %c1_i32_20 : i32 to vector<1x256xi32>
    %46 = arith.addi %10, %45 : vector<1x256xi32>
    %c16_i32_21 = arith.constant 16 : i32
    %47 = vector.broadcast %c16_i32_21 : i32 to vector<1x256xi32>
    %48 = arith.cmpi slt, %46, %47 : vector<1x256xi32>
    %49 = arith.andi %44, %48 : vector<1x256xi1>
    %c0_i32_22 = arith.constant 0 : i32
    %50 = vector.broadcast %c0_i32_22 : i32 to vector<1x256xi32>
    %51 = arith.addi %11, %50 : vector<1x256xi32>
    %c0_i32_23 = arith.constant 0 : i32
    %52 = vector.broadcast %c0_i32_23 : i32 to vector<1x256xi32>
    %53 = arith.cmpi sge, %51, %52 : vector<1x256xi32>
    %54 = arith.andi %49, %53 : vector<1x256xi1>
    %c0_i32_24 = arith.constant 0 : i32
    %55 = vector.broadcast %c0_i32_24 : i32 to vector<1x256xi32>
    %56 = arith.addi %11, %55 : vector<1x256xi32>
    %c16_i32_25 = arith.constant 16 : i32
    %57 = vector.broadcast %c16_i32_25 : i32 to vector<1x256xi32>
    %58 = arith.cmpi slt, %56, %57 : vector<1x256xi32>
    %59 = arith.andi %54, %58 : vector<1x256xi1>
    %cst_26 = arith.constant 0.000000e+00 : f32
    %60 = vector.shape_cast %59 : vector<1x256xi1> to vector<1x256xi1>
    %61 = vector.broadcast %60 : vector<1x256xi1> to vector<4x256xi1>
    %62 = vector.broadcast %cst_26 : f32 to vector<4x256xf32>
    %63 = arith.select %61, %40, %62 : vector<4x256xi1>, vector<4x256xf32>
    %64 = vector.extract_strided_slice %9 {offsets = [0, 17], sizes = [4, 239], strides = [1, 1]} : vector<4x256xf32> to vector<4x239xf32>
    %cst_27 = arith.constant 0.000000e+00 : f32
    %65 = vector.broadcast %cst_27 : f32 to vector<4x17xf32>
    %66 = tpu.concatenate %64, %65 in 1 : vector<4x239xf32>, vector<4x17xf32> -> vector<4x256xf32>
    %c1_i32_28 = arith.constant 1 : i32
    %67 = vector.broadcast %c1_i32_28 : i32 to vector<1x256xi32>
    %68 = arith.addi %10, %67 : vector<1x256xi32>
    %c0_i32_29 = arith.constant 0 : i32
    %69 = vector.broadcast %c0_i32_29 : i32 to vector<1x256xi32>
    %70 = arith.cmpi sge, %68, %69 : vector<1x256xi32>
    %c1_i32_30 = arith.constant 1 : i32
    %71 = vector.broadcast %c1_i32_30 : i32 to vector<1x256xi32>
    %72 = arith.addi %10, %71 : vector<1x256xi32>
    %c16_i32_31 = arith.constant 16 : i32
    %73 = vector.broadcast %c16_i32_31 : i32 to vector<1x256xi32>
    %74 = arith.cmpi slt, %72, %73 : vector<1x256xi32>
    %75 = arith.andi %70, %74 : vector<1x256xi1>
    %c1_i32_32 = arith.constant 1 : i32
    %76 = vector.broadcast %c1_i32_32 : i32 to vector<1x256xi32>
    %77 = arith.addi %11, %76 : vector<1x256xi32>
    %c0_i32_33 = arith.constant 0 : i32
    %78 = vector.broadcast %c0_i32_33 : i32 to vector<1x256xi32>
    %79 = arith.cmpi sge, %77, %78 : vector<1x256xi32>
    %80 = arith.andi %75, %79 : vector<1x256xi1>
    %c1_i32_34 = arith.constant 1 : i32
    %81 = vector.broadcast %c1_i32_34 : i32 to vector<1x256xi32>
    %82 = arith.addi %11, %81 : vector<1x256xi32>
    %c16_i32_35 = arith.constant 16 : i32
    %83 = vector.broadcast %c16_i32_35 : i32 to vector<1x256xi32>
    %84 = arith.cmpi slt, %82, %83 : vector<1x256xi32>
    %85 = arith.andi %80, %84 : vector<1x256xi1>
    %cst_36 = arith.constant 0.000000e+00 : f32
    %86 = vector.shape_cast %85 : vector<1x256xi1> to vector<1x256xi1>
    %87 = vector.broadcast %86 : vector<1x256xi1> to vector<4x256xi1>
    %88 = vector.broadcast %cst_36 : f32 to vector<4x256xf32>
    %89 = arith.select %87, %66, %88 : vector<4x256xi1>, vector<4x256xf32>
    %90 = tpu.concatenate %9, %37, %63, %89 in 0 : vector<4x256xf32>, vector<4x256xf32>, vector<4x256xf32>, vector<4x256xf32> -> vector<16x256xf32>
    %c0_37 = arith.constant 0 : index
    %c0_38 = arith.constant 0 : index
    %91 = vector.load %arg6[%c0_37, %c0_38] : memref<32x16xbf16, #tpu.memory_space<vmem>>, vector<32x16xbf16>
    %92 = arith.truncf %90 : vector<16x256xf32> to vector<16x256xbf16>
    %cst_39 = arith.constant dense<0.000000e+00> : vector<32x256xf32>
    %93 = tpu.matmul %91, %92, %cst_39 {dimension_numbers = #tpu.dot_dimension_numbers<[1], [0], [0], [1], [0, 0, 1, 1], [], []>} : vector<32x16xbf16>, vector<16x256xbf16>, vector<32x256xf32> -> vector<32x256xf32>
    %c0_40 = arith.constant 0 : index
    %c0_41 = arith.constant 0 : index
    %94 = vector.load %arg7[%c0_40, %c0_41] : memref<32x1xf32, #tpu.memory_space<vmem>>, vector<32x1xf32>
    %95 = vector.broadcast %94 : vector<32x1xf32> to vector<32x256xf32>
    %96 = arith.addf %93, %95 : vector<32x256xf32>
    %cst_42 = arith.constant dense<0.000000e+00> : vector<32xf32>
    %97 = vector.multi_reduction <add>, %96, %cst_42 [1] : vector<32x256xf32> to vector<32xf32>
    %98 = vector.shape_cast %97 : vector<32xf32> to vector<32x1xf32>
    %c0_43 = arith.constant 0 : index
    %c0_44 = arith.constant 0 : index
    %c0_45 = arith.constant 0 : index
    %99 = vector.load %arg9[%c0_43, %c0_44, %c0_45] : memref<1x32x1xf32, #tpu.memory_space<vmem>>, vector<1x32x1xf32>
    %100 = vector.shape_cast %99 : vector<1x32x1xf32> to vector<32x1xf32>
    %101 = vector.shape_cast %98 : vector<32x1xf32> to vector<1x32x1xf32>
    tpu.vector_store %arg9[%c0_43, %c0_44, %c0_45], %101 {strides = array<i32>} : memref<1x32x1xf32, #tpu.memory_space<vmem>>, vector<1x32x1xf32>,
    %102 = arith.mulf %96, %96 : vector<32x256xf32>
    %cst_46 = arith.constant dense<0.000000e+00> : vector<32xf32>
    %103 = vector.multi_reduction <add>, %102, %cst_46 [1] : vector<32x256xf32> to vector<32xf32>
    %104 = vector.shape_cast %103 : vector<32xf32> to vector<32x1xf32>
    %c0_47 = arith.constant 0 : index
    %c0_48 = arith.constant 0 : index
    %c0_49 = arith.constant 0 : index
    %105 = vector.load %arg10[%c0_47, %c0_48, %c0_49] : memref<1x32x1xf32, #tpu.memory_space<vmem>>, vector<1x32x1xf32>
    %106 = vector.shape_cast %105 : vector<1x32x1xf32> to vector<32x1xf32>
    %107 = vector.shape_cast %104 : vector<32x1xf32> to vector<1x32x1xf32>
    tpu.vector_store %arg10[%c0_47, %c0_48, %c0_49], %107 {strides = array<i32>} : memref<1x32x1xf32, #tpu.memory_space<vmem>>, vector<1x32x1xf32>,
    %c0_50 = arith.constant 0 : index
    %c0_51 = arith.constant 0 : index
    %c0_52 = arith.constant 0 : index
    %108 = vector.load %arg8[%c0_50, %c0_51, %c0_52] : memref<1x32x256xf32, #tpu.memory_space<vmem>>, vector<1x32x256xf32>
    %109 = vector.shape_cast %108 : vector<1x32x256xf32> to vector<32x256xf32>
    %110 = vector.shape_cast %96 : vector<32x256xf32> to vector<1x32x256xf32>
    tpu.vector_store %arg8[%c0_50, %c0_51, %c0_52], %110 {strides = array<i32>} : memref<1x32x256xf32, #tpu.memory_space<vmem>>, vector<1x32x256xf32>,
    return
  }
  func.func @transform_0(%arg0: i32) -> (i32, i32, i32) {
    %c0_i32 = arith.constant 0 : i32
    %c0_i32_0 = arith.constant 0 : i32
    %c0_i32_1 = arith.constant 0 : i32
    return %arg0, %c0_i32, %c0_i32_0 : i32, i32, i32
  }
  func.func @transform_1(%arg0: i32) -> (i32, i32) {
    %c0_i32 = arith.constant 0 : i32
    %c0_i32_0 = arith.constant 0 : i32
    %c0_i32_1 = arith.constant 0 : i32
    return %c0_i32, %c0_i32_0 : i32, i32
  }
  func.func @transform_2(%arg0: i32) -> (i32, i32) {
    %c0_i32 = arith.constant 0 : i32
    %c0_i32_0 = arith.constant 0 : i32
    %c0_i32_1 = arith.constant 0 : i32
    return %c0_i32, %c0_i32_0 : i32, i32
  }
  func.func @transform_3(%arg0: i32) -> (i32, i32) {
    %c0_i32 = arith.constant 0 : i32
    %c0_i32_0 = arith.constant 0 : i32
    %c0_i32_1 = arith.constant 0 : i32
    return %c0_i32, %c0_i32_0 : i32, i32
  }
  func.func @transform_4(%arg0: i32) -> (i32, i32) {
    %c0_i32 = arith.constant 0 : i32
    %c0_i32_0 = arith.constant 0 : i32
    %c0_i32_1 = arith.constant 0 : i32
    return %c0_i32, %c0_i32_0 : i32, i32
  }
  func.func @transform_5(%arg0: i32) -> (i32, i32) {
    %c0_i32 = arith.constant 0 : i32
    %c0_i32_0 = arith.constant 0 : i32
    %c0_i32_1 = arith.constant 0 : i32
    return %c0_i32, %c0_i32_0 : i32, i32
  }
  func.func @transform_6(%arg0: i32) -> (i32, i32) {
    %c0_i32 = arith.constant 0 : i32
    %c0_i32_0 = arith.constant 0 : i32
    %c0_i32_1 = arith.constant 0 : i32
    return %c0_i32, %c0_i32_0 : i32, i32
  }
  func.func @transform_7(%arg0: i32) -> (i32, i32, i32) {
    %c0_i32 = arith.constant 0 : i32
    %c0_i32_0 = arith.constant 0 : i32
    %c0_i32_1 = arith.constant 0 : i32
    return %arg0, %c0_i32, %c0_i32_0 : i32, i32, i32
  }
  func.func @transform_8(%arg0: i32) -> (i32, i32, i32) {
    %c0_i32 = arith.constant 0 : i32
    %c0_i32_0 = arith.constant 0 : i32
    %c0_i32_1 = arith.constant 0 : i32
    return %arg0, %c0_i32, %c0_i32_0 : i32, i32, i32
  }
  func.func @transform_9(%arg0: i32) -> (i32, i32, i32) {
    %c0_i32 = arith.constant 0 : i32
    %c0_i32_0 = arith.constant 0 : i32
    %c0_i32_1 = arith.constant 0 : i32
    return %arg0, %c0_i32, %c0_i32_0 : i32, i32, i32
  }
}

module attributes {stable_mosaic.version = 11 : i64} {
  func.func @_conv3_kernel(%arg0: i32, %arg1: memref<1x32x256xf32, #tpu.memory_space<vmem>>, %arg2: memref<32x1xf32, #tpu.memory_space<vmem>>, %arg3: memref<32x1xf32, #tpu.memory_space<vmem>>, %arg4: memref<1x256xi32, #tpu.memory_space<vmem>>, %arg5: memref<1x256xi32, #tpu.memory_space<vmem>>, %arg6: memref<32x288xbf16, #tpu.memory_space<vmem>>, %arg7: memref<32x1xf32, #tpu.memory_space<vmem>>, %arg8: memref<1x32x256xf32, #tpu.memory_space<vmem>>, %arg9: memref<1x32x256xf32, #tpu.memory_space<vmem>>, %arg10: memref<1x32x1xf32, #tpu.memory_space<vmem>>, %arg11: memref<1x32x1xf32, #tpu.memory_space<vmem>>) attributes {dimension_semantics = [#tpu.dimension_semantics<parallel>], iteration_bounds = array<i64: 2>, scalar_prefetch = 0 : i64, scratch_operands = 0 : i64, tpu.core_type = #tpu.core_type<tc>, window_params = [{transform_indices = @transform_0, window_bounds = array<i64: 1, 32, 256>}, {pipeline_mode = #tpu.pipeline_mode<synchronous>, transform_indices = @transform_1, window_bounds = array<i64: 32, 1>}, {pipeline_mode = #tpu.pipeline_mode<synchronous>, transform_indices = @transform_2, window_bounds = array<i64: 32, 1>}, {pipeline_mode = #tpu.pipeline_mode<synchronous>, transform_indices = @transform_3, window_bounds = array<i64: 1, 256>}, {pipeline_mode = #tpu.pipeline_mode<synchronous>, transform_indices = @transform_4, window_bounds = array<i64: 1, 256>}, {pipeline_mode = #tpu.pipeline_mode<synchronous>, transform_indices = @transform_5, window_bounds = array<i64: 32, 288>}, {pipeline_mode = #tpu.pipeline_mode<synchronous>, transform_indices = @transform_6, window_bounds = array<i64: 32, 1>}, {transform_indices = @transform_7, window_bounds = array<i64: 1, 32, 256>}, {transform_indices = @transform_8, window_bounds = array<i64: 1, 32, 256>}, {transform_indices = @transform_9, window_bounds = array<i64: 1, 32, 1>}, {transform_indices = @transform_10, window_bounds = array<i64: 1, 32, 1>}]} {
    %c0 = arith.constant 0 : index
    %c0_0 = arith.constant 0 : index
    %c0_1 = arith.constant 0 : index
    %0 = vector.load %arg1[%c0, %c0_0, %c0_1] : memref<1x32x256xf32, #tpu.memory_space<vmem>>, vector<1x32x256xf32>
    %1 = vector.shape_cast %0 : vector<1x32x256xf32> to vector<32x256xf32>
    %c0_2 = arith.constant 0 : index
    %c0_3 = arith.constant 0 : index
    %2 = vector.load %arg2[%c0_2, %c0_3] : memref<32x1xf32, #tpu.memory_space<vmem>>, vector<32x1xf32>
    %3 = vector.broadcast %2 : vector<32x1xf32> to vector<32x256xf32>
    %4 = arith.mulf %1, %3 : vector<32x256xf32>
    %c0_4 = arith.constant 0 : index
    %c0_5 = arith.constant 0 : index
    %5 = vector.load %arg3[%c0_4, %c0_5] : memref<32x1xf32, #tpu.memory_space<vmem>>, vector<32x1xf32>
    %6 = vector.broadcast %5 : vector<32x1xf32> to vector<32x256xf32>
    %7 = arith.addf %4, %6 : vector<32x256xf32>
    %cst = arith.constant 0.000000e+00 : f32
    %8 = vector.broadcast %cst : f32 to vector<32x256xf32>
    %9 = arith.maximumf %7, %8 : vector<32x256xf32>
    %c0_6 = arith.constant 0 : index
    %c0_7 = arith.constant 0 : index
    %10 = vector.load %arg4[%c0_6, %c0_7] : memref<1x256xi32, #tpu.memory_space<vmem>>, vector<1x256xi32>
    %c0_8 = arith.constant 0 : index
    %c0_9 = arith.constant 0 : index
    %11 = vector.load %arg5[%c0_8, %c0_9] : memref<1x256xi32, #tpu.memory_space<vmem>>, vector<1x256xi32>
    %cst_10 = arith.constant 0.000000e+00 : f32
    %12 = vector.broadcast %cst_10 : f32 to vector<32x17xf32>
    %13 = vector.extract_strided_slice %9 {offsets = [0, 0], sizes = [32, 239], strides = [1, 1]} : vector<32x256xf32> to vector<32x239xf32>
    %14 = tpu.concatenate %12, %13 in 1 : vector<32x17xf32>, vector<32x239xf32> -> vector<32x256xf32>
    %c-1_i32 = arith.constant -1 : i32
    %15 = vector.broadcast %c-1_i32 : i32 to vector<1x256xi32>
    %16 = arith.addi %10, %15 : vector<1x256xi32>
    %c0_i32 = arith.constant 0 : i32
    %17 = vector.broadcast %c0_i32 : i32 to vector<1x256xi32>
    %18 = arith.cmpi sge, %16, %17 : vector<1x256xi32>
    %c-1_i32_11 = arith.constant -1 : i32
    %19 = vector.broadcast %c-1_i32_11 : i32 to vector<1x256xi32>
    %20 = arith.addi %10, %19 : vector<1x256xi32>
    %c16_i32 = arith.constant 16 : i32
    %21 = vector.broadcast %c16_i32 : i32 to vector<1x256xi32>
    %22 = arith.cmpi slt, %20, %21 : vector<1x256xi32>
    %23 = arith.andi %18, %22 : vector<1x256xi1>
    %c-1_i32_12 = arith.constant -1 : i32
    %24 = vector.broadcast %c-1_i32_12 : i32 to vector<1x256xi32>
    %25 = arith.addi %11, %24 : vector<1x256xi32>
    %c0_i32_13 = arith.constant 0 : i32
    %26 = vector.broadcast %c0_i32_13 : i32 to vector<1x256xi32>
    %27 = arith.cmpi sge, %25, %26 : vector<1x256xi32>
    %28 = arith.andi %23, %27 : vector<1x256xi1>
    %c-1_i32_14 = arith.constant -1 : i32
    %29 = vector.broadcast %c-1_i32_14 : i32 to vector<1x256xi32>
    %30 = arith.addi %11, %29 : vector<1x256xi32>
    %c16_i32_15 = arith.constant 16 : i32
    %31 = vector.broadcast %c16_i32_15 : i32 to vector<1x256xi32>
    %32 = arith.cmpi slt, %30, %31 : vector<1x256xi32>
    %33 = arith.andi %28, %32 : vector<1x256xi1>
    %cst_16 = arith.constant 0.000000e+00 : f32
    %34 = vector.shape_cast %33 : vector<1x256xi1> to vector<1x256xi1>
    %35 = vector.broadcast %34 : vector<1x256xi1> to vector<32x256xi1>
    %36 = vector.broadcast %cst_16 : f32 to vector<32x256xf32>
    %37 = arith.select %35, %14, %36 : vector<32x256xi1>, vector<32x256xf32>
    %cst_17 = arith.constant 0.000000e+00 : f32
    %38 = vector.broadcast %cst_17 : f32 to vector<32x16xf32>
    %39 = vector.extract_strided_slice %9 {offsets = [0, 0], sizes = [32, 240], strides = [1, 1]} : vector<32x256xf32> to vector<32x240xf32>
    %40 = tpu.concatenate %38, %39 in 1 : vector<32x16xf32>, vector<32x240xf32> -> vector<32x256xf32>
    %c-1_i32_18 = arith.constant -1 : i32
    %41 = vector.broadcast %c-1_i32_18 : i32 to vector<1x256xi32>
    %42 = arith.addi %10, %41 : vector<1x256xi32>
    %c0_i32_19 = arith.constant 0 : i32
    %43 = vector.broadcast %c0_i32_19 : i32 to vector<1x256xi32>
    %44 = arith.cmpi sge, %42, %43 : vector<1x256xi32>
    %c-1_i32_20 = arith.constant -1 : i32
    %45 = vector.broadcast %c-1_i32_20 : i32 to vector<1x256xi32>
    %46 = arith.addi %10, %45 : vector<1x256xi32>
    %c16_i32_21 = arith.constant 16 : i32
    %47 = vector.broadcast %c16_i32_21 : i32 to vector<1x256xi32>
    %48 = arith.cmpi slt, %46, %47 : vector<1x256xi32>
    %49 = arith.andi %44, %48 : vector<1x256xi1>
    %c0_i32_22 = arith.constant 0 : i32
    %50 = vector.broadcast %c0_i32_22 : i32 to vector<1x256xi32>
    %51 = arith.addi %11, %50 : vector<1x256xi32>
    %c0_i32_23 = arith.constant 0 : i32
    %52 = vector.broadcast %c0_i32_23 : i32 to vector<1x256xi32>
    %53 = arith.cmpi sge, %51, %52 : vector<1x256xi32>
    %54 = arith.andi %49, %53 : vector<1x256xi1>
    %c0_i32_24 = arith.constant 0 : i32
    %55 = vector.broadcast %c0_i32_24 : i32 to vector<1x256xi32>
    %56 = arith.addi %11, %55 : vector<1x256xi32>
    %c16_i32_25 = arith.constant 16 : i32
    %57 = vector.broadcast %c16_i32_25 : i32 to vector<1x256xi32>
    %58 = arith.cmpi slt, %56, %57 : vector<1x256xi32>
    %59 = arith.andi %54, %58 : vector<1x256xi1>
    %cst_26 = arith.constant 0.000000e+00 : f32
    %60 = vector.shape_cast %59 : vector<1x256xi1> to vector<1x256xi1>
    %61 = vector.broadcast %60 : vector<1x256xi1> to vector<32x256xi1>
    %62 = vector.broadcast %cst_26 : f32 to vector<32x256xf32>
    %63 = arith.select %61, %40, %62 : vector<32x256xi1>, vector<32x256xf32>
    %cst_27 = arith.constant 0.000000e+00 : f32
    %64 = vector.broadcast %cst_27 : f32 to vector<32x15xf32>
    %65 = vector.extract_strided_slice %9 {offsets = [0, 0], sizes = [32, 241], strides = [1, 1]} : vector<32x256xf32> to vector<32x241xf32>
    %66 = tpu.concatenate %64, %65 in 1 : vector<32x15xf32>, vector<32x241xf32> -> vector<32x256xf32>
    %c-1_i32_28 = arith.constant -1 : i32
    %67 = vector.broadcast %c-1_i32_28 : i32 to vector<1x256xi32>
    %68 = arith.addi %10, %67 : vector<1x256xi32>
    %c0_i32_29 = arith.constant 0 : i32
    %69 = vector.broadcast %c0_i32_29 : i32 to vector<1x256xi32>
    %70 = arith.cmpi sge, %68, %69 : vector<1x256xi32>
    %c-1_i32_30 = arith.constant -1 : i32
    %71 = vector.broadcast %c-1_i32_30 : i32 to vector<1x256xi32>
    %72 = arith.addi %10, %71 : vector<1x256xi32>
    %c16_i32_31 = arith.constant 16 : i32
    %73 = vector.broadcast %c16_i32_31 : i32 to vector<1x256xi32>
    %74 = arith.cmpi slt, %72, %73 : vector<1x256xi32>
    %75 = arith.andi %70, %74 : vector<1x256xi1>
    %c1_i32 = arith.constant 1 : i32
    %76 = vector.broadcast %c1_i32 : i32 to vector<1x256xi32>
    %77 = arith.addi %11, %76 : vector<1x256xi32>
    %c0_i32_32 = arith.constant 0 : i32
    %78 = vector.broadcast %c0_i32_32 : i32 to vector<1x256xi32>
    %79 = arith.cmpi sge, %77, %78 : vector<1x256xi32>
    %80 = arith.andi %75, %79 : vector<1x256xi1>
    %c1_i32_33 = arith.constant 1 : i32
    %81 = vector.broadcast %c1_i32_33 : i32 to vector<1x256xi32>
    %82 = arith.addi %11, %81 : vector<1x256xi32>
    %c16_i32_34 = arith.constant 16 : i32
    %83 = vector.broadcast %c16_i32_34 : i32 to vector<1x256xi32>
    %84 = arith.cmpi slt, %82, %83 : vector<1x256xi32>
    %85 = arith.andi %80, %84 : vector<1x256xi1>
    %cst_35 = arith.constant 0.000000e+00 : f32
    %86 = vector.shape_cast %85 : vector<1x256xi1> to vector<1x256xi1>
    %87 = vector.broadcast %86 : vector<1x256xi1> to vector<32x256xi1>
    %88 = vector.broadcast %cst_35 : f32 to vector<32x256xf32>
    %89 = arith.select %87, %66, %88 : vector<32x256xi1>, vector<32x256xf32>
    %cst_36 = arith.constant 0.000000e+00 : f32
    %90 = vector.broadcast %cst_36 : f32 to vector<32x1xf32>
    %91 = vector.extract_strided_slice %9 {offsets = [0, 0], sizes = [32, 255], strides = [1, 1]} : vector<32x256xf32> to vector<32x255xf32>
    %92 = tpu.concatenate %90, %91 in 1 : vector<32x1xf32>, vector<32x255xf32> -> vector<32x256xf32>
    %c0_i32_37 = arith.constant 0 : i32
    %93 = vector.broadcast %c0_i32_37 : i32 to vector<1x256xi32>
    %94 = arith.addi %10, %93 : vector<1x256xi32>
    %c0_i32_38 = arith.constant 0 : i32
    %95 = vector.broadcast %c0_i32_38 : i32 to vector<1x256xi32>
    %96 = arith.cmpi sge, %94, %95 : vector<1x256xi32>
    %c0_i32_39 = arith.constant 0 : i32
    %97 = vector.broadcast %c0_i32_39 : i32 to vector<1x256xi32>
    %98 = arith.addi %10, %97 : vector<1x256xi32>
    %c16_i32_40 = arith.constant 16 : i32
    %99 = vector.broadcast %c16_i32_40 : i32 to vector<1x256xi32>
    %100 = arith.cmpi slt, %98, %99 : vector<1x256xi32>
    %101 = arith.andi %96, %100 : vector<1x256xi1>
    %c-1_i32_41 = arith.constant -1 : i32
    %102 = vector.broadcast %c-1_i32_41 : i32 to vector<1x256xi32>
    %103 = arith.addi %11, %102 : vector<1x256xi32>
    %c0_i32_42 = arith.constant 0 : i32
    %104 = vector.broadcast %c0_i32_42 : i32 to vector<1x256xi32>
    %105 = arith.cmpi sge, %103, %104 : vector<1x256xi32>
    %106 = arith.andi %101, %105 : vector<1x256xi1>
    %c-1_i32_43 = arith.constant -1 : i32
    %107 = vector.broadcast %c-1_i32_43 : i32 to vector<1x256xi32>
    %108 = arith.addi %11, %107 : vector<1x256xi32>
    %c16_i32_44 = arith.constant 16 : i32
    %109 = vector.broadcast %c16_i32_44 : i32 to vector<1x256xi32>
    %110 = arith.cmpi slt, %108, %109 : vector<1x256xi32>
    %111 = arith.andi %106, %110 : vector<1x256xi1>
    %cst_45 = arith.constant 0.000000e+00 : f32
    %112 = vector.shape_cast %111 : vector<1x256xi1> to vector<1x256xi1>
    %113 = vector.broadcast %112 : vector<1x256xi1> to vector<32x256xi1>
    %114 = vector.broadcast %cst_45 : f32 to vector<32x256xf32>
    %115 = arith.select %113, %92, %114 : vector<32x256xi1>, vector<32x256xf32>
    %116 = vector.extract_strided_slice %9 {offsets = [0, 1], sizes = [32, 255], strides = [1, 1]} : vector<32x256xf32> to vector<32x255xf32>
    %cst_46 = arith.constant 0.000000e+00 : f32
    %117 = vector.broadcast %cst_46 : f32 to vector<32x1xf32>
    %118 = tpu.concatenate %116, %117 in 1 : vector<32x255xf32>, vector<32x1xf32> -> vector<32x256xf32>
    %c0_i32_47 = arith.constant 0 : i32
    %119 = vector.broadcast %c0_i32_47 : i32 to vector<1x256xi32>
    %120 = arith.addi %10, %119 : vector<1x256xi32>
    %c0_i32_48 = arith.constant 0 : i32
    %121 = vector.broadcast %c0_i32_48 : i32 to vector<1x256xi32>
    %122 = arith.cmpi sge, %120, %121 : vector<1x256xi32>
    %c0_i32_49 = arith.constant 0 : i32
    %123 = vector.broadcast %c0_i32_49 : i32 to vector<1x256xi32>
    %124 = arith.addi %10, %123 : vector<1x256xi32>
    %c16_i32_50 = arith.constant 16 : i32
    %125 = vector.broadcast %c16_i32_50 : i32 to vector<1x256xi32>
    %126 = arith.cmpi slt, %124, %125 : vector<1x256xi32>
    %127 = arith.andi %122, %126 : vector<1x256xi1>
    %c1_i32_51 = arith.constant 1 : i32
    %128 = vector.broadcast %c1_i32_51 : i32 to vector<1x256xi32>
    %129 = arith.addi %11, %128 : vector<1x256xi32>
    %c0_i32_52 = arith.constant 0 : i32
    %130 = vector.broadcast %c0_i32_52 : i32 to vector<1x256xi32>
    %131 = arith.cmpi sge, %129, %130 : vector<1x256xi32>
    %132 = arith.andi %127, %131 : vector<1x256xi1>
    %c1_i32_53 = arith.constant 1 : i32
    %133 = vector.broadcast %c1_i32_53 : i32 to vector<1x256xi32>
    %134 = arith.addi %11, %133 : vector<1x256xi32>
    %c16_i32_54 = arith.constant 16 : i32
    %135 = vector.broadcast %c16_i32_54 : i32 to vector<1x256xi32>
    %136 = arith.cmpi slt, %134, %135 : vector<1x256xi32>
    %137 = arith.andi %132, %136 : vector<1x256xi1>
    %cst_55 = arith.constant 0.000000e+00 : f32
    %138 = vector.shape_cast %137 : vector<1x256xi1> to vector<1x256xi1>
    %139 = vector.broadcast %138 : vector<1x256xi1> to vector<32x256xi1>
    %140 = vector.broadcast %cst_55 : f32 to vector<32x256xf32>
    %141 = arith.select %139, %118, %140 : vector<32x256xi1>, vector<32x256xf32>
    %142 = vector.extract_strided_slice %9 {offsets = [0, 15], sizes = [32, 241], strides = [1, 1]} : vector<32x256xf32> to vector<32x241xf32>
    %cst_56 = arith.constant 0.000000e+00 : f32
    %143 = vector.broadcast %cst_56 : f32 to vector<32x15xf32>
    %144 = tpu.concatenate %142, %143 in 1 : vector<32x241xf32>, vector<32x15xf32> -> vector<32x256xf32>
    %c1_i32_57 = arith.constant 1 : i32
    %145 = vector.broadcast %c1_i32_57 : i32 to vector<1x256xi32>
    %146 = arith.addi %10, %145 : vector<1x256xi32>
    %c0_i32_58 = arith.constant 0 : i32
    %147 = vector.broadcast %c0_i32_58 : i32 to vector<1x256xi32>
    %148 = arith.cmpi sge, %146, %147 : vector<1x256xi32>
    %c1_i32_59 = arith.constant 1 : i32
    %149 = vector.broadcast %c1_i32_59 : i32 to vector<1x256xi32>
    %150 = arith.addi %10, %149 : vector<1x256xi32>
    %c16_i32_60 = arith.constant 16 : i32
    %151 = vector.broadcast %c16_i32_60 : i32 to vector<1x256xi32>
    %152 = arith.cmpi slt, %150, %151 : vector<1x256xi32>
    %153 = arith.andi %148, %152 : vector<1x256xi1>
    %c-1_i32_61 = arith.constant -1 : i32
    %154 = vector.broadcast %c-1_i32_61 : i32 to vector<1x256xi32>
    %155 = arith.addi %11, %154 : vector<1x256xi32>
    %c0_i32_62 = arith.constant 0 : i32
    %156 = vector.broadcast %c0_i32_62 : i32 to vector<1x256xi32>
    %157 = arith.cmpi sge, %155, %156 : vector<1x256xi32>
    %158 = arith.andi %153, %157 : vector<1x256xi1>
    %c-1_i32_63 = arith.constant -1 : i32
    %159 = vector.broadcast %c-1_i32_63 : i32 to vector<1x256xi32>
    %160 = arith.addi %11, %159 : vector<1x256xi32>
    %c16_i32_64 = arith.constant 16 : i32
    %161 = vector.broadcast %c16_i32_64 : i32 to vector<1x256xi32>
    %162 = arith.cmpi slt, %160, %161 : vector<1x256xi32>
    %163 = arith.andi %158, %162 : vector<1x256xi1>
    %cst_65 = arith.constant 0.000000e+00 : f32
    %164 = vector.shape_cast %163 : vector<1x256xi1> to vector<1x256xi1>
    %165 = vector.broadcast %164 : vector<1x256xi1> to vector<32x256xi1>
    %166 = vector.broadcast %cst_65 : f32 to vector<32x256xf32>
    %167 = arith.select %165, %144, %166 : vector<32x256xi1>, vector<32x256xf32>
    %168 = vector.extract_strided_slice %9 {offsets = [0, 16], sizes = [32, 240], strides = [1, 1]} : vector<32x256xf32> to vector<32x240xf32>
    %cst_66 = arith.constant 0.000000e+00 : f32
    %169 = vector.broadcast %cst_66 : f32 to vector<32x16xf32>
    %170 = tpu.concatenate %168, %169 in 1 : vector<32x240xf32>, vector<32x16xf32> -> vector<32x256xf32>
    %c1_i32_67 = arith.constant 1 : i32
    %171 = vector.broadcast %c1_i32_67 : i32 to vector<1x256xi32>
    %172 = arith.addi %10, %171 : vector<1x256xi32>
    %c0_i32_68 = arith.constant 0 : i32
    %173 = vector.broadcast %c0_i32_68 : i32 to vector<1x256xi32>
    %174 = arith.cmpi sge, %172, %173 : vector<1x256xi32>
    %c1_i32_69 = arith.constant 1 : i32
    %175 = vector.broadcast %c1_i32_69 : i32 to vector<1x256xi32>
    %176 = arith.addi %10, %175 : vector<1x256xi32>
    %c16_i32_70 = arith.constant 16 : i32
    %177 = vector.broadcast %c16_i32_70 : i32 to vector<1x256xi32>
    %178 = arith.cmpi slt, %176, %177 : vector<1x256xi32>
    %179 = arith.andi %174, %178 : vector<1x256xi1>
    %c0_i32_71 = arith.constant 0 : i32
    %180 = vector.broadcast %c0_i32_71 : i32 to vector<1x256xi32>
    %181 = arith.addi %11, %180 : vector<1x256xi32>
    %c0_i32_72 = arith.constant 0 : i32
    %182 = vector.broadcast %c0_i32_72 : i32 to vector<1x256xi32>
    %183 = arith.cmpi sge, %181, %182 : vector<1x256xi32>
    %184 = arith.andi %179, %183 : vector<1x256xi1>
    %c0_i32_73 = arith.constant 0 : i32
    %185 = vector.broadcast %c0_i32_73 : i32 to vector<1x256xi32>
    %186 = arith.addi %11, %185 : vector<1x256xi32>
    %c16_i32_74 = arith.constant 16 : i32
    %187 = vector.broadcast %c16_i32_74 : i32 to vector<1x256xi32>
    %188 = arith.cmpi slt, %186, %187 : vector<1x256xi32>
    %189 = arith.andi %184, %188 : vector<1x256xi1>
    %cst_75 = arith.constant 0.000000e+00 : f32
    %190 = vector.shape_cast %189 : vector<1x256xi1> to vector<1x256xi1>
    %191 = vector.broadcast %190 : vector<1x256xi1> to vector<32x256xi1>
    %192 = vector.broadcast %cst_75 : f32 to vector<32x256xf32>
    %193 = arith.select %191, %170, %192 : vector<32x256xi1>, vector<32x256xf32>
    %194 = vector.extract_strided_slice %9 {offsets = [0, 17], sizes = [32, 239], strides = [1, 1]} : vector<32x256xf32> to vector<32x239xf32>
    %cst_76 = arith.constant 0.000000e+00 : f32
    %195 = vector.broadcast %cst_76 : f32 to vector<32x17xf32>
    %196 = tpu.concatenate %194, %195 in 1 : vector<32x239xf32>, vector<32x17xf32> -> vector<32x256xf32>
    %c1_i32_77 = arith.constant 1 : i32
    %197 = vector.broadcast %c1_i32_77 : i32 to vector<1x256xi32>
    %198 = arith.addi %10, %197 : vector<1x256xi32>
    %c0_i32_78 = arith.constant 0 : i32
    %199 = vector.broadcast %c0_i32_78 : i32 to vector<1x256xi32>
    %200 = arith.cmpi sge, %198, %199 : vector<1x256xi32>
    %c1_i32_79 = arith.constant 1 : i32
    %201 = vector.broadcast %c1_i32_79 : i32 to vector<1x256xi32>
    %202 = arith.addi %10, %201 : vector<1x256xi32>
    %c16_i32_80 = arith.constant 16 : i32
    %203 = vector.broadcast %c16_i32_80 : i32 to vector<1x256xi32>
    %204 = arith.cmpi slt, %202, %203 : vector<1x256xi32>
    %205 = arith.andi %200, %204 : vector<1x256xi1>
    %c1_i32_81 = arith.constant 1 : i32
    %206 = vector.broadcast %c1_i32_81 : i32 to vector<1x256xi32>
    %207 = arith.addi %11, %206 : vector<1x256xi32>
    %c0_i32_82 = arith.constant 0 : i32
    %208 = vector.broadcast %c0_i32_82 : i32 to vector<1x256xi32>
    %209 = arith.cmpi sge, %207, %208 : vector<1x256xi32>
    %210 = arith.andi %205, %209 : vector<1x256xi1>
    %c1_i32_83 = arith.constant 1 : i32
    %211 = vector.broadcast %c1_i32_83 : i32 to vector<1x256xi32>
    %212 = arith.addi %11, %211 : vector<1x256xi32>
    %c16_i32_84 = arith.constant 16 : i32
    %213 = vector.broadcast %c16_i32_84 : i32 to vector<1x256xi32>
    %214 = arith.cmpi slt, %212, %213 : vector<1x256xi32>
    %215 = arith.andi %210, %214 : vector<1x256xi1>
    %cst_85 = arith.constant 0.000000e+00 : f32
    %216 = vector.shape_cast %215 : vector<1x256xi1> to vector<1x256xi1>
    %217 = vector.broadcast %216 : vector<1x256xi1> to vector<32x256xi1>
    %218 = vector.broadcast %cst_85 : f32 to vector<32x256xf32>
    %219 = arith.select %217, %196, %218 : vector<32x256xi1>, vector<32x256xf32>
    %220 = tpu.concatenate %37, %63, %89, %115, %9, %141, %167, %193, %219 in 0 : vector<32x256xf32>, vector<32x256xf32>, vector<32x256xf32>, vector<32x256xf32>, vector<32x256xf32>, vector<32x256xf32>, vector<32x256xf32>, vector<32x256xf32>, vector<32x256xf32> -> vector<288x256xf32>
    %c0_86 = arith.constant 0 : index
    %c0_87 = arith.constant 0 : index
    %221 = vector.load %arg6[%c0_86, %c0_87] : memref<32x288xbf16, #tpu.memory_space<vmem>>, vector<32x288xbf16>
    %222 = arith.truncf %220 : vector<288x256xf32> to vector<288x256xbf16>
    %cst_88 = arith.constant dense<0.000000e+00> : vector<32x256xf32>
    %223 = tpu.matmul %221, %222, %cst_88 {dimension_numbers = #tpu.dot_dimension_numbers<[1], [0], [0], [1], [0, 0, 1, 1], [], []>} : vector<32x288xbf16>, vector<288x256xbf16>, vector<32x256xf32> -> vector<32x256xf32>
    %c0_89 = arith.constant 0 : index
    %c0_90 = arith.constant 0 : index
    %224 = vector.load %arg7[%c0_89, %c0_90] : memref<32x1xf32, #tpu.memory_space<vmem>>, vector<32x1xf32>
    %225 = vector.broadcast %224 : vector<32x1xf32> to vector<32x256xf32>
    %226 = arith.addf %223, %225 : vector<32x256xf32>
    %c0_91 = arith.constant 0 : index
    %c0_92 = arith.constant 0 : index
    %c0_93 = arith.constant 0 : index
    %227 = vector.load %arg8[%c0_91, %c0_92, %c0_93] : memref<1x32x256xf32, #tpu.memory_space<vmem>>, vector<1x32x256xf32>
    %228 = vector.shape_cast %227 : vector<1x32x256xf32> to vector<32x256xf32>
    %229 = arith.addf %226, %228 : vector<32x256xf32>
    %cst_94 = arith.constant dense<0.000000e+00> : vector<32xf32>
    %230 = vector.multi_reduction <add>, %229, %cst_94 [1] : vector<32x256xf32> to vector<32xf32>
    %231 = vector.shape_cast %230 : vector<32xf32> to vector<32x1xf32>
    %c0_95 = arith.constant 0 : index
    %c0_96 = arith.constant 0 : index
    %c0_97 = arith.constant 0 : index
    %232 = vector.load %arg10[%c0_95, %c0_96, %c0_97] : memref<1x32x1xf32, #tpu.memory_space<vmem>>, vector<1x32x1xf32>
    %233 = vector.shape_cast %232 : vector<1x32x1xf32> to vector<32x1xf32>
    %234 = vector.shape_cast %231 : vector<32x1xf32> to vector<1x32x1xf32>
    tpu.vector_store %arg10[%c0_95, %c0_96, %c0_97], %234 {strides = array<i32>} : memref<1x32x1xf32, #tpu.memory_space<vmem>>, vector<1x32x1xf32>,
    %235 = arith.mulf %229, %229 : vector<32x256xf32>
    %cst_98 = arith.constant dense<0.000000e+00> : vector<32xf32>
    %236 = vector.multi_reduction <add>, %235, %cst_98 [1] : vector<32x256xf32> to vector<32xf32>
    %237 = vector.shape_cast %236 : vector<32xf32> to vector<32x1xf32>
    %c0_99 = arith.constant 0 : index
    %c0_100 = arith.constant 0 : index
    %c0_101 = arith.constant 0 : index
    %238 = vector.load %arg11[%c0_99, %c0_100, %c0_101] : memref<1x32x1xf32, #tpu.memory_space<vmem>>, vector<1x32x1xf32>
    %239 = vector.shape_cast %238 : vector<1x32x1xf32> to vector<32x1xf32>
    %240 = vector.shape_cast %237 : vector<32x1xf32> to vector<1x32x1xf32>
    tpu.vector_store %arg11[%c0_99, %c0_100, %c0_101], %240 {strides = array<i32>} : memref<1x32x1xf32, #tpu.memory_space<vmem>>, vector<1x32x1xf32>,
    %c0_102 = arith.constant 0 : index
    %c0_103 = arith.constant 0 : index
    %c0_104 = arith.constant 0 : index
    %241 = vector.load %arg9[%c0_102, %c0_103, %c0_104] : memref<1x32x256xf32, #tpu.memory_space<vmem>>, vector<1x32x256xf32>
    %242 = vector.shape_cast %241 : vector<1x32x256xf32> to vector<32x256xf32>
    %243 = vector.shape_cast %229 : vector<32x256xf32> to vector<1x32x256xf32>
    tpu.vector_store %arg9[%c0_102, %c0_103, %c0_104], %243 {strides = array<i32>} : memref<1x32x256xf32, #tpu.memory_space<vmem>>, vector<1x32x256xf32>,
    return
  }
  func.func @transform_0(%arg0: i32) -> (i32, i32, i32) {
    %c0_i32 = arith.constant 0 : i32
    %c0_i32_0 = arith.constant 0 : i32
    %c0_i32_1 = arith.constant 0 : i32
    return %arg0, %c0_i32, %c0_i32_0 : i32, i32, i32
  }
  func.func @transform_1(%arg0: i32) -> (i32, i32) {
    %c0_i32 = arith.constant 0 : i32
    %c0_i32_0 = arith.constant 0 : i32
    %c0_i32_1 = arith.constant 0 : i32
    return %c0_i32, %c0_i32_0 : i32, i32
  }
  func.func @transform_2(%arg0: i32) -> (i32, i32) {
    %c0_i32 = arith.constant 0 : i32
    %c0_i32_0 = arith.constant 0 : i32
    %c0_i32_1 = arith.constant 0 : i32
    return %c0_i32, %c0_i32_0 : i32, i32
  }
  func.func @transform_3(%arg0: i32) -> (i32, i32) {
    %c0_i32 = arith.constant 0 : i32
    %c0_i32_0 = arith.constant 0 : i32
    %c0_i32_1 = arith.constant 0 : i32
    return %c0_i32, %c0_i32_0 : i32, i32
  }
  func.func @transform_4(%arg0: i32) -> (i32, i32) {
    %c0_i32 = arith.constant 0 : i32
    %c0_i32_0 = arith.constant 0 : i32
    %c0_i32_1 = arith.constant 0 : i32
    return %c0_i32, %c0_i32_0 : i32, i32
  }
  func.func @transform_5(%arg0: i32) -> (i32, i32) {
    %c0_i32 = arith.constant 0 : i32
    %c0_i32_0 = arith.constant 0 : i32
    %c0_i32_1 = arith.constant 0 : i32
    return %c0_i32, %c0_i32_0 : i32, i32
  }
  func.func @transform_6(%arg0: i32) -> (i32, i32) {
    %c0_i32 = arith.constant 0 : i32
    %c0_i32_0 = arith.constant 0 : i32
    %c0_i32_1 = arith.constant 0 : i32
    return %c0_i32, %c0_i32_0 : i32, i32
  }
  func.func @transform_7(%arg0: i32) -> (i32, i32, i32) {
    %c0_i32 = arith.constant 0 : i32
    %c0_i32_0 = arith.constant 0 : i32
    %c0_i32_1 = arith.constant 0 : i32
    return %arg0, %c0_i32, %c0_i32_0 : i32, i32, i32
  }
  func.func @transform_8(%arg0: i32) -> (i32, i32, i32) {
    %c0_i32 = arith.constant 0 : i32
    %c0_i32_0 = arith.constant 0 : i32
    %c0_i32_1 = arith.constant 0 : i32
    return %arg0, %c0_i32, %c0_i32_0 : i32, i32, i32
  }
  func.func @transform_9(%arg0: i32) -> (i32, i32, i32) {
    %c0_i32 = arith.constant 0 : i32
    %c0_i32_0 = arith.constant 0 : i32
    %c0_i32_1 = arith.constant 0 : i32
    return %arg0, %c0_i32, %c0_i32_0 : i32, i32, i32
  }
  func.func @transform_10(%arg0: i32) -> (i32, i32, i32) {
    %c0_i32 = arith.constant 0 : i32
    %c0_i32_0 = arith.constant 0 : i32
    %c0_i32_1 = arith.constant 0 : i32
    return %arg0, %c0_i32, %c0_i32_0 : i32, i32, i32
  }
}

module attributes {stable_mosaic.version = 11 : i64} {
  func.func @_conv3_kernel(%arg0: i32, %arg1: memref<1x32x256xf32, #tpu.memory_space<vmem>>, %arg2: memref<32x1xf32, #tpu.memory_space<vmem>>, %arg3: memref<32x1xf32, #tpu.memory_space<vmem>>, %arg4: memref<1x256xi32, #tpu.memory_space<vmem>>, %arg5: memref<1x256xi32, #tpu.memory_space<vmem>>, %arg6: memref<32x288xbf16, #tpu.memory_space<vmem>>, %arg7: memref<32x1xf32, #tpu.memory_space<vmem>>, %arg8: memref<1x32x256xf32, #tpu.memory_space<vmem>>, %arg9: memref<1x32x1xf32, #tpu.memory_space<vmem>>, %arg10: memref<1x32x1xf32, #tpu.memory_space<vmem>>) attributes {dimension_semantics = [#tpu.dimension_semantics<parallel>], iteration_bounds = array<i64: 2>, scalar_prefetch = 0 : i64, scratch_operands = 0 : i64, tpu.core_type = #tpu.core_type<tc>, window_params = [{transform_indices = @transform_0, window_bounds = array<i64: 1, 32, 256>}, {pipeline_mode = #tpu.pipeline_mode<synchronous>, transform_indices = @transform_1, window_bounds = array<i64: 32, 1>}, {pipeline_mode = #tpu.pipeline_mode<synchronous>, transform_indices = @transform_2, window_bounds = array<i64: 32, 1>}, {pipeline_mode = #tpu.pipeline_mode<synchronous>, transform_indices = @transform_3, window_bounds = array<i64: 1, 256>}, {pipeline_mode = #tpu.pipeline_mode<synchronous>, transform_indices = @transform_4, window_bounds = array<i64: 1, 256>}, {pipeline_mode = #tpu.pipeline_mode<synchronous>, transform_indices = @transform_5, window_bounds = array<i64: 32, 288>}, {pipeline_mode = #tpu.pipeline_mode<synchronous>, transform_indices = @transform_6, window_bounds = array<i64: 32, 1>}, {transform_indices = @transform_7, window_bounds = array<i64: 1, 32, 256>}, {transform_indices = @transform_8, window_bounds = array<i64: 1, 32, 1>}, {transform_indices = @transform_9, window_bounds = array<i64: 1, 32, 1>}]} {
    %c0 = arith.constant 0 : index
    %c0_0 = arith.constant 0 : index
    %c0_1 = arith.constant 0 : index
    %0 = vector.load %arg1[%c0, %c0_0, %c0_1] : memref<1x32x256xf32, #tpu.memory_space<vmem>>, vector<1x32x256xf32>
    %1 = vector.shape_cast %0 : vector<1x32x256xf32> to vector<32x256xf32>
    %c0_2 = arith.constant 0 : index
    %c0_3 = arith.constant 0 : index
    %2 = vector.load %arg2[%c0_2, %c0_3] : memref<32x1xf32, #tpu.memory_space<vmem>>, vector<32x1xf32>
    %3 = vector.broadcast %2 : vector<32x1xf32> to vector<32x256xf32>
    %4 = arith.mulf %1, %3 : vector<32x256xf32>
    %c0_4 = arith.constant 0 : index
    %c0_5 = arith.constant 0 : index
    %5 = vector.load %arg3[%c0_4, %c0_5] : memref<32x1xf32, #tpu.memory_space<vmem>>, vector<32x1xf32>
    %6 = vector.broadcast %5 : vector<32x1xf32> to vector<32x256xf32>
    %7 = arith.addf %4, %6 : vector<32x256xf32>
    %cst = arith.constant 0.000000e+00 : f32
    %8 = vector.broadcast %cst : f32 to vector<32x256xf32>
    %9 = arith.maximumf %7, %8 : vector<32x256xf32>
    %c0_6 = arith.constant 0 : index
    %c0_7 = arith.constant 0 : index
    %10 = vector.load %arg4[%c0_6, %c0_7] : memref<1x256xi32, #tpu.memory_space<vmem>>, vector<1x256xi32>
    %c0_8 = arith.constant 0 : index
    %c0_9 = arith.constant 0 : index
    %11 = vector.load %arg5[%c0_8, %c0_9] : memref<1x256xi32, #tpu.memory_space<vmem>>, vector<1x256xi32>
    %cst_10 = arith.constant 0.000000e+00 : f32
    %12 = vector.broadcast %cst_10 : f32 to vector<32x17xf32>
    %13 = vector.extract_strided_slice %9 {offsets = [0, 0], sizes = [32, 239], strides = [1, 1]} : vector<32x256xf32> to vector<32x239xf32>
    %14 = tpu.concatenate %12, %13 in 1 : vector<32x17xf32>, vector<32x239xf32> -> vector<32x256xf32>
    %c-1_i32 = arith.constant -1 : i32
    %15 = vector.broadcast %c-1_i32 : i32 to vector<1x256xi32>
    %16 = arith.addi %10, %15 : vector<1x256xi32>
    %c0_i32 = arith.constant 0 : i32
    %17 = vector.broadcast %c0_i32 : i32 to vector<1x256xi32>
    %18 = arith.cmpi sge, %16, %17 : vector<1x256xi32>
    %c-1_i32_11 = arith.constant -1 : i32
    %19 = vector.broadcast %c-1_i32_11 : i32 to vector<1x256xi32>
    %20 = arith.addi %10, %19 : vector<1x256xi32>
    %c16_i32 = arith.constant 16 : i32
    %21 = vector.broadcast %c16_i32 : i32 to vector<1x256xi32>
    %22 = arith.cmpi slt, %20, %21 : vector<1x256xi32>
    %23 = arith.andi %18, %22 : vector<1x256xi1>
    %c-1_i32_12 = arith.constant -1 : i32
    %24 = vector.broadcast %c-1_i32_12 : i32 to vector<1x256xi32>
    %25 = arith.addi %11, %24 : vector<1x256xi32>
    %c0_i32_13 = arith.constant 0 : i32
    %26 = vector.broadcast %c0_i32_13 : i32 to vector<1x256xi32>
    %27 = arith.cmpi sge, %25, %26 : vector<1x256xi32>
    %28 = arith.andi %23, %27 : vector<1x256xi1>
    %c-1_i32_14 = arith.constant -1 : i32
    %29 = vector.broadcast %c-1_i32_14 : i32 to vector<1x256xi32>
    %30 = arith.addi %11, %29 : vector<1x256xi32>
    %c16_i32_15 = arith.constant 16 : i32
    %31 = vector.broadcast %c16_i32_15 : i32 to vector<1x256xi32>
    %32 = arith.cmpi slt, %30, %31 : vector<1x256xi32>
    %33 = arith.andi %28, %32 : vector<1x256xi1>
    %cst_16 = arith.constant 0.000000e+00 : f32
    %34 = vector.shape_cast %33 : vector<1x256xi1> to vector<1x256xi1>
    %35 = vector.broadcast %34 : vector<1x256xi1> to vector<32x256xi1>
    %36 = vector.broadcast %cst_16 : f32 to vector<32x256xf32>
    %37 = arith.select %35, %14, %36 : vector<32x256xi1>, vector<32x256xf32>
    %cst_17 = arith.constant 0.000000e+00 : f32
    %38 = vector.broadcast %cst_17 : f32 to vector<32x16xf32>
    %39 = vector.extract_strided_slice %9 {offsets = [0, 0], sizes = [32, 240], strides = [1, 1]} : vector<32x256xf32> to vector<32x240xf32>
    %40 = tpu.concatenate %38, %39 in 1 : vector<32x16xf32>, vector<32x240xf32> -> vector<32x256xf32>
    %c-1_i32_18 = arith.constant -1 : i32
    %41 = vector.broadcast %c-1_i32_18 : i32 to vector<1x256xi32>
    %42 = arith.addi %10, %41 : vector<1x256xi32>
    %c0_i32_19 = arith.constant 0 : i32
    %43 = vector.broadcast %c0_i32_19 : i32 to vector<1x256xi32>
    %44 = arith.cmpi sge, %42, %43 : vector<1x256xi32>
    %c-1_i32_20 = arith.constant -1 : i32
    %45 = vector.broadcast %c-1_i32_20 : i32 to vector<1x256xi32>
    %46 = arith.addi %10, %45 : vector<1x256xi32>
    %c16_i32_21 = arith.constant 16 : i32
    %47 = vector.broadcast %c16_i32_21 : i32 to vector<1x256xi32>
    %48 = arith.cmpi slt, %46, %47 : vector<1x256xi32>
    %49 = arith.andi %44, %48 : vector<1x256xi1>
    %c0_i32_22 = arith.constant 0 : i32
    %50 = vector.broadcast %c0_i32_22 : i32 to vector<1x256xi32>
    %51 = arith.addi %11, %50 : vector<1x256xi32>
    %c0_i32_23 = arith.constant 0 : i32
    %52 = vector.broadcast %c0_i32_23 : i32 to vector<1x256xi32>
    %53 = arith.cmpi sge, %51, %52 : vector<1x256xi32>
    %54 = arith.andi %49, %53 : vector<1x256xi1>
    %c0_i32_24 = arith.constant 0 : i32
    %55 = vector.broadcast %c0_i32_24 : i32 to vector<1x256xi32>
    %56 = arith.addi %11, %55 : vector<1x256xi32>
    %c16_i32_25 = arith.constant 16 : i32
    %57 = vector.broadcast %c16_i32_25 : i32 to vector<1x256xi32>
    %58 = arith.cmpi slt, %56, %57 : vector<1x256xi32>
    %59 = arith.andi %54, %58 : vector<1x256xi1>
    %cst_26 = arith.constant 0.000000e+00 : f32
    %60 = vector.shape_cast %59 : vector<1x256xi1> to vector<1x256xi1>
    %61 = vector.broadcast %60 : vector<1x256xi1> to vector<32x256xi1>
    %62 = vector.broadcast %cst_26 : f32 to vector<32x256xf32>
    %63 = arith.select %61, %40, %62 : vector<32x256xi1>, vector<32x256xf32>
    %cst_27 = arith.constant 0.000000e+00 : f32
    %64 = vector.broadcast %cst_27 : f32 to vector<32x15xf32>
    %65 = vector.extract_strided_slice %9 {offsets = [0, 0], sizes = [32, 241], strides = [1, 1]} : vector<32x256xf32> to vector<32x241xf32>
    %66 = tpu.concatenate %64, %65 in 1 : vector<32x15xf32>, vector<32x241xf32> -> vector<32x256xf32>
    %c-1_i32_28 = arith.constant -1 : i32
    %67 = vector.broadcast %c-1_i32_28 : i32 to vector<1x256xi32>
    %68 = arith.addi %10, %67 : vector<1x256xi32>
    %c0_i32_29 = arith.constant 0 : i32
    %69 = vector.broadcast %c0_i32_29 : i32 to vector<1x256xi32>
    %70 = arith.cmpi sge, %68, %69 : vector<1x256xi32>
    %c-1_i32_30 = arith.constant -1 : i32
    %71 = vector.broadcast %c-1_i32_30 : i32 to vector<1x256xi32>
    %72 = arith.addi %10, %71 : vector<1x256xi32>
    %c16_i32_31 = arith.constant 16 : i32
    %73 = vector.broadcast %c16_i32_31 : i32 to vector<1x256xi32>
    %74 = arith.cmpi slt, %72, %73 : vector<1x256xi32>
    %75 = arith.andi %70, %74 : vector<1x256xi1>
    %c1_i32 = arith.constant 1 : i32
    %76 = vector.broadcast %c1_i32 : i32 to vector<1x256xi32>
    %77 = arith.addi %11, %76 : vector<1x256xi32>
    %c0_i32_32 = arith.constant 0 : i32
    %78 = vector.broadcast %c0_i32_32 : i32 to vector<1x256xi32>
    %79 = arith.cmpi sge, %77, %78 : vector<1x256xi32>
    %80 = arith.andi %75, %79 : vector<1x256xi1>
    %c1_i32_33 = arith.constant 1 : i32
    %81 = vector.broadcast %c1_i32_33 : i32 to vector<1x256xi32>
    %82 = arith.addi %11, %81 : vector<1x256xi32>
    %c16_i32_34 = arith.constant 16 : i32
    %83 = vector.broadcast %c16_i32_34 : i32 to vector<1x256xi32>
    %84 = arith.cmpi slt, %82, %83 : vector<1x256xi32>
    %85 = arith.andi %80, %84 : vector<1x256xi1>
    %cst_35 = arith.constant 0.000000e+00 : f32
    %86 = vector.shape_cast %85 : vector<1x256xi1> to vector<1x256xi1>
    %87 = vector.broadcast %86 : vector<1x256xi1> to vector<32x256xi1>
    %88 = vector.broadcast %cst_35 : f32 to vector<32x256xf32>
    %89 = arith.select %87, %66, %88 : vector<32x256xi1>, vector<32x256xf32>
    %cst_36 = arith.constant 0.000000e+00 : f32
    %90 = vector.broadcast %cst_36 : f32 to vector<32x1xf32>
    %91 = vector.extract_strided_slice %9 {offsets = [0, 0], sizes = [32, 255], strides = [1, 1]} : vector<32x256xf32> to vector<32x255xf32>
    %92 = tpu.concatenate %90, %91 in 1 : vector<32x1xf32>, vector<32x255xf32> -> vector<32x256xf32>
    %c0_i32_37 = arith.constant 0 : i32
    %93 = vector.broadcast %c0_i32_37 : i32 to vector<1x256xi32>
    %94 = arith.addi %10, %93 : vector<1x256xi32>
    %c0_i32_38 = arith.constant 0 : i32
    %95 = vector.broadcast %c0_i32_38 : i32 to vector<1x256xi32>
    %96 = arith.cmpi sge, %94, %95 : vector<1x256xi32>
    %c0_i32_39 = arith.constant 0 : i32
    %97 = vector.broadcast %c0_i32_39 : i32 to vector<1x256xi32>
    %98 = arith.addi %10, %97 : vector<1x256xi32>
    %c16_i32_40 = arith.constant 16 : i32
    %99 = vector.broadcast %c16_i32_40 : i32 to vector<1x256xi32>
    %100 = arith.cmpi slt, %98, %99 : vector<1x256xi32>
    %101 = arith.andi %96, %100 : vector<1x256xi1>
    %c-1_i32_41 = arith.constant -1 : i32
    %102 = vector.broadcast %c-1_i32_41 : i32 to vector<1x256xi32>
    %103 = arith.addi %11, %102 : vector<1x256xi32>
    %c0_i32_42 = arith.constant 0 : i32
    %104 = vector.broadcast %c0_i32_42 : i32 to vector<1x256xi32>
    %105 = arith.cmpi sge, %103, %104 : vector<1x256xi32>
    %106 = arith.andi %101, %105 : vector<1x256xi1>
    %c-1_i32_43 = arith.constant -1 : i32
    %107 = vector.broadcast %c-1_i32_43 : i32 to vector<1x256xi32>
    %108 = arith.addi %11, %107 : vector<1x256xi32>
    %c16_i32_44 = arith.constant 16 : i32
    %109 = vector.broadcast %c16_i32_44 : i32 to vector<1x256xi32>
    %110 = arith.cmpi slt, %108, %109 : vector<1x256xi32>
    %111 = arith.andi %106, %110 : vector<1x256xi1>
    %cst_45 = arith.constant 0.000000e+00 : f32
    %112 = vector.shape_cast %111 : vector<1x256xi1> to vector<1x256xi1>
    %113 = vector.broadcast %112 : vector<1x256xi1> to vector<32x256xi1>
    %114 = vector.broadcast %cst_45 : f32 to vector<32x256xf32>
    %115 = arith.select %113, %92, %114 : vector<32x256xi1>, vector<32x256xf32>
    %116 = vector.extract_strided_slice %9 {offsets = [0, 1], sizes = [32, 255], strides = [1, 1]} : vector<32x256xf32> to vector<32x255xf32>
    %cst_46 = arith.constant 0.000000e+00 : f32
    %117 = vector.broadcast %cst_46 : f32 to vector<32x1xf32>
    %118 = tpu.concatenate %116, %117 in 1 : vector<32x255xf32>, vector<32x1xf32> -> vector<32x256xf32>
    %c0_i32_47 = arith.constant 0 : i32
    %119 = vector.broadcast %c0_i32_47 : i32 to vector<1x256xi32>
    %120 = arith.addi %10, %119 : vector<1x256xi32>
    %c0_i32_48 = arith.constant 0 : i32
    %121 = vector.broadcast %c0_i32_48 : i32 to vector<1x256xi32>
    %122 = arith.cmpi sge, %120, %121 : vector<1x256xi32>
    %c0_i32_49 = arith.constant 0 : i32
    %123 = vector.broadcast %c0_i32_49 : i32 to vector<1x256xi32>
    %124 = arith.addi %10, %123 : vector<1x256xi32>
    %c16_i32_50 = arith.constant 16 : i32
    %125 = vector.broadcast %c16_i32_50 : i32 to vector<1x256xi32>
    %126 = arith.cmpi slt, %124, %125 : vector<1x256xi32>
    %127 = arith.andi %122, %126 : vector<1x256xi1>
    %c1_i32_51 = arith.constant 1 : i32
    %128 = vector.broadcast %c1_i32_51 : i32 to vector<1x256xi32>
    %129 = arith.addi %11, %128 : vector<1x256xi32>
    %c0_i32_52 = arith.constant 0 : i32
    %130 = vector.broadcast %c0_i32_52 : i32 to vector<1x256xi32>
    %131 = arith.cmpi sge, %129, %130 : vector<1x256xi32>
    %132 = arith.andi %127, %131 : vector<1x256xi1>
    %c1_i32_53 = arith.constant 1 : i32
    %133 = vector.broadcast %c1_i32_53 : i32 to vector<1x256xi32>
    %134 = arith.addi %11, %133 : vector<1x256xi32>
    %c16_i32_54 = arith.constant 16 : i32
    %135 = vector.broadcast %c16_i32_54 : i32 to vector<1x256xi32>
    %136 = arith.cmpi slt, %134, %135 : vector<1x256xi32>
    %137 = arith.andi %132, %136 : vector<1x256xi1>
    %cst_55 = arith.constant 0.000000e+00 : f32
    %138 = vector.shape_cast %137 : vector<1x256xi1> to vector<1x256xi1>
    %139 = vector.broadcast %138 : vector<1x256xi1> to vector<32x256xi1>
    %140 = vector.broadcast %cst_55 : f32 to vector<32x256xf32>
    %141 = arith.select %139, %118, %140 : vector<32x256xi1>, vector<32x256xf32>
    %142 = vector.extract_strided_slice %9 {offsets = [0, 15], sizes = [32, 241], strides = [1, 1]} : vector<32x256xf32> to vector<32x241xf32>
    %cst_56 = arith.constant 0.000000e+00 : f32
    %143 = vector.broadcast %cst_56 : f32 to vector<32x15xf32>
    %144 = tpu.concatenate %142, %143 in 1 : vector<32x241xf32>, vector<32x15xf32> -> vector<32x256xf32>
    %c1_i32_57 = arith.constant 1 : i32
    %145 = vector.broadcast %c1_i32_57 : i32 to vector<1x256xi32>
    %146 = arith.addi %10, %145 : vector<1x256xi32>
    %c0_i32_58 = arith.constant 0 : i32
    %147 = vector.broadcast %c0_i32_58 : i32 to vector<1x256xi32>
    %148 = arith.cmpi sge, %146, %147 : vector<1x256xi32>
    %c1_i32_59 = arith.constant 1 : i32
    %149 = vector.broadcast %c1_i32_59 : i32 to vector<1x256xi32>
    %150 = arith.addi %10, %149 : vector<1x256xi32>
    %c16_i32_60 = arith.constant 16 : i32
    %151 = vector.broadcast %c16_i32_60 : i32 to vector<1x256xi32>
    %152 = arith.cmpi slt, %150, %151 : vector<1x256xi32>
    %153 = arith.andi %148, %152 : vector<1x256xi1>
    %c-1_i32_61 = arith.constant -1 : i32
    %154 = vector.broadcast %c-1_i32_61 : i32 to vector<1x256xi32>
    %155 = arith.addi %11, %154 : vector<1x256xi32>
    %c0_i32_62 = arith.constant 0 : i32
    %156 = vector.broadcast %c0_i32_62 : i32 to vector<1x256xi32>
    %157 = arith.cmpi sge, %155, %156 : vector<1x256xi32>
    %158 = arith.andi %153, %157 : vector<1x256xi1>
    %c-1_i32_63 = arith.constant -1 : i32
    %159 = vector.broadcast %c-1_i32_63 : i32 to vector<1x256xi32>
    %160 = arith.addi %11, %159 : vector<1x256xi32>
    %c16_i32_64 = arith.constant 16 : i32
    %161 = vector.broadcast %c16_i32_64 : i32 to vector<1x256xi32>
    %162 = arith.cmpi slt, %160, %161 : vector<1x256xi32>
    %163 = arith.andi %158, %162 : vector<1x256xi1>
    %cst_65 = arith.constant 0.000000e+00 : f32
    %164 = vector.shape_cast %163 : vector<1x256xi1> to vector<1x256xi1>
    %165 = vector.broadcast %164 : vector<1x256xi1> to vector<32x256xi1>
    %166 = vector.broadcast %cst_65 : f32 to vector<32x256xf32>
    %167 = arith.select %165, %144, %166 : vector<32x256xi1>, vector<32x256xf32>
    %168 = vector.extract_strided_slice %9 {offsets = [0, 16], sizes = [32, 240], strides = [1, 1]} : vector<32x256xf32> to vector<32x240xf32>
    %cst_66 = arith.constant 0.000000e+00 : f32
    %169 = vector.broadcast %cst_66 : f32 to vector<32x16xf32>
    %170 = tpu.concatenate %168, %169 in 1 : vector<32x240xf32>, vector<32x16xf32> -> vector<32x256xf32>
    %c1_i32_67 = arith.constant 1 : i32
    %171 = vector.broadcast %c1_i32_67 : i32 to vector<1x256xi32>
    %172 = arith.addi %10, %171 : vector<1x256xi32>
    %c0_i32_68 = arith.constant 0 : i32
    %173 = vector.broadcast %c0_i32_68 : i32 to vector<1x256xi32>
    %174 = arith.cmpi sge, %172, %173 : vector<1x256xi32>
    %c1_i32_69 = arith.constant 1 : i32
    %175 = vector.broadcast %c1_i32_69 : i32 to vector<1x256xi32>
    %176 = arith.addi %10, %175 : vector<1x256xi32>
    %c16_i32_70 = arith.constant 16 : i32
    %177 = vector.broadcast %c16_i32_70 : i32 to vector<1x256xi32>
    %178 = arith.cmpi slt, %176, %177 : vector<1x256xi32>
    %179 = arith.andi %174, %178 : vector<1x256xi1>
    %c0_i32_71 = arith.constant 0 : i32
    %180 = vector.broadcast %c0_i32_71 : i32 to vector<1x256xi32>
    %181 = arith.addi %11, %180 : vector<1x256xi32>
    %c0_i32_72 = arith.constant 0 : i32
    %182 = vector.broadcast %c0_i32_72 : i32 to vector<1x256xi32>
    %183 = arith.cmpi sge, %181, %182 : vector<1x256xi32>
    %184 = arith.andi %179, %183 : vector<1x256xi1>
    %c0_i32_73 = arith.constant 0 : i32
    %185 = vector.broadcast %c0_i32_73 : i32 to vector<1x256xi32>
    %186 = arith.addi %11, %185 : vector<1x256xi32>
    %c16_i32_74 = arith.constant 16 : i32
    %187 = vector.broadcast %c16_i32_74 : i32 to vector<1x256xi32>
    %188 = arith.cmpi slt, %186, %187 : vector<1x256xi32>
    %189 = arith.andi %184, %188 : vector<1x256xi1>
    %cst_75 = arith.constant 0.000000e+00 : f32
    %190 = vector.shape_cast %189 : vector<1x256xi1> to vector<1x256xi1>
    %191 = vector.broadcast %190 : vector<1x256xi1> to vector<32x256xi1>
    %192 = vector.broadcast %cst_75 : f32 to vector<32x256xf32>
    %193 = arith.select %191, %170, %192 : vector<32x256xi1>, vector<32x256xf32>
    %194 = vector.extract_strided_slice %9 {offsets = [0, 17], sizes = [32, 239], strides = [1, 1]} : vector<32x256xf32> to vector<32x239xf32>
    %cst_76 = arith.constant 0.000000e+00 : f32
    %195 = vector.broadcast %cst_76 : f32 to vector<32x17xf32>
    %196 = tpu.concatenate %194, %195 in 1 : vector<32x239xf32>, vector<32x17xf32> -> vector<32x256xf32>
    %c1_i32_77 = arith.constant 1 : i32
    %197 = vector.broadcast %c1_i32_77 : i32 to vector<1x256xi32>
    %198 = arith.addi %10, %197 : vector<1x256xi32>
    %c0_i32_78 = arith.constant 0 : i32
    %199 = vector.broadcast %c0_i32_78 : i32 to vector<1x256xi32>
    %200 = arith.cmpi sge, %198, %199 : vector<1x256xi32>
    %c1_i32_79 = arith.constant 1 : i32
    %201 = vector.broadcast %c1_i32_79 : i32 to vector<1x256xi32>
    %202 = arith.addi %10, %201 : vector<1x256xi32>
    %c16_i32_80 = arith.constant 16 : i32
    %203 = vector.broadcast %c16_i32_80 : i32 to vector<1x256xi32>
    %204 = arith.cmpi slt, %202, %203 : vector<1x256xi32>
    %205 = arith.andi %200, %204 : vector<1x256xi1>
    %c1_i32_81 = arith.constant 1 : i32
    %206 = vector.broadcast %c1_i32_81 : i32 to vector<1x256xi32>
    %207 = arith.addi %11, %206 : vector<1x256xi32>
    %c0_i32_82 = arith.constant 0 : i32
    %208 = vector.broadcast %c0_i32_82 : i32 to vector<1x256xi32>
    %209 = arith.cmpi sge, %207, %208 : vector<1x256xi32>
    %210 = arith.andi %205, %209 : vector<1x256xi1>
    %c1_i32_83 = arith.constant 1 : i32
    %211 = vector.broadcast %c1_i32_83 : i32 to vector<1x256xi32>
    %212 = arith.addi %11, %211 : vector<1x256xi32>
    %c16_i32_84 = arith.constant 16 : i32
    %213 = vector.broadcast %c16_i32_84 : i32 to vector<1x256xi32>
    %214 = arith.cmpi slt, %212, %213 : vector<1x256xi32>
    %215 = arith.andi %210, %214 : vector<1x256xi1>
    %cst_85 = arith.constant 0.000000e+00 : f32
    %216 = vector.shape_cast %215 : vector<1x256xi1> to vector<1x256xi1>
    %217 = vector.broadcast %216 : vector<1x256xi1> to vector<32x256xi1>
    %218 = vector.broadcast %cst_85 : f32 to vector<32x256xf32>
    %219 = arith.select %217, %196, %218 : vector<32x256xi1>, vector<32x256xf32>
    %220 = tpu.concatenate %37, %63, %89, %115, %9, %141, %167, %193, %219 in 0 : vector<32x256xf32>, vector<32x256xf32>, vector<32x256xf32>, vector<32x256xf32>, vector<32x256xf32>, vector<32x256xf32>, vector<32x256xf32>, vector<32x256xf32>, vector<32x256xf32> -> vector<288x256xf32>
    %c0_86 = arith.constant 0 : index
    %c0_87 = arith.constant 0 : index
    %221 = vector.load %arg6[%c0_86, %c0_87] : memref<32x288xbf16, #tpu.memory_space<vmem>>, vector<32x288xbf16>
    %222 = arith.truncf %220 : vector<288x256xf32> to vector<288x256xbf16>
    %cst_88 = arith.constant dense<0.000000e+00> : vector<32x256xf32>
    %223 = tpu.matmul %221, %222, %cst_88 {dimension_numbers = #tpu.dot_dimension_numbers<[1], [0], [0], [1], [0, 0, 1, 1], [], []>} : vector<32x288xbf16>, vector<288x256xbf16>, vector<32x256xf32> -> vector<32x256xf32>
    %c0_89 = arith.constant 0 : index
    %c0_90 = arith.constant 0 : index
    %224 = vector.load %arg7[%c0_89, %c0_90] : memref<32x1xf32, #tpu.memory_space<vmem>>, vector<32x1xf32>
    %225 = vector.broadcast %224 : vector<32x1xf32> to vector<32x256xf32>
    %226 = arith.addf %223, %225 : vector<32x256xf32>
    %cst_91 = arith.constant dense<0.000000e+00> : vector<32xf32>
    %227 = vector.multi_reduction <add>, %226, %cst_91 [1] : vector<32x256xf32> to vector<32xf32>
    %228 = vector.shape_cast %227 : vector<32xf32> to vector<32x1xf32>
    %c0_92 = arith.constant 0 : index
    %c0_93 = arith.constant 0 : index
    %c0_94 = arith.constant 0 : index
    %229 = vector.load %arg9[%c0_92, %c0_93, %c0_94] : memref<1x32x1xf32, #tpu.memory_space<vmem>>, vector<1x32x1xf32>
    %230 = vector.shape_cast %229 : vector<1x32x1xf32> to vector<32x1xf32>
    %231 = vector.shape_cast %228 : vector<32x1xf32> to vector<1x32x1xf32>
    tpu.vector_store %arg9[%c0_92, %c0_93, %c0_94], %231 {strides = array<i32>} : memref<1x32x1xf32, #tpu.memory_space<vmem>>, vector<1x32x1xf32>,
    %232 = arith.mulf %226, %226 : vector<32x256xf32>
    %cst_95 = arith.constant dense<0.000000e+00> : vector<32xf32>
    %233 = vector.multi_reduction <add>, %232, %cst_95 [1] : vector<32x256xf32> to vector<32xf32>
    %234 = vector.shape_cast %233 : vector<32xf32> to vector<32x1xf32>
    %c0_96 = arith.constant 0 : index
    %c0_97 = arith.constant 0 : index
    %c0_98 = arith.constant 0 : index
    %235 = vector.load %arg10[%c0_96, %c0_97, %c0_98] : memref<1x32x1xf32, #tpu.memory_space<vmem>>, vector<1x32x1xf32>
    %236 = vector.shape_cast %235 : vector<1x32x1xf32> to vector<32x1xf32>
    %237 = vector.shape_cast %234 : vector<32x1xf32> to vector<1x32x1xf32>
    tpu.vector_store %arg10[%c0_96, %c0_97, %c0_98], %237 {strides = array<i32>} : memref<1x32x1xf32, #tpu.memory_space<vmem>>, vector<1x32x1xf32>,
    %c0_99 = arith.constant 0 : index
    %c0_100 = arith.constant 0 : index
    %c0_101 = arith.constant 0 : index
    %238 = vector.load %arg8[%c0_99, %c0_100, %c0_101] : memref<1x32x256xf32, #tpu.memory_space<vmem>>, vector<1x32x256xf32>
    %239 = vector.shape_cast %238 : vector<1x32x256xf32> to vector<32x256xf32>
    %240 = vector.shape_cast %226 : vector<32x256xf32> to vector<1x32x256xf32>
    tpu.vector_store %arg8[%c0_99, %c0_100, %c0_101], %240 {strides = array<i32>} : memref<1x32x256xf32, #tpu.memory_space<vmem>>, vector<1x32x256xf32>,
    return
  }
  func.func @transform_0(%arg0: i32) -> (i32, i32, i32) {
    %c0_i32 = arith.constant 0 : i32
    %c0_i32_0 = arith.constant 0 : i32
    %c0_i32_1 = arith.constant 0 : i32
    return %arg0, %c0_i32, %c0_i32_0 : i32, i32, i32
  }
  func.func @transform_1(%arg0: i32) -> (i32, i32) {
    %c0_i32 = arith.constant 0 : i32
    %c0_i32_0 = arith.constant 0 : i32
    %c0_i32_1 = arith.constant 0 : i32
    return %c0_i32, %c0_i32_0 : i32, i32
  }
  func.func @transform_2(%arg0: i32) -> (i32, i32) {
    %c0_i32 = arith.constant 0 : i32
    %c0_i32_0 = arith.constant 0 : i32
    %c0_i32_1 = arith.constant 0 : i32
    return %c0_i32, %c0_i32_0 : i32, i32
  }
  func.func @transform_3(%arg0: i32) -> (i32, i32) {
    %c0_i32 = arith.constant 0 : i32
    %c0_i32_0 = arith.constant 0 : i32
    %c0_i32_1 = arith.constant 0 : i32
    return %c0_i32, %c0_i32_0 : i32, i32
  }
  func.func @transform_4(%arg0: i32) -> (i32, i32) {
    %c0_i32 = arith.constant 0 : i32
    %c0_i32_0 = arith.constant 0 : i32
    %c0_i32_1 = arith.constant 0 : i32
    return %c0_i32, %c0_i32_0 : i32, i32
  }
  func.func @transform_5(%arg0: i32) -> (i32, i32) {
    %c0_i32 = arith.constant 0 : i32
    %c0_i32_0 = arith.constant 0 : i32
    %c0_i32_1 = arith.constant 0 : i32
    return %c0_i32, %c0_i32_0 : i32, i32
  }
  func.func @transform_6(%arg0: i32) -> (i32, i32) {
    %c0_i32 = arith.constant 0 : i32
    %c0_i32_0 = arith.constant 0 : i32
    %c0_i32_1 = arith.constant 0 : i32
    return %c0_i32, %c0_i32_0 : i32, i32
  }
  func.func @transform_7(%arg0: i32) -> (i32, i32, i32) {
    %c0_i32 = arith.constant 0 : i32
    %c0_i32_0 = arith.constant 0 : i32
    %c0_i32_1 = arith.constant 0 : i32
    return %arg0, %c0_i32, %c0_i32_0 : i32, i32, i32
  }
  func.func @transform_8(%arg0: i32) -> (i32, i32, i32) {
    %c0_i32 = arith.constant 0 : i32
    %c0_i32_0 = arith.constant 0 : i32
    %c0_i32_1 = arith.constant 0 : i32
    return %arg0, %c0_i32, %c0_i32_0 : i32, i32, i32
  }
  func.func @transform_9(%arg0: i32) -> (i32, i32, i32) {
    %c0_i32 = arith.constant 0 : i32
    %c0_i32_0 = arith.constant 0 : i32
    %c0_i32_1 = arith.constant 0 : i32
    return %arg0, %c0_i32, %c0_i32_0 : i32, i32, i32
  }
}

module attributes {stable_mosaic.version = 11 : i64} {
  func.func @_conv3_kernel(%arg0: i32, %arg1: memref<1x32x256xf32, #tpu.memory_space<vmem>>, %arg2: memref<32x1xf32, #tpu.memory_space<vmem>>, %arg3: memref<32x1xf32, #tpu.memory_space<vmem>>, %arg4: memref<1x256xi32, #tpu.memory_space<vmem>>, %arg5: memref<1x256xi32, #tpu.memory_space<vmem>>, %arg6: memref<32x288xbf16, #tpu.memory_space<vmem>>, %arg7: memref<32x1xf32, #tpu.memory_space<vmem>>, %arg8: memref<1x32x256xf32, #tpu.memory_space<vmem>>, %arg9: memref<1x32x256xf32, #tpu.memory_space<vmem>>) attributes {dimension_semantics = [#tpu.dimension_semantics<parallel>], iteration_bounds = array<i64: 2>, scalar_prefetch = 0 : i64, scratch_operands = 0 : i64, tpu.core_type = #tpu.core_type<tc>, window_params = [{transform_indices = @transform_0, window_bounds = array<i64: 1, 32, 256>}, {pipeline_mode = #tpu.pipeline_mode<synchronous>, transform_indices = @transform_1, window_bounds = array<i64: 32, 1>}, {pipeline_mode = #tpu.pipeline_mode<synchronous>, transform_indices = @transform_2, window_bounds = array<i64: 32, 1>}, {pipeline_mode = #tpu.pipeline_mode<synchronous>, transform_indices = @transform_3, window_bounds = array<i64: 1, 256>}, {pipeline_mode = #tpu.pipeline_mode<synchronous>, transform_indices = @transform_4, window_bounds = array<i64: 1, 256>}, {pipeline_mode = #tpu.pipeline_mode<synchronous>, transform_indices = @transform_5, window_bounds = array<i64: 32, 288>}, {pipeline_mode = #tpu.pipeline_mode<synchronous>, transform_indices = @transform_6, window_bounds = array<i64: 32, 1>}, {transform_indices = @transform_7, window_bounds = array<i64: 1, 32, 256>}, {transform_indices = @transform_8, window_bounds = array<i64: 1, 32, 256>}]} {
    %c0 = arith.constant 0 : index
    %c0_0 = arith.constant 0 : index
    %c0_1 = arith.constant 0 : index
    %0 = vector.load %arg1[%c0, %c0_0, %c0_1] : memref<1x32x256xf32, #tpu.memory_space<vmem>>, vector<1x32x256xf32>
    %1 = vector.shape_cast %0 : vector<1x32x256xf32> to vector<32x256xf32>
    %c0_2 = arith.constant 0 : index
    %c0_3 = arith.constant 0 : index
    %2 = vector.load %arg2[%c0_2, %c0_3] : memref<32x1xf32, #tpu.memory_space<vmem>>, vector<32x1xf32>
    %3 = vector.broadcast %2 : vector<32x1xf32> to vector<32x256xf32>
    %4 = arith.mulf %1, %3 : vector<32x256xf32>
    %c0_4 = arith.constant 0 : index
    %c0_5 = arith.constant 0 : index
    %5 = vector.load %arg3[%c0_4, %c0_5] : memref<32x1xf32, #tpu.memory_space<vmem>>, vector<32x1xf32>
    %6 = vector.broadcast %5 : vector<32x1xf32> to vector<32x256xf32>
    %7 = arith.addf %4, %6 : vector<32x256xf32>
    %cst = arith.constant 0.000000e+00 : f32
    %8 = vector.broadcast %cst : f32 to vector<32x256xf32>
    %9 = arith.maximumf %7, %8 : vector<32x256xf32>
    %c0_6 = arith.constant 0 : index
    %c0_7 = arith.constant 0 : index
    %10 = vector.load %arg4[%c0_6, %c0_7] : memref<1x256xi32, #tpu.memory_space<vmem>>, vector<1x256xi32>
    %c0_8 = arith.constant 0 : index
    %c0_9 = arith.constant 0 : index
    %11 = vector.load %arg5[%c0_8, %c0_9] : memref<1x256xi32, #tpu.memory_space<vmem>>, vector<1x256xi32>
    %cst_10 = arith.constant 0.000000e+00 : f32
    %12 = vector.broadcast %cst_10 : f32 to vector<32x17xf32>
    %13 = vector.extract_strided_slice %9 {offsets = [0, 0], sizes = [32, 239], strides = [1, 1]} : vector<32x256xf32> to vector<32x239xf32>
    %14 = tpu.concatenate %12, %13 in 1 : vector<32x17xf32>, vector<32x239xf32> -> vector<32x256xf32>
    %c-1_i32 = arith.constant -1 : i32
    %15 = vector.broadcast %c-1_i32 : i32 to vector<1x256xi32>
    %16 = arith.addi %10, %15 : vector<1x256xi32>
    %c0_i32 = arith.constant 0 : i32
    %17 = vector.broadcast %c0_i32 : i32 to vector<1x256xi32>
    %18 = arith.cmpi sge, %16, %17 : vector<1x256xi32>
    %c-1_i32_11 = arith.constant -1 : i32
    %19 = vector.broadcast %c-1_i32_11 : i32 to vector<1x256xi32>
    %20 = arith.addi %10, %19 : vector<1x256xi32>
    %c16_i32 = arith.constant 16 : i32
    %21 = vector.broadcast %c16_i32 : i32 to vector<1x256xi32>
    %22 = arith.cmpi slt, %20, %21 : vector<1x256xi32>
    %23 = arith.andi %18, %22 : vector<1x256xi1>
    %c-1_i32_12 = arith.constant -1 : i32
    %24 = vector.broadcast %c-1_i32_12 : i32 to vector<1x256xi32>
    %25 = arith.addi %11, %24 : vector<1x256xi32>
    %c0_i32_13 = arith.constant 0 : i32
    %26 = vector.broadcast %c0_i32_13 : i32 to vector<1x256xi32>
    %27 = arith.cmpi sge, %25, %26 : vector<1x256xi32>
    %28 = arith.andi %23, %27 : vector<1x256xi1>
    %c-1_i32_14 = arith.constant -1 : i32
    %29 = vector.broadcast %c-1_i32_14 : i32 to vector<1x256xi32>
    %30 = arith.addi %11, %29 : vector<1x256xi32>
    %c16_i32_15 = arith.constant 16 : i32
    %31 = vector.broadcast %c16_i32_15 : i32 to vector<1x256xi32>
    %32 = arith.cmpi slt, %30, %31 : vector<1x256xi32>
    %33 = arith.andi %28, %32 : vector<1x256xi1>
    %cst_16 = arith.constant 0.000000e+00 : f32
    %34 = vector.shape_cast %33 : vector<1x256xi1> to vector<1x256xi1>
    %35 = vector.broadcast %34 : vector<1x256xi1> to vector<32x256xi1>
    %36 = vector.broadcast %cst_16 : f32 to vector<32x256xf32>
    %37 = arith.select %35, %14, %36 : vector<32x256xi1>, vector<32x256xf32>
    %cst_17 = arith.constant 0.000000e+00 : f32
    %38 = vector.broadcast %cst_17 : f32 to vector<32x16xf32>
    %39 = vector.extract_strided_slice %9 {offsets = [0, 0], sizes = [32, 240], strides = [1, 1]} : vector<32x256xf32> to vector<32x240xf32>
    %40 = tpu.concatenate %38, %39 in 1 : vector<32x16xf32>, vector<32x240xf32> -> vector<32x256xf32>
    %c-1_i32_18 = arith.constant -1 : i32
    %41 = vector.broadcast %c-1_i32_18 : i32 to vector<1x256xi32>
    %42 = arith.addi %10, %41 : vector<1x256xi32>
    %c0_i32_19 = arith.constant 0 : i32
    %43 = vector.broadcast %c0_i32_19 : i32 to vector<1x256xi32>
    %44 = arith.cmpi sge, %42, %43 : vector<1x256xi32>
    %c-1_i32_20 = arith.constant -1 : i32
    %45 = vector.broadcast %c-1_i32_20 : i32 to vector<1x256xi32>
    %46 = arith.addi %10, %45 : vector<1x256xi32>
    %c16_i32_21 = arith.constant 16 : i32
    %47 = vector.broadcast %c16_i32_21 : i32 to vector<1x256xi32>
    %48 = arith.cmpi slt, %46, %47 : vector<1x256xi32>
    %49 = arith.andi %44, %48 : vector<1x256xi1>
    %c0_i32_22 = arith.constant 0 : i32
    %50 = vector.broadcast %c0_i32_22 : i32 to vector<1x256xi32>
    %51 = arith.addi %11, %50 : vector<1x256xi32>
    %c0_i32_23 = arith.constant 0 : i32
    %52 = vector.broadcast %c0_i32_23 : i32 to vector<1x256xi32>
    %53 = arith.cmpi sge, %51, %52 : vector<1x256xi32>
    %54 = arith.andi %49, %53 : vector<1x256xi1>
    %c0_i32_24 = arith.constant 0 : i32
    %55 = vector.broadcast %c0_i32_24 : i32 to vector<1x256xi32>
    %56 = arith.addi %11, %55 : vector<1x256xi32>
    %c16_i32_25 = arith.constant 16 : i32
    %57 = vector.broadcast %c16_i32_25 : i32 to vector<1x256xi32>
    %58 = arith.cmpi slt, %56, %57 : vector<1x256xi32>
    %59 = arith.andi %54, %58 : vector<1x256xi1>
    %cst_26 = arith.constant 0.000000e+00 : f32
    %60 = vector.shape_cast %59 : vector<1x256xi1> to vector<1x256xi1>
    %61 = vector.broadcast %60 : vector<1x256xi1> to vector<32x256xi1>
    %62 = vector.broadcast %cst_26 : f32 to vector<32x256xf32>
    %63 = arith.select %61, %40, %62 : vector<32x256xi1>, vector<32x256xf32>
    %cst_27 = arith.constant 0.000000e+00 : f32
    %64 = vector.broadcast %cst_27 : f32 to vector<32x15xf32>
    %65 = vector.extract_strided_slice %9 {offsets = [0, 0], sizes = [32, 241], strides = [1, 1]} : vector<32x256xf32> to vector<32x241xf32>
    %66 = tpu.concatenate %64, %65 in 1 : vector<32x15xf32>, vector<32x241xf32> -> vector<32x256xf32>
    %c-1_i32_28 = arith.constant -1 : i32
    %67 = vector.broadcast %c-1_i32_28 : i32 to vector<1x256xi32>
    %68 = arith.addi %10, %67 : vector<1x256xi32>
    %c0_i32_29 = arith.constant 0 : i32
    %69 = vector.broadcast %c0_i32_29 : i32 to vector<1x256xi32>
    %70 = arith.cmpi sge, %68, %69 : vector<1x256xi32>
    %c-1_i32_30 = arith.constant -1 : i32
    %71 = vector.broadcast %c-1_i32_30 : i32 to vector<1x256xi32>
    %72 = arith.addi %10, %71 : vector<1x256xi32>
    %c16_i32_31 = arith.constant 16 : i32
    %73 = vector.broadcast %c16_i32_31 : i32 to vector<1x256xi32>
    %74 = arith.cmpi slt, %72, %73 : vector<1x256xi32>
    %75 = arith.andi %70, %74 : vector<1x256xi1>
    %c1_i32 = arith.constant 1 : i32
    %76 = vector.broadcast %c1_i32 : i32 to vector<1x256xi32>
    %77 = arith.addi %11, %76 : vector<1x256xi32>
    %c0_i32_32 = arith.constant 0 : i32
    %78 = vector.broadcast %c0_i32_32 : i32 to vector<1x256xi32>
    %79 = arith.cmpi sge, %77, %78 : vector<1x256xi32>
    %80 = arith.andi %75, %79 : vector<1x256xi1>
    %c1_i32_33 = arith.constant 1 : i32
    %81 = vector.broadcast %c1_i32_33 : i32 to vector<1x256xi32>
    %82 = arith.addi %11, %81 : vector<1x256xi32>
    %c16_i32_34 = arith.constant 16 : i32
    %83 = vector.broadcast %c16_i32_34 : i32 to vector<1x256xi32>
    %84 = arith.cmpi slt, %82, %83 : vector<1x256xi32>
    %85 = arith.andi %80, %84 : vector<1x256xi1>
    %cst_35 = arith.constant 0.000000e+00 : f32
    %86 = vector.shape_cast %85 : vector<1x256xi1> to vector<1x256xi1>
    %87 = vector.broadcast %86 : vector<1x256xi1> to vector<32x256xi1>
    %88 = vector.broadcast %cst_35 : f32 to vector<32x256xf32>
    %89 = arith.select %87, %66, %88 : vector<32x256xi1>, vector<32x256xf32>
    %cst_36 = arith.constant 0.000000e+00 : f32
    %90 = vector.broadcast %cst_36 : f32 to vector<32x1xf32>
    %91 = vector.extract_strided_slice %9 {offsets = [0, 0], sizes = [32, 255], strides = [1, 1]} : vector<32x256xf32> to vector<32x255xf32>
    %92 = tpu.concatenate %90, %91 in 1 : vector<32x1xf32>, vector<32x255xf32> -> vector<32x256xf32>
    %c0_i32_37 = arith.constant 0 : i32
    %93 = vector.broadcast %c0_i32_37 : i32 to vector<1x256xi32>
    %94 = arith.addi %10, %93 : vector<1x256xi32>
    %c0_i32_38 = arith.constant 0 : i32
    %95 = vector.broadcast %c0_i32_38 : i32 to vector<1x256xi32>
    %96 = arith.cmpi sge, %94, %95 : vector<1x256xi32>
    %c0_i32_39 = arith.constant 0 : i32
    %97 = vector.broadcast %c0_i32_39 : i32 to vector<1x256xi32>
    %98 = arith.addi %10, %97 : vector<1x256xi32>
    %c16_i32_40 = arith.constant 16 : i32
    %99 = vector.broadcast %c16_i32_40 : i32 to vector<1x256xi32>
    %100 = arith.cmpi slt, %98, %99 : vector<1x256xi32>
    %101 = arith.andi %96, %100 : vector<1x256xi1>
    %c-1_i32_41 = arith.constant -1 : i32
    %102 = vector.broadcast %c-1_i32_41 : i32 to vector<1x256xi32>
    %103 = arith.addi %11, %102 : vector<1x256xi32>
    %c0_i32_42 = arith.constant 0 : i32
    %104 = vector.broadcast %c0_i32_42 : i32 to vector<1x256xi32>
    %105 = arith.cmpi sge, %103, %104 : vector<1x256xi32>
    %106 = arith.andi %101, %105 : vector<1x256xi1>
    %c-1_i32_43 = arith.constant -1 : i32
    %107 = vector.broadcast %c-1_i32_43 : i32 to vector<1x256xi32>
    %108 = arith.addi %11, %107 : vector<1x256xi32>
    %c16_i32_44 = arith.constant 16 : i32
    %109 = vector.broadcast %c16_i32_44 : i32 to vector<1x256xi32>
    %110 = arith.cmpi slt, %108, %109 : vector<1x256xi32>
    %111 = arith.andi %106, %110 : vector<1x256xi1>
    %cst_45 = arith.constant 0.000000e+00 : f32
    %112 = vector.shape_cast %111 : vector<1x256xi1> to vector<1x256xi1>
    %113 = vector.broadcast %112 : vector<1x256xi1> to vector<32x256xi1>
    %114 = vector.broadcast %cst_45 : f32 to vector<32x256xf32>
    %115 = arith.select %113, %92, %114 : vector<32x256xi1>, vector<32x256xf32>
    %116 = vector.extract_strided_slice %9 {offsets = [0, 1], sizes = [32, 255], strides = [1, 1]} : vector<32x256xf32> to vector<32x255xf32>
    %cst_46 = arith.constant 0.000000e+00 : f32
    %117 = vector.broadcast %cst_46 : f32 to vector<32x1xf32>
    %118 = tpu.concatenate %116, %117 in 1 : vector<32x255xf32>, vector<32x1xf32> -> vector<32x256xf32>
    %c0_i32_47 = arith.constant 0 : i32
    %119 = vector.broadcast %c0_i32_47 : i32 to vector<1x256xi32>
    %120 = arith.addi %10, %119 : vector<1x256xi32>
    %c0_i32_48 = arith.constant 0 : i32
    %121 = vector.broadcast %c0_i32_48 : i32 to vector<1x256xi32>
    %122 = arith.cmpi sge, %120, %121 : vector<1x256xi32>
    %c0_i32_49 = arith.constant 0 : i32
    %123 = vector.broadcast %c0_i32_49 : i32 to vector<1x256xi32>
    %124 = arith.addi %10, %123 : vector<1x256xi32>
    %c16_i32_50 = arith.constant 16 : i32
    %125 = vector.broadcast %c16_i32_50 : i32 to vector<1x256xi32>
    %126 = arith.cmpi slt, %124, %125 : vector<1x256xi32>
    %127 = arith.andi %122, %126 : vector<1x256xi1>
    %c1_i32_51 = arith.constant 1 : i32
    %128 = vector.broadcast %c1_i32_51 : i32 to vector<1x256xi32>
    %129 = arith.addi %11, %128 : vector<1x256xi32>
    %c0_i32_52 = arith.constant 0 : i32
    %130 = vector.broadcast %c0_i32_52 : i32 to vector<1x256xi32>
    %131 = arith.cmpi sge, %129, %130 : vector<1x256xi32>
    %132 = arith.andi %127, %131 : vector<1x256xi1>
    %c1_i32_53 = arith.constant 1 : i32
    %133 = vector.broadcast %c1_i32_53 : i32 to vector<1x256xi32>
    %134 = arith.addi %11, %133 : vector<1x256xi32>
    %c16_i32_54 = arith.constant 16 : i32
    %135 = vector.broadcast %c16_i32_54 : i32 to vector<1x256xi32>
    %136 = arith.cmpi slt, %134, %135 : vector<1x256xi32>
    %137 = arith.andi %132, %136 : vector<1x256xi1>
    %cst_55 = arith.constant 0.000000e+00 : f32
    %138 = vector.shape_cast %137 : vector<1x256xi1> to vector<1x256xi1>
    %139 = vector.broadcast %138 : vector<1x256xi1> to vector<32x256xi1>
    %140 = vector.broadcast %cst_55 : f32 to vector<32x256xf32>
    %141 = arith.select %139, %118, %140 : vector<32x256xi1>, vector<32x256xf32>
    %142 = vector.extract_strided_slice %9 {offsets = [0, 15], sizes = [32, 241], strides = [1, 1]} : vector<32x256xf32> to vector<32x241xf32>
    %cst_56 = arith.constant 0.000000e+00 : f32
    %143 = vector.broadcast %cst_56 : f32 to vector<32x15xf32>
    %144 = tpu.concatenate %142, %143 in 1 : vector<32x241xf32>, vector<32x15xf32> -> vector<32x256xf32>
    %c1_i32_57 = arith.constant 1 : i32
    %145 = vector.broadcast %c1_i32_57 : i32 to vector<1x256xi32>
    %146 = arith.addi %10, %145 : vector<1x256xi32>
    %c0_i32_58 = arith.constant 0 : i32
    %147 = vector.broadcast %c0_i32_58 : i32 to vector<1x256xi32>
    %148 = arith.cmpi sge, %146, %147 : vector<1x256xi32>
    %c1_i32_59 = arith.constant 1 : i32
    %149 = vector.broadcast %c1_i32_59 : i32 to vector<1x256xi32>
    %150 = arith.addi %10, %149 : vector<1x256xi32>
    %c16_i32_60 = arith.constant 16 : i32
    %151 = vector.broadcast %c16_i32_60 : i32 to vector<1x256xi32>
    %152 = arith.cmpi slt, %150, %151 : vector<1x256xi32>
    %153 = arith.andi %148, %152 : vector<1x256xi1>
    %c-1_i32_61 = arith.constant -1 : i32
    %154 = vector.broadcast %c-1_i32_61 : i32 to vector<1x256xi32>
    %155 = arith.addi %11, %154 : vector<1x256xi32>
    %c0_i32_62 = arith.constant 0 : i32
    %156 = vector.broadcast %c0_i32_62 : i32 to vector<1x256xi32>
    %157 = arith.cmpi sge, %155, %156 : vector<1x256xi32>
    %158 = arith.andi %153, %157 : vector<1x256xi1>
    %c-1_i32_63 = arith.constant -1 : i32
    %159 = vector.broadcast %c-1_i32_63 : i32 to vector<1x256xi32>
    %160 = arith.addi %11, %159 : vector<1x256xi32>
    %c16_i32_64 = arith.constant 16 : i32
    %161 = vector.broadcast %c16_i32_64 : i32 to vector<1x256xi32>
    %162 = arith.cmpi slt, %160, %161 : vector<1x256xi32>
    %163 = arith.andi %158, %162 : vector<1x256xi1>
    %cst_65 = arith.constant 0.000000e+00 : f32
    %164 = vector.shape_cast %163 : vector<1x256xi1> to vector<1x256xi1>
    %165 = vector.broadcast %164 : vector<1x256xi1> to vector<32x256xi1>
    %166 = vector.broadcast %cst_65 : f32 to vector<32x256xf32>
    %167 = arith.select %165, %144, %166 : vector<32x256xi1>, vector<32x256xf32>
    %168 = vector.extract_strided_slice %9 {offsets = [0, 16], sizes = [32, 240], strides = [1, 1]} : vector<32x256xf32> to vector<32x240xf32>
    %cst_66 = arith.constant 0.000000e+00 : f32
    %169 = vector.broadcast %cst_66 : f32 to vector<32x16xf32>
    %170 = tpu.concatenate %168, %169 in 1 : vector<32x240xf32>, vector<32x16xf32> -> vector<32x256xf32>
    %c1_i32_67 = arith.constant 1 : i32
    %171 = vector.broadcast %c1_i32_67 : i32 to vector<1x256xi32>
    %172 = arith.addi %10, %171 : vector<1x256xi32>
    %c0_i32_68 = arith.constant 0 : i32
    %173 = vector.broadcast %c0_i32_68 : i32 to vector<1x256xi32>
    %174 = arith.cmpi sge, %172, %173 : vector<1x256xi32>
    %c1_i32_69 = arith.constant 1 : i32
    %175 = vector.broadcast %c1_i32_69 : i32 to vector<1x256xi32>
    %176 = arith.addi %10, %175 : vector<1x256xi32>
    %c16_i32_70 = arith.constant 16 : i32
    %177 = vector.broadcast %c16_i32_70 : i32 to vector<1x256xi32>
    %178 = arith.cmpi slt, %176, %177 : vector<1x256xi32>
    %179 = arith.andi %174, %178 : vector<1x256xi1>
    %c0_i32_71 = arith.constant 0 : i32
    %180 = vector.broadcast %c0_i32_71 : i32 to vector<1x256xi32>
    %181 = arith.addi %11, %180 : vector<1x256xi32>
    %c0_i32_72 = arith.constant 0 : i32
    %182 = vector.broadcast %c0_i32_72 : i32 to vector<1x256xi32>
    %183 = arith.cmpi sge, %181, %182 : vector<1x256xi32>
    %184 = arith.andi %179, %183 : vector<1x256xi1>
    %c0_i32_73 = arith.constant 0 : i32
    %185 = vector.broadcast %c0_i32_73 : i32 to vector<1x256xi32>
    %186 = arith.addi %11, %185 : vector<1x256xi32>
    %c16_i32_74 = arith.constant 16 : i32
    %187 = vector.broadcast %c16_i32_74 : i32 to vector<1x256xi32>
    %188 = arith.cmpi slt, %186, %187 : vector<1x256xi32>
    %189 = arith.andi %184, %188 : vector<1x256xi1>
    %cst_75 = arith.constant 0.000000e+00 : f32
    %190 = vector.shape_cast %189 : vector<1x256xi1> to vector<1x256xi1>
    %191 = vector.broadcast %190 : vector<1x256xi1> to vector<32x256xi1>
    %192 = vector.broadcast %cst_75 : f32 to vector<32x256xf32>
    %193 = arith.select %191, %170, %192 : vector<32x256xi1>, vector<32x256xf32>
    %194 = vector.extract_strided_slice %9 {offsets = [0, 17], sizes = [32, 239], strides = [1, 1]} : vector<32x256xf32> to vector<32x239xf32>
    %cst_76 = arith.constant 0.000000e+00 : f32
    %195 = vector.broadcast %cst_76 : f32 to vector<32x17xf32>
    %196 = tpu.concatenate %194, %195 in 1 : vector<32x239xf32>, vector<32x17xf32> -> vector<32x256xf32>
    %c1_i32_77 = arith.constant 1 : i32
    %197 = vector.broadcast %c1_i32_77 : i32 to vector<1x256xi32>
    %198 = arith.addi %10, %197 : vector<1x256xi32>
    %c0_i32_78 = arith.constant 0 : i32
    %199 = vector.broadcast %c0_i32_78 : i32 to vector<1x256xi32>
    %200 = arith.cmpi sge, %198, %199 : vector<1x256xi32>
    %c1_i32_79 = arith.constant 1 : i32
    %201 = vector.broadcast %c1_i32_79 : i32 to vector<1x256xi32>
    %202 = arith.addi %10, %201 : vector<1x256xi32>
    %c16_i32_80 = arith.constant 16 : i32
    %203 = vector.broadcast %c16_i32_80 : i32 to vector<1x256xi32>
    %204 = arith.cmpi slt, %202, %203 : vector<1x256xi32>
    %205 = arith.andi %200, %204 : vector<1x256xi1>
    %c1_i32_81 = arith.constant 1 : i32
    %206 = vector.broadcast %c1_i32_81 : i32 to vector<1x256xi32>
    %207 = arith.addi %11, %206 : vector<1x256xi32>
    %c0_i32_82 = arith.constant 0 : i32
    %208 = vector.broadcast %c0_i32_82 : i32 to vector<1x256xi32>
    %209 = arith.cmpi sge, %207, %208 : vector<1x256xi32>
    %210 = arith.andi %205, %209 : vector<1x256xi1>
    %c1_i32_83 = arith.constant 1 : i32
    %211 = vector.broadcast %c1_i32_83 : i32 to vector<1x256xi32>
    %212 = arith.addi %11, %211 : vector<1x256xi32>
    %c16_i32_84 = arith.constant 16 : i32
    %213 = vector.broadcast %c16_i32_84 : i32 to vector<1x256xi32>
    %214 = arith.cmpi slt, %212, %213 : vector<1x256xi32>
    %215 = arith.andi %210, %214 : vector<1x256xi1>
    %cst_85 = arith.constant 0.000000e+00 : f32
    %216 = vector.shape_cast %215 : vector<1x256xi1> to vector<1x256xi1>
    %217 = vector.broadcast %216 : vector<1x256xi1> to vector<32x256xi1>
    %218 = vector.broadcast %cst_85 : f32 to vector<32x256xf32>
    %219 = arith.select %217, %196, %218 : vector<32x256xi1>, vector<32x256xf32>
    %220 = tpu.concatenate %37, %63, %89, %115, %9, %141, %167, %193, %219 in 0 : vector<32x256xf32>, vector<32x256xf32>, vector<32x256xf32>, vector<32x256xf32>, vector<32x256xf32>, vector<32x256xf32>, vector<32x256xf32>, vector<32x256xf32>, vector<32x256xf32> -> vector<288x256xf32>
    %c0_86 = arith.constant 0 : index
    %c0_87 = arith.constant 0 : index
    %221 = vector.load %arg6[%c0_86, %c0_87] : memref<32x288xbf16, #tpu.memory_space<vmem>>, vector<32x288xbf16>
    %222 = arith.truncf %220 : vector<288x256xf32> to vector<288x256xbf16>
    %cst_88 = arith.constant dense<0.000000e+00> : vector<32x256xf32>
    %223 = tpu.matmul %221, %222, %cst_88 {dimension_numbers = #tpu.dot_dimension_numbers<[1], [0], [0], [1], [0, 0, 1, 1], [], []>} : vector<32x288xbf16>, vector<288x256xbf16>, vector<32x256xf32> -> vector<32x256xf32>
    %c0_89 = arith.constant 0 : index
    %c0_90 = arith.constant 0 : index
    %224 = vector.load %arg7[%c0_89, %c0_90] : memref<32x1xf32, #tpu.memory_space<vmem>>, vector<32x1xf32>
    %225 = vector.broadcast %224 : vector<32x1xf32> to vector<32x256xf32>
    %226 = arith.addf %223, %225 : vector<32x256xf32>
    %c0_91 = arith.constant 0 : index
    %c0_92 = arith.constant 0 : index
    %c0_93 = arith.constant 0 : index
    %227 = vector.load %arg8[%c0_91, %c0_92, %c0_93] : memref<1x32x256xf32, #tpu.memory_space<vmem>>, vector<1x32x256xf32>
    %228 = vector.shape_cast %227 : vector<1x32x256xf32> to vector<32x256xf32>
    %229 = arith.addf %226, %228 : vector<32x256xf32>
    %c0_94 = arith.constant 0 : index
    %c0_95 = arith.constant 0 : index
    %c0_96 = arith.constant 0 : index
    %230 = vector.load %arg9[%c0_94, %c0_95, %c0_96] : memref<1x32x256xf32, #tpu.memory_space<vmem>>, vector<1x32x256xf32>
    %231 = vector.shape_cast %230 : vector<1x32x256xf32> to vector<32x256xf32>
    %232 = vector.shape_cast %229 : vector<32x256xf32> to vector<1x32x256xf32>
    tpu.vector_store %arg9[%c0_94, %c0_95, %c0_96], %232 {strides = array<i32>} : memref<1x32x256xf32, #tpu.memory_space<vmem>>, vector<1x32x256xf32>,
    return
  }
  func.func @transform_0(%arg0: i32) -> (i32, i32, i32) {
    %c0_i32 = arith.constant 0 : i32
    %c0_i32_0 = arith.constant 0 : i32
    %c0_i32_1 = arith.constant 0 : i32
    return %arg0, %c0_i32, %c0_i32_0 : i32, i32, i32
  }
  func.func @transform_1(%arg0: i32) -> (i32, i32) {
    %c0_i32 = arith.constant 0 : i32
    %c0_i32_0 = arith.constant 0 : i32
    %c0_i32_1 = arith.constant 0 : i32
    return %c0_i32, %c0_i32_0 : i32, i32
  }
  func.func @transform_2(%arg0: i32) -> (i32, i32) {
    %c0_i32 = arith.constant 0 : i32
    %c0_i32_0 = arith.constant 0 : i32
    %c0_i32_1 = arith.constant 0 : i32
    return %c0_i32, %c0_i32_0 : i32, i32
  }
  func.func @transform_3(%arg0: i32) -> (i32, i32) {
    %c0_i32 = arith.constant 0 : i32
    %c0_i32_0 = arith.constant 0 : i32
    %c0_i32_1 = arith.constant 0 : i32
    return %c0_i32, %c0_i32_0 : i32, i32
  }
  func.func @transform_4(%arg0: i32) -> (i32, i32) {
    %c0_i32 = arith.constant 0 : i32
    %c0_i32_0 = arith.constant 0 : i32
    %c0_i32_1 = arith.constant 0 : i32
    return %c0_i32, %c0_i32_0 : i32, i32
  }
  func.func @transform_5(%arg0: i32) -> (i32, i32) {
    %c0_i32 = arith.constant 0 : i32
    %c0_i32_0 = arith.constant 0 : i32
    %c0_i32_1 = arith.constant 0 : i32
    return %c0_i32, %c0_i32_0 : i32, i32
  }
  func.func @transform_6(%arg0: i32) -> (i32, i32) {
    %c0_i32 = arith.constant 0 : i32
    %c0_i32_0 = arith.constant 0 : i32
    %c0_i32_1 = arith.constant 0 : i32
    return %c0_i32, %c0_i32_0 : i32, i32
  }
  func.func @transform_7(%arg0: i32) -> (i32, i32, i32) {
    %c0_i32 = arith.constant 0 : i32
    %c0_i32_0 = arith.constant 0 : i32
    %c0_i32_1 = arith.constant 0 : i32
    return %arg0, %c0_i32, %c0_i32_0 : i32, i32, i32
  }
  func.func @transform_8(%arg0: i32) -> (i32, i32, i32) {
    %c0_i32 = arith.constant 0 : i32
    %c0_i32_0 = arith.constant 0 : i32
    %c0_i32_1 = arith.constant 0 : i32
    return %arg0, %c0_i32, %c0_i32_0 : i32, i32, i32
  }
}

</mosaic_0001>

<bundles_post_ra>
// kernel: tile.68
= control target key start
LH: loop header
LB: loop body
LE: loop exit
PB: predicated region body
PF: predicated region fallthrough
CT: control target
= control target key end

     0   :  { %s22_s0 = inlined_call_operand.vmem [shape: f32[8], index: 0, kind: input, shape index: {}]   ;;  %s23_s1 = inlined_call_operand.vmem [shape: f32[4,8], index: 1, kind: output, shape index: {}]  }
   0x1   :  { %v4_v0 = vld [vmem:[%s22_s0] ss:$0 sm:$0xff] }
   0x2   :  { %5 = vst [vmem:[%s23_s1] sm:$0xf] %v4_v0 }

// kernel: tile.0
= control target key start
LH: loop header
LB: loop body
LE: loop exit
PB: predicated region body
PF: predicated region fallthrough
CT: control target
= control target key end

     0   :  { %s67_s8 = smov 125   ;;  %vm8_vm0 = vcmask 7168   ;;  %s68_s11 = smov 126   ;;  %s118_s0 = inlined_call_operand.vmem [shape: f32[4,8], index: 0, kind: input, shape index: {}]   ;;  %s119_s1 = inlined_call_operand.vmem [shape: f32[32,1], index: 1, kind: output, shape index: {}]  }
   0x1   :  { %v5_v0 = vld [vmem:[%s118_s0] sm:$0xf]  ;;  %s66_s0 = smov 127   ;;  %s69_s12 = smov 124  }
   0x2   :  { %6 = vst [vmem:[#allocation0] sm:$0xf] %v5_v0  ;;  %s70_s13 = smov 123   ;;  %s71_s14 = smov 122  }
   0x3   :  { %s72_s15 = smov 121  }
   0x9   :  { %v10_v1 = vld [vmem:[#allocation0] sm:$0xf]  }
   0xa   :  { %v22_v2 = vld [vmem:[#allocation0] sm:$0xf]   ;;  %11 = vrot.lane.b32.xlu0 %v10_v1, %s66_s0 }
   0xb   :  { %23 = vrot.lane.b32.xlu1 %v22_v2, %s67_s8  ;;  %v16_v3 = vld [vmem:[#allocation0] sm:$0xf]  }
   0xc   :  { %v28_v4 = vld [vmem:[#allocation0] sm:$0xf]  }
   0xd   :  { %v7_v5 = vld [vmem:[#allocation0] sm:$0xf]  }
   0xe   :  { %9 = vst.msk [vmem:[%s119_s1] ss:$8 sm:$0xf] %vm8_vm0, %v7_v5   ;;  %17 = vrot.lane.b32.xlu0 %v16_v3, %s68_s11  ;;  %v34_v6 = vld [vmem:[#allocation0] sm:$0xf]  }
   0xf   :  { %29 = vrot.lane.b32.xlu1 %v28_v4, %s69_s12  ;;  %v40_v7 = vld [vmem:[#allocation0] sm:$0xf]  }
  0x10   :  { %v46_v8 = vld [vmem:[#allocation0] sm:$0xf]  }
  0x12   :  { %35 = vrot.lane.b32.xlu0 %v34_v6, %s70_s13 }
  0x13   :  { %41 = vrot.lane.b32.xlu1 %v40_v7, %s71_s14 }
  0x16   :  { %47 = vrot.lane.b32.xlu0 %v46_v8, %s72_s15 }
  0x7c   :  { %v12_v9 = vpop.permute.xlu0 %11  }
  0x7d   :  { %v24_v10 = vpop.permute.xlu1 %23   ;;  %52 = vst.msk [vmem:[%s119_s1 + $0x1] ss:$8 sm:$0xf] %vm8_vm0, %v12_v9  }
  0x7e   :  { %54 = vst.msk [vmem:[%s119_s1 + $0x3] ss:$8 sm:$0xf] %vm8_vm0, %v24_v10  }
  0x80   :  { %v18_v11 = vpop.permute.xlu0 %17  }
  0x81   :  { %v30_v12 = vpop.permute.xlu1 %29   ;;  %53 = vst.msk [vmem:[%s119_s1 + $0x2] ss:$8 sm:$0xf] %vm8_vm0, %v18_v11  }
  0x82   :  { %55 = vst.msk [vmem:[%s119_s1 + $0x4] ss:$8 sm:$0xf] %vm8_vm0, %v30_v12  }
  0x84   :  { %v36_v13 = vpop.permute.xlu0 %35  }
  0x85   :  { %v42_v14 = vpop.permute.xlu1 %41   ;;  %56 = vst.msk [vmem:[%s119_s1 + $0x5] ss:$8 sm:$0xf] %vm8_vm0, %v36_v13  }
  0x86   :  { %57 = vst.msk [vmem:[%s119_s1 + $0x6] ss:$8 sm:$0xf] %vm8_vm0, %v42_v14  }
  0x88   :  { %v48_v15 = vpop.permute.xlu0 %47  }
  0x89   :  { %58 = vst.msk [vmem:[%s119_s1 + $0x7] ss:$8 sm:$0xf] %vm8_vm0, %v48_v15  }

// kernel: up_forward.5
= control target key start
LH: loop header
LB: loop body
LE: loop exit
PB: predicated region body
PF: predicated region fallthrough
CT: control target
= control target key end

     0   :  { %s576_s18 = smov 0   ;;  %s626_s0 = inlined_call_operand.vmem [shape: f32[2,4,256], index: 0, kind: input, shape index: {}]   ;;  %s627_s1 = inlined_call_operand.vmem [shape: bf16[32,4], index: 1, kind: input, shape index: {}]   ;;  %s628_s2 = inlined_call_operand.vmem [shape: f32[32,1], index: 2, kind: input, shape index: {}]   ;;  %s629_s3 = inlined_call_operand.vmem [shape: f32[2,32,256], index: 3, kind: output, shape index: {0}]   ;;  %s630_s4 = inlined_call_operand.vmem [shape: f32[2,4,1], index: 4, kind: output, shape index: {1}]   ;;  %s631_s5 = inlined_call_operand.vmem [shape: f32[2,4,1], index: 5, kind: output, shape index: {2}]  }
   0x1 LB: > { %s501_s19 = sadd.s32 4294967295, %s543_s18   ;;  %p505_p0 = scmp.ge.s32.totalorder %s543_s18, 1  ;;  %s543_s18 = sphi %s576_s18, %s16_s18  }
   0x2   : > { %p192_p1 = scmp.lt.s32.totalorder %s543_s18, 3 }
   0x4   : > { %p193_p2 = pnand %p505_p0, %p192_p1 }
   0x5   : > { %p228_p3 = scmp.lt.s32.totalorder (!%p193_p2), %s501_s19, 1 }
   0x6   : > { %196 = sbr.rel (%p193_p2) target bundleno = 225 (0xe1), region = 32 }
   0xb   : > { %v545_v0 = vmov 0   ;;  %s633_s19 = smov (!%p228_p3, %s501_s19), 1  ;;  %v275_v1 = vld [vmem:[%s628_s2] sm:$0xff]  ;;  %vm251_vm0 = vcmask 1043456   ;;  %v276_v2 = vld [vmem:[%s628_s2 + $0x8] sm:$0xff]  ;;  %vm316_vm1 = vcmask 1041408  }
   0xc   : > { %355 = vmatprep.mubr.bf16.mxu0 %v545_v0  ;;  %365 = vmatprep.mubr.bf16.mxu1 %v545_v0  ;;  %s519_s22 = sshll.u32 %s633_s19, 3  ;;  %v278_v14 = vld [vmem:[%s628_s2 + $0x18] sm:$0xff]  ;;  %v535_v15 = vld [vmem:[%s627_s1] sm:$0xff]   ;;  %v536_v16 = vld [vmem:[%s627_s1 + $0x8] sm:$0xff]   ;;  %vm309_vm2 = vcmask 31744   ;;  %s510_s11 = sshll.u32 %s633_s19, 2 }
   0xd   : > { %532 = vset.pattern.permute.xlu1 %v545_v0  ;;  %533 = vset.pattern.permute.xlu0 %v545_v0  ;;  %s232_s27 = scalar_lea.vmem %s626_s0, %s519_s22  ;;  %v277_v19 = vld [vmem:[%s628_s2 + $0x10] sm:$0xff]  ;;  %s241_s14 = scalar_lea.vmem %s630_s4, %s510_s11  ;;  %vm257_vm3 = vcmask 3072  }
   0xe   : > { %281 = vperm.xlu1 %532, %v275_v1   ;;  %v247_v3 = vld [vmem:[%s232_s27] sm:$0xff]  ;;  %s245_s17 = scalar_lea.vmem %s631_s5, %s510_s11  ;;  %s520_s20 = sshll.u32 %s633_s19, 6 }
   0xf   : > { %v249_v4 = vcombine.high %v247_v3, %v247_v3  ;;  %v273_v5 = vpack.c.bf16 %v247_v3, %v247_v3  ;;  %v252_v6 = vsel %vm251_vm0, %v247_v3, 0.0  ;;  %v259_v7 = vmul.f32 %v247_v3, %v247_v3  ;;  %s237_s23 = scalar_lea.vmem %s629_s3, %s520_s20 }
  0x11   : > { %v274_v8 = vpack.c.bf16 %v249_v4, %v249_v4  ;;  %v318_v9 = vsel %vm316_vm1, %v273_v5, 0  ;;  %v253_v10 = vsel %vm251_vm0, %v249_v4, 0.0  ;;  %v261_v11 = vcombine.high %v259_v7, %v259_v7 }
  0x12   : > { %286 = vperm.xlu1 %532, %v276_v2   ;;  %v254_v12 = vadd.f32 %v253_v10, %v252_v6  ;;  %v263_v13 = vsel %vm251_vm0, %v259_v7, 0.0 }
  0x13   : > { %514 = vmatprep.subr.msk.bf16.mxu0 %vm316_vm1, %v274_v8  ;;  %521 = vmatprep.subr.msk.bf16.mxu1 %vm316_vm1, %v274_v8  ;;  %v264_v17 = vsel %vm251_vm0, %v261_v11, 0.0 }
  0x14   : > { %338 = vmatpush1.bf16.msra.mxu0 %v318_v9  ;;  %522 = vmatpush1.bf16.msra.mxu1 %v318_v9  ;;  %v265_v18 = vadd.f32 %v264_v17, %v263_v13 }
  0x15   : > { %255 = vadd.xlane.f32.xlu0 %v254_v12 }
  0x16   : > { %296 = vperm.xlu1 %532, %v278_v14  }
  0x17   : > { %515 = vmatmul.mubr.msk.bf16.vlgmr.msra.gmra.mxu0 %vm309_vm2, %v535_v15  ;;  %516 = vmatmul.mubr.msk.bf16.vlgmr.msra.gmra.mxu1 %vm309_vm2, %v536_v16 }
  0x19   : > { %266 = vadd.xlane.f32.xlu0 %v265_v18 }
  0x2f   : > { %291 = vperm.xlu0 %533, %v277_v19  }
  0x89   : > { %v282_v22 = vpop.permute.xlu1 %281 }
  0x8d   : > { %v287_v23 = vpop.permute.xlu1 %286 }
  0x91   : > { %v297_v31 = vpop.permute.xlu1 %296 }
  0x9e   : > { %v256_v20 = vpop.xlane.xlu0 %255 }
  0x9f   : > { %258 = vst.msk [vmem:[%s241_s14] sm:$0xf] %vm257_vm3, %v256_v20 }
  0xa2   : > { %v267_v21 = vpop.xlane.xlu0 %266 }
  0xa3   : > { %268 = vst.msk [vmem:[%s245_s17] sm:$0xf] %vm257_vm3, %v267_v21 }
  0xaa   : > { %v292_v24 = vpop.permute.xlu0 %291 }
  0xd7   : > { %v357_v25 = vpop.f32.mrf.mxu0  ;;  %v367_v26 = vpop.f32.mrf.mxu1 }
  0xd8   : > { %v358_v27 = vadd.f32 %v357_v25, %v282_v22  ;;  %v368_v28 = vadd.f32 %v367_v26, %v292_v24 }
  0xd9   : > { %v359_v29 = vpop.f32.mrf.mxu0  ;;  %v369_v30 = vpop.f32.mrf.mxu1 }
  0xda   : > { %376 = vst [vmem:[%s237_s23] sm:$0xff] %v358_v27  ;;  %380 = vst [vmem:[%s237_s23 + $0x20] sm:$0xff] %v368_v28  ;;  %v360_v32 = vadd.f32 %v359_v29, %v282_v22  ;;  %v370_v33 = vadd.f32 %v369_v30, %v292_v24 }
  0xdb   : > { %v361_v34 = vpop.f32.mrf.mxu0  ;;  %v371_v35 = vpop.f32.mrf.mxu1 }
  0xdc   : > { %377 = vst [vmem:[%s237_s23 + $0x8] sm:$0xff] %v360_v32  ;;  %381 = vst [vmem:[%s237_s23 + $0x28] sm:$0xff] %v370_v33  ;;  %v362_v36 = vadd.f32 %v361_v34, %v287_v23  ;;  %v372_v37 = vadd.f32 %v371_v35, %v297_v31 }
  0xdd   : > { %v363_v38 = vpop.f32.mrf.mxu0  ;;  %v373_v39 = vpop.f32.mrf.mxu1 }
  0xde   : > { %378 = vst [vmem:[%s237_s23 + $0x10] sm:$0xff] %v362_v36  ;;  %382 = vst [vmem:[%s237_s23 + $0x30] sm:$0xff] %v372_v37  ;;  %v364_v40 = vadd.f32 %v363_v38, %v287_v23  ;;  %v374_v41 = vadd.f32 %v373_v39, %v297_v31 }
  0xe0   : > { %379 = vst [vmem:[%s237_s23 + $0x18] sm:$0xff] %v364_v40  ;;  %383 = vst [vmem:[%s237_s23 + $0x38] sm:$0xff] %v374_v41 }
  0xe1 PF: > { %s16_s18 = sadd.s32 1, %s543_s18  }
  0xe2   : > { %p13_p4 = scmp.ge.s32.totalorder %s16_s18, 4  }
  0xe4   :  { %15 = sbr.rel (!%p13_p4) target bundleno = 1 (0x1), region = 86 }

// kernel: up_forward.6
= control target key start
LH: loop header
LB: loop body
LE: loop exit
PB: predicated region body
PF: predicated region fallthrough
CT: control target
= control target key end

     0   :  { %s885_s30 = smov 0   ;;  %s1002_s0 = inlined_call_operand.vmem [shape: f32[2,4,256], index: 0, kind: input, shape index: {}]   ;;  %s1003_s1 = inlined_call_operand.vmem [shape: f32[4,1], index: 1, kind: input, shape index: {}]   ;;  %s1004_s2 = inlined_call_operand.vmem [shape: f32[4,1], index: 2, kind: input, shape index: {}]   ;;  %s1005_s3 = inlined_call_operand.vmem [shape: s32[1,256], index: 3, kind: input, shape index: {}]   ;;  %s1006_s4 = inlined_call_operand.vmem [shape: s32[1,256], index: 4, kind: input, shape index: {}]   ;;  %s1007_s5 = inlined_call_operand.vmem [shape: bf16[32,16], index: 5, kind: input, shape index: {}]   ;;  %s1008_s6 = inlined_call_operand.vmem [shape: f32[32,1], index: 6, kind: input, shape index: {}]   ;;  %s1009_s7 = inlined_call_operand.vmem [shape: f32[2,32,256], index: 7, kind: output, shape index: {0}]   ;;  %s1010_s8 = inlined_call_operand.vmem [shape: f32[2,32,1], index: 8, kind: output, shape index: {1}]   ;;  %s1011_s9 = inlined_call_operand.vmem [shape: f32[2,32,1], index: 9, kind: output, shape index: {2}]  }
   0x1 LB: > { %s765_s10 = sadd.s32 4294967295, %s828_s30   ;;  %p769_p0 = scmp.ge.s32.totalorder %s828_s30, 1  ;;  %s828_s30 = sphi %s885_s30, %s20_s30  }
   0x2   : > { %p292_p1 = scmp.lt.s32.totalorder %s828_s30, 3 }
   0x4   : > { %p293_p2 = pnand %p769_p0, %p292_p1 }
   0x5   : > { %p338_p3 = scmp.lt.s32.totalorder (!%p293_p2), %s765_s10, 1  ;;  %s832_s19 = smov (!%p293_p2), 112  }
   0x6   : > { %296 = sbr.rel (%p293_p2) target bundleno = 634 (0x27a), region = 48  ;;  %s833_s20 = smov (!%p293_p2), 127  }
   0x7   : > { %s834_s23 = smov (!%p293_p2), 111  }
   0xb   : > { %v360_v0 = vld [vmem:[%s1003_s1] sm:$0xf]  ;;  %v830_v1 = vmov 0   ;;  %v831_v3 = vmov 839922192   ;;  %v368_v5 = vlaneseq  ;;  %s1021_s10 = smov (!%p338_p3, %s765_s10), 1 }
   0xc   : > { %803 = vset.pattern.permute.xlu0 %v830_v1  ;;  %574 = vmatprep.mubr.bf16.mxu0 %v830_v1  ;;  %v374_v2 = vld [vmem:[%s1004_s2] sm:$0xf]  ;;  %v366_v4 = vunpack.c.l.s4 %v831_v3  ;;  %s784_s15 = sshll.u32 %s1021_s10, 3  ;;  %v502_v19 = vld [vmem:[%s1008_s6 + $0x8] sm:$0xff]  ;;  %v504_v20 = vld [vmem:[%s1008_s6 + $0x18] sm:$0xff] }
   0xd   : > { %363 = vperm.xlu0 %803, %v360_v0   ;;  %584 = vmatprep.mubr.bf16.mxu1 %v830_v1  ;;  %v369_v7 = vshrl.u32 %v368_v5, 7  ;;  %s342_s18 = scalar_lea.vmem %s1002_s0, %s784_s15  ;;  %v501_v21 = vld [vmem:[%s1008_s6] sm:$0xff]  ;;  %v503_v22 = vld [vmem:[%s1008_s6 + $0x10] sm:$0xff] }
   0xe   : > { %819 = vset.pattern.permute.xlu1 %v830_v1  ;;  %v367_v6 = vunpack.c.0.s8 %v366_v4  ;;  %v359_v11 = vld [vmem:[%s342_s18] sm:$0xff] }
   0xf   : > { %v390_v23 = vld [vmem:[%s1006_s4] sm:$0x3]  ;;  %v413_v27 = vsub.s32 0, %v369_v7  ;;  %v417_v28 = vsub.s32 1, %v369_v7 }
  0x10   : > { %v370_v8 = vsub.s32 %v367_v6, %v369_v7  ;;  %v389_v24 = vld [vmem:[%s1005_s3] sm:$0x3]  ;;  %v405_v25 = vadd.s32 1, %v390_v23  ;;  %vm436_vm10 = vcmp.ge.s32.totalorder %v390_v23, 0  ;;  %vm438_vm13 = vcmp.lt.s32.totalorder %v390_v23, 16 }
  0x11   : > { %377 = vperm.xlu0 %803, %v374_v2   ;;  %vm402_vm0 = vcmp.ge.s32.totalorder %v389_v24, 0  ;;  %vm403_vm1 = vcmp.lt.s32.totalorder %v389_v24, 16  ;;  %v432_v26 = vadd.s32 1, %v389_v24 }
  0x12   : > { %vm404_vm2 = vmand %vm402_vm0, %vm403_vm1  ;;  %vm406_vm3 = vcmp.ge.s32.totalorder %v405_v25, 0  ;;  %vm408_vm5 = vcmp.lt.s32.totalorder %v405_v25, 16  ;;  %vm397_vm0 = vcmask 1039360  }
  0x13   : > { %vm407_vm4 = vmand %vm404_vm2, %vm406_vm3  ;;  %vm433_vm6 = vcmp.ge.s32.totalorder %v432_v26, 0  ;;  %vm434_vm7 = vcmp.lt.s32.totalorder %v432_v26, 16 }
  0x14   : > { %vm409_vm8 = vmand %vm407_vm4, %vm408_vm5  ;;  %vm457_vm4 = vcmask 908288  }
  0x15   : > { %vm435_vm9 = vmand %vm433_vm6, %vm434_vm7  ;;  %v410_v29 = vsel %vm409_vm8, 1, %v830_v1 }
  0x16   : > { %vm462_vm11 = vmand %vm435_vm9, %vm406_vm3  ;;  %v414_v30 = vrot.slane %v410_v29, %v413_v27  ;;  %v418_v31 = vrot.slane %v410_v29, %v417_v28  ;;  %vm427_vm3 = vcmask 916480  }
  0x17   : > { %vm437_vm12 = vmand %vm435_vm9, %vm436_vm10  ;;  %vm490_vm9 = vcmask 1043456   ;;  %vm535_vm10 = vcmask 130048  }
  0x18   : > { %vm463_vm14 = vmand %vm462_vm11, %vm408_vm5  ;;  %vm938_vm1 = vcmp.eq.s32.totalorder %v418_v31, 1  ;;  %vm942_vm2 = vcmp.eq.s32.totalorder %v414_v30, 1  ;;  %vm607_vm11 = vcmask 7168  }
  0x19   : > { %vm439_vm15 = vmand %vm437_vm12, %vm438_vm13  ;;  %v464_v32 = vsel %vm463_vm14, 1, %v830_v1 }
  0x1a   : > { %v440_v33 = vsel %vm439_vm15, 1, %v830_v1  ;;  %v468_v40 = vrot.slane %v464_v32, %v413_v27  ;;  %v472_v41 = vrot.slane %v464_v32, %v417_v28 }
  0x1b   : > { %v448_v44 = vrot.slane %v440_v33, %v417_v28  ;;  %v444_v45 = vrot.slane %v440_v33, %v413_v27 }
  0x1c   : > { %vm474_vm5 = vcmp.eq.s32.totalorder %v472_v41, 1  ;;  %vm473_vm6 = vcmp.eq.s32.totalorder %v468_v40, 1 }
  0x1d   : > { %vm950_vm7 = vcmp.eq.s32.totalorder %v448_v44, 1  ;;  %vm954_vm8 = vcmp.eq.s32.totalorder %v444_v45, 1 }
  0x88   : > { %v364_v9 = vpop.permute.xlu0 %363 }
  0x89   : > { %v371_v10 = vrot.slane %v364_v9, %v370_v8  ;;  %v820_v9 = vld [vmem:[%s1007_s5] sm:$0xff]  }
  0x8b   : > { %v373_v13 = vmul.f32 %v371_v10, %v359_v11  ;;  %v821_v10 = vld [vmem:[%s1007_s5 + $0x8] sm:$0xff]  }
  0x8c   : > { %v378_v12 = vpop.permute.xlu0 %377 }
  0x8d   : > { %v385_v14 = vrot.slane %v378_v12, %v370_v8 }
  0x8f   : > { %v387_v15 = vadd.f32 %v385_v14, %v373_v13 }
  0x91   : > { %v909_v16 = vmax.f32 %v387_v15, 0.0 }
  0x93   : > { %v913_v17 = vcombine.high %v909_v16, %v909_v16 }
  0x95   : > { %v814_v18 = vpack.i.bf16 %v909_v16, %v913_v17 }
  0x97   : > { %815 = vrot.lane.b32.xlu0 %v814_v18, %s832_s19  ;;  %805 = vrot.lane.b32.xlu1 %v814_v18, %s833_s20  ;;  %s785_s19 = sshll.u32 %s1021_s10, 6 }
  0x98   : > { %s974_s22 = scalar_lea.vmem %s1009_s7, %s785_s19 }
  0x9b   : > { %512 = vperm.xlu0 %803, %v502_v19   ;;  %810 = vrot.lane.b32.xlu1 %v814_v18, %s834_s23  ;;  %s786_s23 = sshll.u32 %s1021_s10, 5 }
  0x9c   : > { %s352_s26 = scalar_lea.vmem %s1010_s8, %s786_s23  ;;  %s357_s29 = scalar_lea.vmem %s1011_s9, %s786_s23 }
  0x9f   : > { %522 = vperm.xlu0 %803, %v504_v20   ;;  %507 = vperm.xlu1 %819, %v501_v21  }
  0xa3   : > { %517 = vperm.xlu1 %819, %v503_v22  }
 0x109   : > { %v816_v34 = vpop.permute.xlu0 %815  ;;  %v806_v36 = vpop.permute.xlu1 %805 }
 0x10a   : > { %v808_v38 = vunpack.i.h.bf16 %v806_v36  ;;  %v807_v39 = vunpack.i.l.bf16 %v806_v36  ;;  %v818_v42 = vunpack.i.h.bf16 %v816_v34  ;;  %v817_v43 = vunpack.i.l.bf16 %v816_v34 }
 0x10c   : > { %v398_v46 = vsel %vm397_vm0, %v808_v38, %v807_v39  ;;  %v401_v47 = vsel %vm397_vm0, %v807_v39, 0.0  ;;  %v431_v53 = vsel %vm427_vm3, %v817_v43, 0.0  ;;  %v428_v55 = vsel %vm427_vm3, %v818_v42, %v817_v43 }
 0x10d   : > { %v422_v48 = vsel %vm938_vm1, %v401_v47, 0.0  ;;  %v811_v49 = vpop.permute.xlu1 %810  ;;  %v421_v50 = vsel %vm942_vm2, %v398_v46, 0.0  ;;  %v452_v1 = vsel %vm950_vm7, %v431_v53, 0.0  ;;  %v451_v2 = vsel %vm954_vm8, %v428_v55, 0.0 }
 0x10e   : > { %v813_v51 = vunpack.i.h.bf16 %v811_v49  ;;  %v812_v52 = vunpack.i.l.bf16 %v811_v49  ;;  %v481_v57 = vrot.slane %v422_v48, 4  ;;  %v480_v60 = vrot.slane %v421_v50, 4 }
 0x110   : > { %v458_v58 = vsel %vm457_vm4, %v813_v51, %v812_v52  ;;  %v461_v59 = vsel %vm457_vm4, %v812_v52, 0.0  ;;  %v492_v3 = vsel %vm490_vm9, %v913_v17, %v481_v57  ;;  %v491_v5 = vsel %vm490_vm9, %v909_v16, %v480_v60 }
 0x111   : > { %v476_v61 = vsel %vm474_vm5, %v461_v59, 0.0  ;;  %v475_v62 = vsel %vm473_vm6, %v458_v58, 0.0 }
 0x112   : > { %v487_v63 = vrot.slane %v476_v61, 4  ;;  %v486_v0 = vrot.slane %v475_v62, 4 }
 0x114   : > { %v494_v4 = vsel %vm490_vm9, %v452_v1, %v487_v63  ;;  %v493_v6 = vsel %vm490_vm9, %v451_v2, %v486_v0 }
 0x115   : > { %v500_v7 = vpack.c.bf16 %v494_v4, %v492_v3  ;;  %v499_v8 = vpack.c.bf16 %v493_v6, %v491_v5 }
 0x116   : > { %v513_v12 = vpop.permute.xlu0 %512 }
 0x117   : > { %556 = vmatprep.subr.bf16.mxu0 %v500_v7  ;;  %788 = vmatprep.subr.bf16.mxu1 %v500_v7 }
 0x118   : > { %557 = vmatpush1.bf16.msra.mxu0 %v499_v8  ;;  %789 = vmatpush1.bf16.msra.mxu1 %v499_v8 }
 0x11a   : > { %v508_v11 = vpop.permute.xlu1 %507  ;;  %v523_v20 = vpop.permute.xlu0 %522 }
 0x11b   : > { %780 = vmatmul.mubr.msk.bf16.vlgmr.msra.gmra.mxu0 %vm535_vm10, %v820_v9  ;;  %781 = vmatmul.mubr.msk.bf16.vlgmr.msra.gmra.mxu1 %vm535_vm10, %v821_v10 }
 0x11e   : > { %v518_v13 = vpop.permute.xlu1 %517 }
 0x1db   : > { %v576_v14 = vpop.f32.mrf.mxu0  ;;  %v586_v15 = vpop.f32.mrf.mxu1 }
 0x1dc   : > { %v577_v16 = vadd.f32 %v576_v14, %v508_v11  ;;  %v587_v17 = vadd.f32 %v586_v15, %v518_v13 }
 0x1dd   : > { %v578_v18 = vpop.f32.mrf.mxu0  ;;  %v588_v19 = vpop.f32.mrf.mxu1 }
 0x1de   : > { %636 = vst [vmem:[%s974_s22] sm:$0xff] %v577_v16  ;;  %640 = vst [vmem:[%s974_s22 + $0x20] sm:$0xff] %v587_v17  ;;  %v579_v21 = vadd.f32 %v578_v18, %v508_v11  ;;  %v589_v22 = vadd.f32 %v588_v19, %v518_v13  ;;  %v612_v34 = vmul.f32 %v577_v16, %v577_v16 }
 0x1df   : > { %v580_v23 = vpop.f32.mrf.mxu0  ;;  %v590_v24 = vpop.f32.mrf.mxu1  ;;  %v616_v43 = vmul.f32 %v587_v17, %v587_v17 }
 0x1e0   : > { %637 = vst [vmem:[%s974_s22 + $0x8] sm:$0xff] %v579_v21  ;;  %641 = vst [vmem:[%s974_s22 + $0x28] sm:$0xff] %v589_v22  ;;  %v581_v25 = vadd.f32 %v580_v23, %v513_v12  ;;  %v591_v26 = vadd.f32 %v590_v24, %v523_v20  ;;  %v601_v27 = vadd.f32 %v589_v22, %v587_v17 }
 0x1e1   : > { %v595_v28 = vadd.f32 %v579_v21, %v577_v16  ;;  %v582_v29 = vpop.f32.mrf.mxu0  ;;  %v592_v30 = vpop.f32.mrf.mxu1  ;;  %v613_v31 = vmul.f32 %v579_v21, %v579_v21  ;;  %v617_v41 = vmul.f32 %v589_v22, %v589_v22 }
 0x1e2   : > { %638 = vst [vmem:[%s974_s22 + $0x10] sm:$0xff] %v581_v25  ;;  %642 = vst [vmem:[%s974_s22 + $0x30] sm:$0xff] %v591_v26  ;;  %v583_v32 = vadd.f32 %v582_v29, %v513_v12  ;;  %v593_v33 = vadd.f32 %v592_v30, %v523_v20  ;;  %602 = vadd.xlane.f32.xlu0 %v601_v27  ;;  %v614_v38 = vmul.f32 %v581_v25, %v581_v25 }
 0x1e3   : > { %596 = vadd.xlane.f32.xlu1 %v595_v28  ;;  %v620_v35 = vadd.f32 %v613_v31, %v612_v34  ;;  %v618_v44 = vmul.f32 %v591_v26, %v591_v26  ;;  %v626_v45 = vadd.f32 %v617_v41, %v616_v43 }
 0x1e4   : > { %639 = vst [vmem:[%s974_s22 + $0x18] sm:$0xff] %v583_v32  ;;  %643 = vst [vmem:[%s974_s22 + $0x38] sm:$0xff] %v593_v33  ;;  %v604_v36 = vadd.f32 %v593_v33, %v591_v26  ;;  %v615_v37 = vmul.f32 %v583_v32, %v583_v32  ;;  %v598_v39 = vadd.f32 %v583_v32, %v581_v25 }
 0x1e5   : > { %v619_v42 = vmul.f32 %v593_v33, %v593_v33 }
 0x1e6   : > { %621 = vadd.xlane.f32.xlu0 %v620_v35  ;;  %v623_v40 = vadd.f32 %v615_v37, %v614_v38 }
 0x1e7   : > { %605 = vadd.xlane.f32.xlu1 %v604_v36  ;;  %v629_v46 = vadd.f32 %v619_v42, %v618_v44 }
 0x1ea   : > { %599 = vadd.xlane.f32.xlu0 %v598_v39 }
 0x1eb   : > { %624 = vadd.xlane.f32.xlu1 %v623_v40 }
 0x1ee   : > { %627 = vadd.xlane.f32.xlu0 %v626_v45 }
 0x1ef   : > { %630 = vadd.xlane.f32.xlu1 %v629_v46 }
 0x26b   : > { %v603_v47 = vpop.xlane.xlu0 %602 }
 0x26c   : > { %v597_v48 = vpop.xlane.xlu1 %596  ;;  %610 = vst.msk [vmem:[%s352_s26 + $0x10] sm:$0xff] %vm607_vm11, %v603_v47 }
 0x26d   : > { %608 = vst.msk [vmem:[%s352_s26] sm:$0xff] %vm607_vm11, %v597_v48 }
 0x26f   : > { %v622_v49 = vpop.xlane.xlu0 %621 }
 0x270   : > { %v606_v50 = vpop.xlane.xlu1 %605  ;;  %632 = vst.msk [vmem:[%s357_s29] sm:$0xff] %vm607_vm11, %v622_v49 }
 0x271   : > { %611 = vst.msk [vmem:[%s352_s26 + $0x18] sm:$0xff] %vm607_vm11, %v606_v50 }
 0x273   : > { %v600_v51 = vpop.xlane.xlu0 %599 }
 0x274   : > { %v625_v52 = vpop.xlane.xlu1 %624  ;;  %609 = vst.msk [vmem:[%s352_s26 + $0x8] sm:$0xff] %vm607_vm11, %v600_v51 }
 0x275   : > { %633 = vst.msk [vmem:[%s357_s29 + $0x8] sm:$0xff] %vm607_vm11, %v625_v52 }
 0x277   : > { %v628_v53 = vpop.xlane.xlu0 %627 }
 0x278   : > { %v631_v54 = vpop.xlane.xlu1 %630  ;;  %634 = vst.msk [vmem:[%s357_s29 + $0x10] sm:$0xff] %vm607_vm11, %v628_v53 }
 0x279   : > { %635 = vst.msk [vmem:[%s357_s29 + $0x18] sm:$0xff] %vm607_vm11, %v631_v54 }
 0x27a PF: > { %s20_s30 = sadd.s32 1, %s828_s30  }
 0x27b   : > { %p17_p4 = scmp.ge.s32.totalorder %s20_s30, 4  }
 0x27d   :  { %19 = sbr.rel (!%p17_p4) target bundleno = 1 (0x1), region = 102 }

// kernel: up_forward.7
= control target key start
LH: loop header
LB: loop body
LE: loop exit
PB: predicated region body
PF: predicated region fallthrough
CT: control target
= control target key end

     0   :  { %s1740_s13 = smov 0   ;;  %s2389_s0 = inlined_call_operand.vmem [shape: f32[2,32,256], index: 0, kind: input, shape index: {}]   ;;  %s2390_s1 = inlined_call_operand.vmem [shape: f32[32,1], index: 1, kind: input, shape index: {}]   ;;  %s2391_s2 = inlined_call_operand.vmem [shape: f32[32,1], index: 2, kind: input, shape index: {}]   ;;  %s2392_s3 = inlined_call_operand.vmem [shape: s32[1,256], index: 3, kind: input, shape index: {}]   ;;  %s2393_s4 = inlined_call_operand.vmem [shape: s32[1,256], index: 4, kind: input, shape index: {}]   ;;  %s2394_s5 = inlined_call_operand.vmem [shape: bf16[32,288], index: 5, kind: input, shape index: {}]   ;;  %s2395_s6 = inlined_call_operand.vmem [shape: f32[32,1], index: 6, kind: input, shape index: {}]   ;;  %s2396_s7 = inlined_call_operand.vmem [shape: f32[2,32,256], index: 7, kind: input, shape index: {}]   ;;  %s2397_s8 = inlined_call_operand.vmem [shape: f32[2,32,256], index: 8, kind: output, shape index: {0}]   ;;  %s2398_s9 = inlined_call_operand.vmem [shape: f32[2,32,1], index: 9, kind: output, shape index: {1}]   ;;  %s2399_s10 = inlined_call_operand.vmem [shape: f32[2,32,1], index: 10, kind: output, shape index: {2}]  }
   0x1 LB: > { %s1355_s14 = sadd.s32 4294967295, %s1674_s13   ;;  %p1359_p0 = scmp.ge.s32.totalorder %s1674_s13, 1  ;;  %s1674_s13 = sphi %s1740_s13, %s21_s13  }
   0x2   : > { %p327_p1 = scmp.lt.s32.totalorder %s1674_s13, 3 }
   0x4   : > { %p328_p2 = pnand %p1359_p0, %p327_p1 }
   0x5   : > { %p380_p3 = scmp.lt.s32.totalorder (!%p328_p2), %s1355_s14, 1  ;;  %s1677_s17 = smov (!%p328_p2), 1  }
   0x6   : > { %331 = sbr.rel (%p328_p2) target bundleno = 695 (0x2b7), region = 52  ;;  %s1678_s18 = smov (!%p328_p2), 15  }
   0x7   : > { %s1679_s19 = smov (!%p328_p2), 16   ;;  %s1680_s20 = smov (!%p328_p2), 17  }
   0x8   : > { %s1681_s21 = smov (!%p328_p2), 112   ;;  %s1682_s22 = smov (!%p328_p2), 113  }
   0x9   : > { %s1683_s23 = smov (!%p328_p2), 127   ;;  %s1684_s26 = smov (!%p328_p2), 111  }
   0xb   : > { %v448_v0 = vld [vmem:[%s2391_s2 + $0x10] sm:$0xff]  ;;  %v1676_v2 = vmov 0   ;;  %v449_v3 = vld [vmem:[%s2391_s2 + $0x18] sm:$0xff]  ;;  %v415_v5 = vld [vmem:[%s2390_s1 + $0x8] sm:$0xff]  ;;  %s2466_s14 = smov (!%p380_p3, %s1355_s14), 1  ;;  %vm2401_vm15 = vcmask 7168  }
   0xc   : > { %v416_v1 = vld [vmem:[%s2390_s1 + $0x10] sm:$0xff]  ;;  %1499 = vset.pattern.permute.xlu1 %v1676_v2  ;;  %1498 = vset.pattern.permute.xlu0 %v1676_v2  ;;  %v417_v4 = vld [vmem:[%s2390_s1 + $0x18] sm:$0xff]  ;;  %v414_v6 = vld [vmem:[%s2390_s1] sm:$0xff]  ;;  %s1778_s11 = sshll.u32 %s2466_s14, 6 }
   0xd   : > { %462 = vperm.xlu1 %1499, %v448_v0   ;;  %430 = vperm.xlu0 %1498, %v416_v1   ;;  %v447_v7 = vld [vmem:[%s2391_s2 + $0x8] sm:$0xff]  ;;  %v446_v8 = vld [vmem:[%s2391_s2] sm:$0xff]  ;;  %s384_s16 = scalar_lea.vmem %s2389_s0, %s1778_s11  ;;  %v994_v0 = vld [vmem:[%s2395_s6 + $0x18] sm:$0xff] }
   0xe   : > { %1137 = vmatprep.mubr.bf16.mxu1 %v1676_v2  ;;  %v410_v9 = vld [vmem:[%s384_s16 + $0x20] sm:$0xff]  ;;  %v411_v10 = vld [vmem:[%s384_s16 + $0x28] sm:$0xff]  ;;  %v412_v15 = vld [vmem:[%s384_s16 + $0x30] sm:$0xff] }
   0xf   : > { %v413_v16 = vld [vmem:[%s384_s16 + $0x38] sm:$0xff]  ;;  %v408_v27 = vld [vmem:[%s384_s16 + $0x10] sm:$0xff]  ;;  %v406_v32 = vld [vmem:[%s384_s16] sm:$0xff] }
  0x10   : > { %v409_v30 = vld [vmem:[%s384_s16 + $0x18] sm:$0xff]  ;;  %v407_v33 = vld [vmem:[%s384_s16 + $0x8] sm:$0xff]  ;;  %v1662_v61 = vld [vmem:[%s2394_s5 + $0x4] ss:$12 sps:$4 sm:$0xff]  }
  0x11   : > { %467 = vperm.xlu1 %1499, %v449_v3   ;;  %435 = vperm.xlu0 %1498, %v417_v4   ;;  %v992_v62 = vld [vmem:[%s2395_s6 + $0x8] sm:$0xff]  ;;  %v991_v63 = vld [vmem:[%s2395_s6] sm:$0xff]  ;;  %v993_v1 = vld [vmem:[%s2395_s6 + $0x10] sm:$0xff] }
  0x12   : > { %1084 = vmatprep.mubr.bf16.mxu0 %v1662_v61  ;;  %v1842_v3 = vld [vmem:[%s2393_s4] sm:$0x3] }
  0x13   : > { %v486_v4 = vld [vmem:[%s2392_s3] sm:$0x3]  ;;  %vm590_vm14 = vcmp.ge.s32.totalorder %v1842_v3, 0 }
  0x14   : > { %vm703_vm0 = vcmp.ge.s32.totalorder %v486_v4, 0  ;;  %vm704_vm1 = vcmp.lt.s32.totalorder %v486_v4, 16 }
  0x15   : > { %425 = vperm.xlu1 %1499, %v415_v5   ;;  %420 = vperm.xlu0 %1498, %v414_v6   ;;  %v1848_v5 = vadd.s32 4294967295, %v1842_v3  ;;  %v539_v6 = vlaneseq  ;;  %vm1851_vm3 = vmand %vm703_vm0, %vm704_vm1 }
  0x17   : > { %vm534_vm2 = vcmp.ge.s32.totalorder %v1848_v5, 0  ;;  %vm536_vm4 = vcmp.lt.s32.totalorder %v1848_v5, 16 }
  0x18   : > { %vm706_vm5 = vmand %vm1851_vm3, %vm534_vm2 }
  0x19   : > { %457 = vperm.xlu1 %1499, %v447_v7   ;;  %452 = vperm.xlu0 %1498, %v446_v8   ;;  %v529_v8 = vadd.s32 4294967295, %v486_v4  ;;  %vm707_vm8 = vmand %vm706_vm5, %vm536_vm4 }
  0x1b   : > { %vm530_vm6 = vcmp.ge.s32.totalorder %v529_v8, 0  ;;  %vm531_vm7 = vcmp.lt.s32.totalorder %v529_v8, 16 }
  0x1c   : > { %vm1868_vm10 = vmand %vm530_vm6, %vm531_vm7  ;;  %vm2403_vm6 = vcmp.lt.s32.totalorder %v1842_v3, 16 }
  0x1d   : > { %vm591_vm5 = vmand %vm1868_vm10, %vm590_vm14 }
  0x88   : > { %v463_v11 = vpop.permute.xlu1 %462  ;;  %v431_v12 = vpop.permute.xlu0 %430 }
  0x89   : > { %v442_v13 = vmul.f32 %v431_v12, %v410_v9  ;;  %v443_v14 = vmul.f32 %v431_v12, %v411_v10  ;;  %v540_v9 = vshrl.u32 %v539_v6, 7  ;;  %v1861_v10 = vadd.s32 1, %v1842_v3 }
  0x8b   : > { %v474_v17 = vadd.f32 %v463_v11, %v442_v13  ;;  %v475_v18 = vadd.f32 %v463_v11, %v443_v14  ;;  %v1865_v11 = vsub.s32 1, %v540_v9  ;;  %vm2402_vm9 = vcmp.ge.s32.totalorder %v1861_v10, 0 }
  0x8c   : > { %v468_v19 = vpop.permute.xlu1 %467  ;;  %v436_v20 = vpop.permute.xlu0 %435  ;;  %v708_v13 = vsel %vm707_vm8, 1, %v1676_v2  ;;  %v1873_v14 = vsub.s32 0, %v540_v9  ;;  %vm648_vm11 = vmand %vm1868_vm10, %vm2402_vm9  ;;  %vm2400_vm12 = vcmp.lt.s32.totalorder %v1861_v10, 16 }
  0x8d   : > { %v1784_v21 = vmax.f32 %v474_v17, 0.0  ;;  %v1786_v22 = vmax.f32 %v475_v18, 0.0  ;;  %v444_v23 = vmul.f32 %v436_v20, %v412_v15  ;;  %v445_v24 = vmul.f32 %v436_v20, %v413_v16  ;;  %vm650_vm13 = vmand %vm648_vm11, %vm2400_vm12 }
  0x8e   : > { %v716_v16 = vrot.slane %v708_v13, %v1865_v11  ;;  %v712_v17 = vrot.slane %v708_v13, %v1873_v14  ;;  %vm593_vm11 = vmand %vm591_vm5, %vm2403_vm6  ;;  %vm629_vm5 = vcmask 121856  }
  0x8f   : > { %v476_v25 = vadd.f32 %v468_v19, %v444_v23  ;;  %v477_v26 = vadd.f32 %v468_v19, %v445_v24  ;;  %v1500_v28 = vpack.i.bf16 %v1786_v22, %v1784_v21 }
  0x90   : > { %v426_v29 = vpop.permute.xlu1 %425  ;;  %v421_v31 = vpop.permute.xlu0 %420  ;;  %vm1885_vm0 = vcmp.eq.s32.totalorder %v716_v16, 1  ;;  %vm1889_vm1 = vcmp.eq.s32.totalorder %v712_v17, 1 }
  0x91   : > { %v1790_v34 = vmax.f32 %v476_v25, 0.0  ;;  %v1792_v35 = vmax.f32 %v477_v26, 0.0  ;;  %1501 = vrot.lane.b32.xlu0 %v1500_v28, %s1677_s17  ;;  %v440_v36 = vmul.f32 %v426_v29, %v408_v27  ;;  %v441_v37 = vmul.f32 %v426_v29, %v409_v30  ;;  %vm1376_vm7 = vmpackc.low %vm1885_vm0, %vm1885_vm0 }
  0x92   : > { %v438_v38 = vmul.f32 %v421_v31, %v406_v32  ;;  %v439_v39 = vmul.f32 %v421_v31, %v407_v33  ;;  %v651_v27 = vsel %vm650_vm13, 1, %v1676_v2  ;;  %vm1379_vm8 = vmpackc.low %vm1889_vm1, %vm1889_vm1 }
  0x93   : > { %v1505_v40 = vpack.i.bf16 %v1792_v35, %v1790_v34  ;;  %v974_v51 = vpack.c.bf16 %v1792_v35, %v1786_v22  ;;  %v973_v54 = vpack.c.bf16 %v1790_v34, %v1784_v21  ;;  %v1585_v57 = vpack.i.bf16 %v1790_v34, %v1784_v21  ;;  %v1660_v21 = vld [vmem:[%s2394_s5] ss:$12 sps:$4 sm:$0xff]   ;;  %v1663_v34 = vld [vmem:[%s2394_s5 + $0x8] ss:$12 sps:$4 sm:$0xff]  }
  0x94   : > { %v458_v41 = vpop.permute.xlu1 %457  ;;  %v453_v42 = vpop.permute.xlu0 %452  ;;  %v1580_v58 = vpack.i.bf16 %v1792_v35, %v1786_v22 }
  0x95   : > { %v472_v43 = vadd.f32 %v458_v41, %v440_v36  ;;  %v473_v44 = vadd.f32 %v458_v41, %v441_v37  ;;  %v470_v45 = vadd.f32 %v453_v42, %v438_v38  ;;  %v471_v46 = vadd.f32 %v453_v42, %v439_v39  ;;  %1506 = vrot.lane.b32.xlu1 %v1505_v40, %s1677_s17 }
  0x96   : > { %v659_v36 = vrot.slane %v651_v27, %v1865_v11  ;;  %v655_v39 = vrot.slane %v651_v27, %v1873_v14 }
  0x97   : > { %v1796_v47 = vmax.f32 %v472_v43, 0.0  ;;  %v1798_v48 = vmax.f32 %v473_v44, 0.0  ;;  %v1800_v49 = vmax.f32 %v470_v45, 0.0  ;;  %v1802_v50 = vmax.f32 %v471_v46, 0.0 }
  0x98   : > { %vm1923_vm13 = vcmp.eq.s32.totalorder %v659_v36, 1  ;;  %v594_v45 = vsel %vm593_vm11, 1, %v1676_v2  ;;  %v814_v46 = vadd.s32 1, %v486_v4  ;;  %vm1932_vm12 = vcmp.eq.s32.totalorder %v655_v39, 1  ;;  %vm1940_vm11 = vmand %vm1868_vm10, %vm534_vm2 }
  0x99   : > { %v1515_v52 = vpack.i.bf16 %v1798_v48, %v1796_v47  ;;  %v1510_v53 = vpack.i.bf16 %v1802_v50, %v1800_v49  ;;  %v972_v55 = vpack.c.bf16 %v1798_v48, %v1802_v50  ;;  %v971_v56 = vpack.c.bf16 %v1796_v47, %v1800_v49  ;;  %vm1391_vm10 = vmpackc.low %vm1932_vm12, %vm1932_vm12 }
  0x9a   : > { %v1595_v59 = vpack.i.bf16 %v1796_v47, %v1800_v49  ;;  %v1590_v60 = vpack.i.bf16 %v1798_v48, %v1802_v50  ;;  %v602_v9 = vrot.slane %v594_v45, %v1865_v11  ;;  %vm815_vm9 = vcmp.ge.s32.totalorder %v814_v46, 0  ;;  %vm1970_vm0 = vmand %vm1940_vm11, %vm536_vm4  ;;  %v1664_v48 = vld [vmem:[%s2394_s5 + $0x1c] ss:$12 sps:$4 sm:$0xff]   ;;  %v1666_v47 = vld [vmem:[%s2394_s5 + $0x18] ss:$12 sps:$4 sm:$0xff]  }
  0x9b   : > { %1516 = vrot.lane.b32.xlu1 %v1515_v52, %s1677_s17  ;;  %1511 = vrot.lane.b32.xlu0 %v1510_v53, %s1677_s17  ;;  %vm816_vm6 = vcmp.lt.s32.totalorder %v814_v46, 16  ;;  %v598_v23 = vrot.slane %v594_v45, %v1873_v14  ;;  %vm512_vm12 = vcmask 138240   ;;  %v1667_v49 = vld [vmem:[%s2394_s5 + $0x20] ss:$12 sps:$4 sm:$0xff]   ;;  %s2347_s17 = scalar_lea.vmem %s2396_s7, %s1778_s11 }
  0x9c   : > { %vm1976_vm1 = vmand %vm815_vm9, %vm816_vm6 }
  0x9d   : > { %vm1998_vm9 = vcmp.eq.s32.totalorder %v598_v23, 1  ;;  %vm872_vm6 = vmand %vm1976_vm1, %vm590_vm14  ;;  %vm2426_vm14 = vcmp.lt.s32.totalorder %v1842_v3, 16 }
  0x9f   : > { %1526 = vrot.lane.b32.xlu1 %v1505_v40, %s1678_s18  ;;  %1521 = vrot.lane.b32.xlu0 %v1500_v28, %s1678_s18 }
  0xa3   : > { %1536 = vrot.lane.b32.xlu1 %v1515_v52, %s1678_s18  ;;  %1531 = vrot.lane.b32.xlu0 %v1510_v53, %s1678_s18 }
  0xa7   : > { %1546 = vrot.lane.b32.xlu1 %v1505_v40, %s1679_s19  ;;  %1541 = vrot.lane.b32.xlu0 %v1500_v28, %s1679_s19 }
  0xab   : > { %1556 = vrot.lane.b32.xlu1 %v1515_v52, %s1679_s19  ;;  %1551 = vrot.lane.b32.xlu0 %v1510_v53, %s1679_s19 }
  0xaf   : > { %1566 = vrot.lane.b32.xlu1 %v1505_v40, %s1680_s20  ;;  %1561 = vrot.lane.b32.xlu0 %v1500_v28, %s1680_s20 }
  0xb3   : > { %1576 = vrot.lane.b32.xlu1 %v1515_v52, %s1680_s20  ;;  %1571 = vrot.lane.b32.xlu0 %v1510_v53, %s1680_s20  ;;  %s2354_s20 = scalar_lea.vmem %s2397_s8, %s1778_s11  ;;  %s1479_s11 = sshll.u32 %s2466_s14, 5 }
  0xb7   : > { %1586 = vrot.lane.b32.xlu1 %v1585_v57, %s1681_s21  ;;  %1581 = vrot.lane.b32.xlu0 %v1580_v58, %s1681_s21 }
  0xbb   : > { %1596 = vrot.lane.b32.xlu1 %v1595_v59, %s1681_s21  ;;  %1591 = vrot.lane.b32.xlu0 %v1590_v60, %s1681_s21 }
  0xbf   : > { %1606 = vrot.lane.b32.xlu1 %v1585_v57, %s1682_s22  ;;  %1601 = vrot.lane.b32.xlu0 %v1580_v58, %s1682_s22 }
  0xc3   : > { %1616 = vrot.lane.b32.xlu1 %v1595_v59, %s1682_s22  ;;  %1611 = vrot.lane.b32.xlu0 %v1590_v60, %s1682_s22 }
  0xc7   : > { %1626 = vrot.lane.b32.xlu1 %v1585_v57, %s1683_s23  ;;  %1621 = vrot.lane.b32.xlu0 %v1580_v58, %s1683_s23 }
  0xcb   : > { %1636 = vrot.lane.b32.xlu1 %v1595_v59, %s1683_s23  ;;  %1631 = vrot.lane.b32.xlu0 %v1590_v60, %s1683_s23  ;;  %s399_s23 = scalar_lea.vmem %s2398_s9, %s1479_s11 }
  0xcf   : > { %1646 = vrot.lane.b32.xlu1 %v1585_v57, %s1684_s26  ;;  %1641 = vrot.lane.b32.xlu0 %v1580_v58, %s1684_s26 }
  0xd3   : > { %1656 = vrot.lane.b32.xlu1 %v1595_v59, %s1684_s26  ;;  %1651 = vrot.lane.b32.xlu0 %v1590_v60, %s1684_s26  ;;  %s404_s26 = scalar_lea.vmem %s2399_s10, %s1479_s11 }
  0xd7   : > { %1002 = vperm.xlu1 %1499, %v992_v62   ;;  %997 = vperm.xlu0 %1498, %v991_v63  }
  0xdb   : > { %1012 = vperm.xlu1 %1499, %v994_v0   ;;  %1007 = vperm.xlu0 %1498, %v993_v1  }
 0x103   : > { %v1502_v15 = vpop.permute.xlu0 %1501 }
 0x104   : > { %v1504_v18 = vunpack.i.h.bf16 %v1502_v15  ;;  %v1503_v19 = vunpack.i.l.bf16 %v1502_v15 }
 0x106   : > { %v701_v28 = vsel %vm2401_vm15, 0.0, %v1503_v19  ;;  %v689_v30 = vsel %vm2401_vm15, %v1503_v19, %v1504_v18 }
 0x107   : > { %v1507_v20 = vpop.permute.xlu1 %1506 }
 0x108   : > { %v1509_v24 = vunpack.i.h.bf16 %v1507_v20  ;;  %v1508_v25 = vunpack.i.l.bf16 %v1507_v20 }
 0x10a   : > { %v702_v29 = vsel %vm2401_vm15, 0.0, %v1508_v25  ;;  %v690_v31 = vsel %vm2401_vm15, %v1508_v25, %v1509_v24 }
 0x10b   : > { %v1377_v32 = vpack.c.bf16 %v690_v31, %v689_v30  ;;  %v1380_v33 = vpack.c.bf16 %v702_v29, %v701_v28 }
 0x10d   : > { %1378 = vmatprep.subr.msk.bf16.mxu0 %vm1376_vm7, %v1377_v32  ;;  %v1517_v37 = vpop.permute.xlu1 %1516  ;;  %v1512_v38 = vpop.permute.xlu0 %1511 }
 0x10e   : > { %v1519_v40 = vunpack.i.h.bf16 %v1517_v37  ;;  %v1518_v41 = vunpack.i.l.bf16 %v1517_v37  ;;  %v1514_v42 = vunpack.i.h.bf16 %v1512_v38  ;;  %v1513_v43 = vunpack.i.l.bf16 %v1512_v38  ;;  %1381 = vmatpush1.bf16.msk.msra.mxu0 %vm1379_vm8, %v1380_v33 }
 0x110   : > { %v688_v52 = vsel %vm2401_vm15, %v1518_v41, %v1519_v40  ;;  %v700_v53 = vsel %vm2401_vm15, 0.0, %v1518_v41  ;;  %v687_v57 = vsel %vm2401_vm15, %v1513_v43, %v1514_v42  ;;  %v699_v58 = vsel %vm2401_vm15, 0.0, %v1513_v43  ;;  %vm1388_vm15 = vmpackc.low %vm1923_vm13, %vm1923_vm13 }
 0x111   : > { %v1383_v59 = vpack.c.bf16 %v688_v52, %v687_v57  ;;  %v1386_v60 = vpack.c.bf16 %v700_v53, %v699_v58  ;;  %v1527_v61 = vpop.permute.xlu1 %1526  ;;  %v1522_v62 = vpop.permute.xlu0 %1521  ;;  %v538_v42 = vsel %vm1970_vm0, 1, %v1676_v2  ;;  %vm1403_vm13 = vmpackc.low %vm1998_vm9, %vm1998_vm9  ;;  %vm855_vm9 = vcmask 916480  }
 0x112   : > { %v1529_v0 = vunpack.i.h.bf16 %v1527_v61  ;;  %v1528_v1 = vunpack.i.l.bf16 %v1527_v61  ;;  %v1524_v4 = vunpack.i.h.bf16 %v1522_v62  ;;  %v1523_v6 = vunpack.i.l.bf16 %v1522_v62  ;;  %vm2066_vm0 = vmand %vm1976_vm1, %vm534_vm2 }
 0x113   : > { %1384 = vmatprep.subr.msk.bf16.mxu0 %vm1376_vm7, %v1383_v59  ;;  %vm573_vm7 = vcmask 130048  }
 0x114   : > { %v633_v12 = vsel %vm629_vm5, %v1528_v1, %v1529_v0  ;;  %v645_v13 = vsel %vm629_vm5, 0.0, %v1528_v1  ;;  %v632_v15 = vsel %vm629_vm5, %v1523_v6, %v1524_v4  ;;  %v644_v16 = vsel %vm629_vm5, 0.0, %v1523_v6  ;;  %1387 = vmatpush1.bf16.msk.msra.mxu0 %vm1379_vm8, %v1386_v60 }
 0x115   : > { %v1389_v17 = vpack.c.bf16 %v633_v12, %v632_v15  ;;  %v1392_v18 = vpack.c.bf16 %v645_v13, %v644_v16  ;;  %v1537_v19 = vpop.permute.xlu1 %1536  ;;  %v1532_v20 = vpop.permute.xlu0 %1531  ;;  %vm1985_vm8 = vcmp.eq.s32.totalorder %v602_v9, 1  ;;  %v546_v0 = vrot.slane %v538_v42, %v1865_v11 }
 0x116   : > { %v1539_v25 = vunpack.i.h.bf16 %v1537_v19  ;;  %v1538_v26 = vunpack.i.l.bf16 %v1537_v19  ;;  %v1534_v27 = vunpack.i.h.bf16 %v1532_v20  ;;  %v1533_v28 = vunpack.i.l.bf16 %v1532_v20 }
 0x117   : > { %1390 = vmatprep.subr.msk.bf16.mxu0 %vm1388_vm15, %v1389_v17  ;;  %v542_v1 = vrot.slane %v538_v42, %v1873_v14  ;;  %vm2048_vm11 = vcmp.eq.s32.totalorder %v546_v0, 1 }
 0x118   : > { %v631_v31 = vsel %vm629_vm5, %v1538_v26, %v1539_v25  ;;  %v643_v32 = vsel %vm629_vm5, 0.0, %v1538_v26  ;;  %v630_v33 = vsel %vm629_vm5, %v1533_v28, %v1534_v27  ;;  %v642_v36 = vsel %vm629_vm5, 0.0, %v1533_v28  ;;  %1393 = vmatpush1.bf16.msk.msra.mxu0 %vm1391_vm10, %v1392_v18  ;;  %vm1400_vm5 = vmpackc.low %vm1985_vm8, %vm1985_vm8 }
 0x119   : > { %v1395_v37 = vpack.c.bf16 %v631_v31, %v630_v33  ;;  %v1398_v38 = vpack.c.bf16 %v643_v32, %v642_v36  ;;  %v1547_v39 = vpop.permute.xlu1 %1546  ;;  %v1542_v40 = vpop.permute.xlu0 %1541  ;;  %vm1412_vm2 = vmpackc.low %vm2048_vm11, %vm2048_vm11  ;;  %vm797_vm11 = vcmask 924672  }
 0x11a   : > { %v1549_v43 = vunpack.i.h.bf16 %v1547_v39  ;;  %v1548_v45 = vunpack.i.l.bf16 %v1547_v39  ;;  %v1544_v46 = vunpack.i.h.bf16 %v1542_v40  ;;  %v1543_v52 = vunpack.i.l.bf16 %v1542_v40  ;;  %vm819_vm8 = vmand %vm2066_vm0, %vm536_vm4 }
 0x11b   : > { %1396 = vmatprep.subr.msk.bf16.mxu0 %vm1388_vm15, %v1395_v37  ;;  %vm873_vm15 = vmand %vm872_vm6, %vm2426_vm14  ;;  %vm2435_vm4 = vcmp.ge.s32.totalorder %v1861_v10, 0 }
 0x11c   : > { %v577_v53 = vsel %vm573_vm7, %v1548_v45, %v1549_v43  ;;  %v589_v57 = vsel %vm573_vm7, 0.0, %v1548_v45  ;;  %v576_v58 = vsel %vm573_vm7, %v1543_v52, %v1544_v46  ;;  %v588_v59 = vsel %vm573_vm7, 0.0, %v1543_v52  ;;  %1399 = vmatpush1.bf16.msk.msra.mxu0 %vm1391_vm10, %v1398_v38 }
 0x11d   : > { %v1401_v44 = vpack.c.bf16 %v577_v53, %v576_v58  ;;  %v1404_v60 = vpack.c.bf16 %v589_v57, %v588_v59  ;;  %v1557_v61 = vpop.permute.xlu1 %1556  ;;  %v1552_v62 = vpop.permute.xlu0 %1551  ;;  %v874_v3 = vsel %vm873_vm15, 1, %v1676_v2  ;;  %vm2052_vm10 = vcmp.eq.s32.totalorder %v542_v1, 1 }
 0x11e   : > { %v1559_v4 = vunpack.i.h.bf16 %v1557_v61  ;;  %v1558_v6 = vunpack.i.l.bf16 %v1557_v61  ;;  %v1554_v63 = vunpack.i.h.bf16 %v1552_v62  ;;  %v1553_v8 = vunpack.i.l.bf16 %v1552_v62 }
 0x11f   : > { %1402 = vmatprep.subr.msk.bf16.mxu0 %vm1400_vm5, %v1401_v44  ;;  %v882_v28 = vrot.slane %v874_v3, %v1865_v11  ;;  %v878_v42 = vrot.slane %v874_v3, %v1873_v14  ;;  %v820_v1 = vsel %vm819_vm8, 1, %v1676_v2  ;;  %vm2440_vm15 = vcmp.lt.s32.totalorder %v1861_v10, 16 }
 0x120   : > { %v575_v9 = vsel %vm573_vm7, %v1558_v6, %v1559_v4  ;;  %v587_v12 = vsel %vm573_vm7, 0.0, %v1558_v6  ;;  %v574_v13 = vsel %vm573_vm7, %v1553_v8, %v1554_v63  ;;  %v586_v15 = vsel %vm573_vm7, 0.0, %v1553_v8  ;;  %1405 = vmatpush1.bf16.msk.msra.mxu0 %vm1403_vm13, %v1404_v60  ;;  %vm1415_vm7 = vmpackc.low %vm2052_vm10, %vm2052_vm10 }
 0x121   : > { %v1407_v16 = vpack.c.bf16 %v575_v9, %v574_v13  ;;  %v1410_v17 = vpack.c.bf16 %v587_v12, %v586_v15  ;;  %v1567_v18 = vpop.permute.xlu1 %1566  ;;  %v1562_v19 = vpop.permute.xlu0 %1561  ;;  %vm2095_vm6 = vcmp.eq.s32.totalorder %v882_v28, 1  ;;  %vm2116_vm14 = vcmp.eq.s32.totalorder %v878_v42, 1 }
 0x122   : > { %v1569_v24 = vunpack.i.h.bf16 %v1567_v18  ;;  %v1568_v25 = vunpack.i.l.bf16 %v1567_v18  ;;  %v1564_v26 = vunpack.i.h.bf16 %v1562_v19  ;;  %v1563_v27 = vunpack.i.l.bf16 %v1562_v19 }
 0x123   : > { %1408 = vmatprep.subr.msk.bf16.mxu0 %vm1400_vm5, %v1407_v16  ;;  %vm2112_vm5 = vmand %vm1851_vm3, %vm2435_vm4  ;;  %v828_v18 = vrot.slane %v820_v1, %v1865_v11  ;;  %v824_v19 = vrot.slane %v820_v1, %v1873_v14 }
 0x124   : > { %v516_v32 = vsel %vm512_vm12, %v1568_v25, %v1569_v24  ;;  %v528_v33 = vsel %vm512_vm12, 0.0, %v1568_v25  ;;  %v515_v36 = vsel %vm512_vm12, %v1563_v27, %v1564_v26  ;;  %v527_v30 = vsel %vm512_vm12, 0.0, %v1563_v27  ;;  %1411 = vmatpush1.bf16.msk.msra.mxu0 %vm1403_vm13, %v1410_v17  ;;  %vm1424_vm3 = vmpackc.low %vm2095_vm6, %vm2095_vm6 }
 0x125   : > { %v1413_v37 = vpack.c.bf16 %v516_v32, %v515_v36  ;;  %v1416_v38 = vpack.c.bf16 %v528_v33, %v527_v30  ;;  %v1577_v39 = vpop.permute.xlu1 %1576  ;;  %v1572_v40 = vpop.permute.xlu0 %1571  ;;  %vm761_vm13 = vmand %vm2112_vm5, %vm2440_vm15  ;;  %vm2162_vm10 = vcmp.eq.s32.totalorder %v828_v18, 1  ;;  %vm2166_vm0 = vcmp.eq.s32.totalorder %v824_v19, 1 }
 0x126   : > { %v1579_v43 = vunpack.i.h.bf16 %v1577_v39  ;;  %v1578_v45 = vunpack.i.l.bf16 %v1577_v39  ;;  %v1574_v46 = vunpack.i.h.bf16 %v1572_v40  ;;  %v1573_v41 = vunpack.i.l.bf16 %v1572_v40  ;;  %vm1439_vm8 = vmpackc.low %vm2166_vm0, %vm2166_vm0 }
 0x127   : > { %1414 = vmatprep.subr.msk.bf16.mxu0 %vm1412_vm2, %v1413_v37  ;;  %v762_v26 = vsel %vm761_vm13, 1, %v1676_v2  ;;  %vm909_vm13 = vcmask 908288  }
 0x128   : > { %v514_v53 = vsel %vm512_vm12, %v1578_v45, %v1579_v43  ;;  %v526_v57 = vsel %vm512_vm12, 0.0, %v1578_v45  ;;  %v513_v5 = vsel %vm512_vm12, %v1573_v41, %v1574_v46  ;;  %v525_v58 = vsel %vm512_vm12, 0.0, %v1573_v41  ;;  %1417 = vmatpush1.bf16.msk.msra.mxu0 %vm1415_vm7, %v1416_v38  ;;  %vm1427_vm12 = vmpackc.low %vm2116_vm14, %vm2116_vm14 }
 0x129   : > { %v1419_v44 = vpack.c.bf16 %v514_v53, %v513_v5  ;;  %v1422_v60 = vpack.c.bf16 %v526_v57, %v525_v58  ;;  %v1587_v61 = vpop.permute.xlu1 %1586  ;;  %v1582_v62 = vpop.permute.xlu0 %1581  ;;  %v770_v46 = vrot.slane %v762_v26, %v1865_v11 }
 0x12a   : > { %v1589_v4 = vunpack.i.h.bf16 %v1587_v61  ;;  %v1588_v6 = vunpack.i.l.bf16 %v1587_v61  ;;  %v1584_v63 = vunpack.i.h.bf16 %v1582_v62  ;;  %v1583_v8 = vunpack.i.l.bf16 %v1582_v62 }
 0x12b   : > { %1420 = vmatprep.subr.msk.bf16.mxu0 %vm1412_vm2, %v1419_v44  ;;  %vm2445_vm2 = vmmov %vm2435_vm4  ;;  %vm743_vm4 = vcmask 1039360   ;;  %vm2209_vm5 = vcmp.eq.s32.totalorder %v770_v46, 1 }
 0x12c   : > { %v859_v7 = vsel %vm855_vm9, %v1589_v4, %v1584_v63  ;;  %v871_v3 = vsel %vm855_vm9, %v1584_v63, 0.0  ;;  %v858_v9 = vsel %vm855_vm9, %v1588_v6, %v1583_v8  ;;  %v870_v12 = vsel %vm855_vm9, %v1583_v8, 0.0  ;;  %1423 = vmatpush1.bf16.msk.msra.mxu0 %vm1415_vm7, %v1422_v60  ;;  %vm2180_vm7 = vmand %vm1976_vm1, %vm2445_vm2 }
 0x12d   : > { %v1425_v13 = vpack.c.bf16 %v871_v3, %v870_v12  ;;  %v1428_v15 = vpack.c.bf16 %v859_v7, %v858_v9  ;;  %v1597_v16 = vpop.permute.xlu1 %1596  ;;  %v1592_v17 = vpop.permute.xlu0 %1591  ;;  %vm1436_vm1 = vmpackc.low %vm2162_vm10, %vm2162_vm10  ;;  %v766_v60 = vrot.slane %v762_v26, %v1873_v14  ;;  %vm1045_vm2 = vcmask 261120  }
 0x12e   : > { %v1599_v20 = vunpack.i.h.bf16 %v1597_v16  ;;  %v1598_v23 = vunpack.i.l.bf16 %v1597_v16  ;;  %v1594_v24 = vunpack.i.h.bf16 %v1592_v17  ;;  %v1593_v25 = vunpack.i.l.bf16 %v1592_v17 }
 0x12f   : > { %1426 = vmatprep.subr.msk.bf16.mxu0 %vm1424_vm3, %v1425_v13  ;;  %vm2222_vm14 = vcmp.eq.s32.totalorder %v766_v60, 1 }
 0x130   : > { %v857_v27 = vsel %vm855_vm9, %v1599_v20, %v1594_v24  ;;  %v869_v28 = vsel %vm855_vm9, %v1594_v24, 0.0  ;;  %v856_v31 = vsel %vm855_vm9, %v1598_v23, %v1593_v25  ;;  %v868_v32 = vsel %vm855_vm9, %v1593_v25, 0.0  ;;  %1429 = vmatpush2.bf16.msk.msra.mxu0 %vm1427_vm12, %v1428_v15  ;;  %vm2448_vm9 = vmmov %vm2440_vm15 }
 0x131   : > { %v1431_v33 = vpack.c.bf16 %v869_v28, %v868_v32  ;;  %v1434_v36 = vpack.c.bf16 %v857_v27, %v856_v31  ;;  %v1607_v30 = vpop.permute.xlu1 %1606  ;;  %v1602_v37 = vpop.permute.xlu0 %1601  ;;  %vm927_vm6 = vmand %vm2180_vm7, %vm2448_vm9  ;;  %vm2457_vm7 = vcmask 7168  }
 0x132   : > { %v1609_v40 = vunpack.i.h.bf16 %v1607_v30  ;;  %v1608_v42 = vunpack.i.l.bf16 %v1607_v30  ;;  %v1604_v43 = vunpack.i.h.bf16 %v1602_v37  ;;  %v1603_v45 = vunpack.i.l.bf16 %v1602_v37  ;;  %vm1451_vm15 = vmpackc.low %vm2222_vm14, %vm2222_vm14 }
 0x133   : > { %1432 = vmatprep.subr.msk.bf16.mxu0 %vm1424_vm3, %v1431_v33  ;;  %v928_v15 = vsel %vm927_vm6, 1, %v1676_v2  ;;  %vm1448_vm3 = vmpackc.low %vm2209_vm5, %vm2209_vm5 }
 0x134   : > { %v801_v53 = vsel %vm797_vm11, %v1609_v40, %v1604_v43  ;;  %v813_v57 = vsel %vm797_vm11, %v1604_v43, 0.0  ;;  %v800_v5 = vsel %vm797_vm11, %v1608_v42, %v1603_v45  ;;  %v812_v52 = vsel %vm797_vm11, %v1603_v45, 0.0  ;;  %1435 = vmatpush2.bf16.msk.msra.mxu0 %vm1427_vm12, %v1434_v36 }
 0x135   : > { %v1437_v29 = vpack.c.bf16 %v813_v57, %v812_v52  ;;  %v1440_v58 = vpack.c.bf16 %v801_v53, %v800_v5  ;;  %v1617_v59 = vpop.permute.xlu1 %1616  ;;  %v1612_v44 = vpop.permute.xlu0 %1611  ;;  %v936_v32 = vrot.slane %v928_v15, %v1865_v11  ;;  %v932_v33 = vrot.slane %v928_v15, %v1873_v14 }
 0x136   : > { %v1619_v61 = vunpack.i.h.bf16 %v1617_v59  ;;  %v1618_v62 = vunpack.i.l.bf16 %v1617_v59  ;;  %v1614_v1 = vunpack.i.h.bf16 %v1612_v44  ;;  %v1613_v0 = vunpack.i.l.bf16 %v1612_v44 }
 0x137   : > { %1438 = vmatprep.subr.msk.bf16.mxu0 %vm1436_vm1, %v1437_v29  ;;  %vm2263_vm12 = vcmp.eq.s32.totalorder %v936_v32, 1 }
 0x138   : > { %v799_v6 = vsel %vm797_vm11, %v1619_v61, %v1614_v1  ;;  %v811_v63 = vsel %vm797_vm11, %v1614_v1, 0.0  ;;  %v798_v10 = vsel %vm797_vm11, %v1618_v62, %v1613_v0  ;;  %v810_v8 = vsel %vm797_vm11, %v1613_v0, 0.0  ;;  %1441 = vmatpush2.bf16.msk.msra.mxu0 %vm1439_vm8, %v1440_v58  ;;  %vm1460_vm10 = vmpackc.low %vm2263_vm12, %vm2263_vm12 }
 0x139   : > { %v1443_v7 = vpack.c.bf16 %v811_v63, %v810_v8  ;;  %v1446_v3 = vpack.c.bf16 %v799_v6, %v798_v10  ;;  %v1627_v9 = vpop.permute.xlu1 %1626  ;;  %v1622_v12 = vpop.permute.xlu0 %1621  ;;  %vm2267_vm11 = vcmp.eq.s32.totalorder %v932_v33, 1 }
 0x13a   : > { %v1629_v16 = vunpack.i.h.bf16 %v1627_v9  ;;  %v1628_v17 = vunpack.i.l.bf16 %v1627_v9  ;;  %v1624_v18 = vunpack.i.h.bf16 %v1622_v12  ;;  %v1623_v19 = vunpack.i.l.bf16 %v1622_v12  ;;  %vm1463_vm0 = vmpackc.low %vm2267_vm11, %vm2267_vm11 }
 0x13b   : > { %1444 = vmatprep.subr.msk.bf16.mxu0 %vm1436_vm1, %v1443_v7  ;;  %vm2458_vm1 = vmmov %vm2457_vm7 }
 0x13c   : > { %v747_v20 = vsel %vm743_vm4, %v1629_v16, %v1624_v18  ;;  %v759_v23 = vsel %vm743_vm4, %v1624_v18, 0.0  ;;  %v746_v24 = vsel %vm743_vm4, %v1628_v17, %v1623_v19  ;;  %v758_v25 = vsel %vm743_vm4, %v1623_v19, 0.0  ;;  %1447 = vmatpush2.bf16.msk.msra.mxu0 %vm1439_vm8, %v1446_v3  ;;  %v1159_v17 = vld [vmem:[%s2347_s17 + $0x8] sm:$0xff]  ;;  %vm2459_vm8 = vmmov %vm2458_vm1 }
 0x13d   : > { %v1449_v26 = vpack.c.bf16 %v759_v23, %v758_v25  ;;  %v1452_v27 = vpack.c.bf16 %v747_v20, %v746_v24  ;;  %v1637_v28 = vpop.permute.xlu1 %1636  ;;  %v1632_v31 = vpop.permute.xlu0 %1631  ;;  %v1160_v25 = vld [vmem:[%s2347_s17 + $0x10] sm:$0xff]  ;;  %vm2460_vm9 = vmmov %vm2458_vm1 }
 0x13e   : > { %v1639_v36 = vunpack.i.h.bf16 %v1637_v28  ;;  %v1638_v30 = vunpack.i.l.bf16 %v1637_v28  ;;  %v1634_v37 = vunpack.i.h.bf16 %v1632_v31  ;;  %v1633_v38 = vunpack.i.l.bf16 %v1632_v31  ;;  %vm2461_vm6 = vmmov %vm2458_vm1 }
 0x13f   : > { %1450 = vmatprep.subr.msk.bf16.mxu0 %vm1448_vm3, %v1449_v26  ;;  %vm2463_vm5 = vmmov %vm2458_vm1 }
 0x140   : > { %v745_v39 = vsel %vm743_vm4, %v1639_v36, %v1634_v37  ;;  %v757_v40 = vsel %vm743_vm4, %v1634_v37, 0.0  ;;  %v744_v42 = vsel %vm743_vm4, %v1638_v30, %v1633_v38  ;;  %v756_v11 = vsel %vm743_vm4, %v1633_v38, 0.0  ;;  %1453 = vmatpush2.bf16.msk.msra.mxu0 %vm1451_vm15, %v1452_v27  ;;  %v1161_v36 = vld [vmem:[%s2347_s17 + $0x18] sm:$0xff]  ;;  %vm2462_vm4 = vmmov %vm2458_vm1 }
 0x141   : > { %v1455_v14 = vpack.c.bf16 %v757_v40, %v756_v11  ;;  %v1458_v43 = vpack.c.bf16 %v745_v39, %v744_v42  ;;  %v1647_v45 = vpop.permute.xlu1 %1646  ;;  %v1642_v46 = vpop.permute.xlu0 %1641  ;;  %v1162_v11 = vld [vmem:[%s2347_s17 + $0x20] sm:$0xff]  ;;  %vm2464_vm14 = vmmov %vm2458_vm1 }
 0x142   : > { %v1649_v57 = vunpack.i.h.bf16 %v1647_v45  ;;  %v1648_v5 = vunpack.i.l.bf16 %v1647_v45  ;;  %v1644_v52 = vunpack.i.h.bf16 %v1642_v46  ;;  %v1643_v29 = vunpack.i.l.bf16 %v1642_v46 }
 0x143   : > { %1456 = vmatprep.subr.msk.bf16.mxu0 %vm1448_vm3, %v1455_v14 }
 0x144   : > { %1459 = vmatpush2.bf16.msk.msra.mxu0 %vm1451_vm15, %v1458_v43  ;;  %v924_v58 = vsel %vm909_vm13, %v1643_v29, 0.0  ;;  %v925_v59 = vsel %vm909_vm13, %v1644_v52, 0.0  ;;  %v912_v44 = vsel %vm909_vm13, %v1648_v5, %v1643_v29  ;;  %v913_v60 = vsel %vm909_vm13, %v1649_v57, %v1644_v52  ;;  %v1163_v52 = vld [vmem:[%s2347_s17 + $0x28] sm:$0xff] }
 0x145   : > { %v1657_v61 = vpop.permute.xlu1 %1656  ;;  %v1652_v62 = vpop.permute.xlu0 %1651  ;;  %1080 = vmatprep.subr.bf16.mxu0 %v974_v51  ;;  %v1461_v1 = vpack.c.bf16 %v925_v59, %v924_v58  ;;  %v1464_v0 = vpack.c.bf16 %v913_v60, %v912_v44 }
 0x146   : > { %v1659_v4 = vunpack.i.h.bf16 %v1657_v61  ;;  %v1658_v6 = vunpack.i.l.bf16 %v1657_v61  ;;  %v1654_v63 = vunpack.i.h.bf16 %v1652_v62  ;;  %v1653_v10 = vunpack.i.l.bf16 %v1652_v62  ;;  %v1164_v62 = vld [vmem:[%s2347_s17 + $0x30] sm:$0xff] }
 0x147   : > { %1462 = vmatprep.subr.msk.bf16.mxu1 %vm1460_vm10, %v1461_v1 }
 0x148   : > { %v911_v8 = vsel %vm909_vm13, %v1659_v4, %v1654_v63  ;;  %v923_v22 = vsel %vm909_vm13, %v1654_v63, 0.0  ;;  %v910_v35 = vsel %vm909_vm13, %v1658_v6, %v1653_v10  ;;  %v922_v51 = vsel %vm909_vm13, %v1653_v10, 0.0  ;;  %1081 = vmatpush2.bf16.msra.mxu0 %v973_v54  ;;  %1465 = vmatpush1.bf16.msk.msra.mxu1 %vm1463_vm0, %v1464_v0 }
 0x149   : > { %v1467_v7 = vpack.c.bf16 %v923_v22, %v922_v51  ;;  %v1470_v3 = vpack.c.bf16 %v911_v8, %v910_v35  ;;  %1082 = vmatprep.subr.bf16.mxu0 %v972_v55  ;;  %v1165_v22 = vld [vmem:[%s2347_s17 + $0x38] sm:$0xff] }
 0x14b   : > { %1468 = vmatprep.subr.msk.bf16.mxu1 %vm1460_vm10, %v1467_v7 }
 0x14c   : > { %1083 = vmatpush2.bf16.msra.mxu0 %v971_v56  ;;  %1471 = vmatpush1.bf16.msk.msra.mxu1 %vm1463_vm0, %v1470_v3  ;;  %v1158_v56 = vld [vmem:[%s2347_s17] sm:$0xff] }
 0x14f   : > { %1085 = vmatmul.mubr.bf16.vlgmr.msra.gmra.mxu0 %v1660_v21  ;;  %1472 = vmatmul.mubr.msk.bf16.vlgmr.msra.gmra.mxu1 %vm1045_vm2, %v1663_v34 }
 0x150   : > { %1094 = vmatprep.mubr.bf16.mxu0 %v1664_v48  ;;  %1147 = vmatprep.mubr.bf16.mxu1 %v1676_v2 }
 0x152   : > { %v998_v50 = vpop.permute.xlu0 %997  ;;  %v1003_v13 = vpop.permute.xlu1 %1002 }
 0x156   : > { %v1008_v28 = vpop.permute.xlu0 %1007  ;;  %v1013_v41 = vpop.permute.xlu1 %1012 }
 0x157   : > { %1095 = vmatmul.mubr.bf16.gmra.mxu0 %v1666_v47  ;;  %1473 = vmatmul.mubr.msk.bf16.gmra.mxu1 %vm1045_vm2, %v1667_v49 }
 0x20f   : > { %v1086_v2 = vpop.f32.mrf.mxu0  ;;  %v1139_v54 = vpop.f32.mrf.mxu1 }
 0x210   : > { %v1087_v55 = vadd.f32 %v1086_v2, %v998_v50 }
 0x211   : > { %v1088_v9 = vpop.f32.mrf.mxu0  ;;  %v1141_v12 = vpop.f32.mrf.mxu1 }
 0x212   : > { %v1140_v15 = vadd.f32 %v1139_v54, %v1087_v55  ;;  %v1089_v16 = vadd.f32 %v1088_v9, %v998_v50 }
 0x213   : > { %v1090_v18 = vpop.f32.mrf.mxu0  ;;  %v1143_v19 = vpop.f32.mrf.mxu1 }
 0x214   : > { %v1166_v20 = vadd.f32 %v1158_v56, %v1140_v15  ;;  %v1142_v23 = vadd.f32 %v1141_v12, %v1089_v16  ;;  %v1091_v24 = vadd.f32 %v1090_v18, %v1003_v13 }
 0x215   : > { %v1092_v26 = vpop.f32.mrf.mxu0  ;;  %v1145_v27 = vpop.f32.mrf.mxu1 }
 0x216   : > { %1214 = vst [vmem:[%s2354_s20] sm:$0xff] %v1166_v20  ;;  %v1167_v31 = vadd.f32 %v1159_v17, %v1142_v23  ;;  %v1144_v32 = vadd.f32 %v1143_v19, %v1091_v24  ;;  %v1093_v33 = vadd.f32 %v1092_v26, %v1003_v13  ;;  %v1190_v45 = vmul.f32 %v1166_v20, %v1166_v20 }
 0x217   : > { %v1096_v30 = vpop.f32.mrf.mxu0  ;;  %v1149_v37 = vpop.f32.mrf.mxu1 }
 0x218   : > { %1215 = vst [vmem:[%s2354_s20 + $0x8] sm:$0xff] %v1167_v31  ;;  %v1168_v38 = vadd.f32 %v1160_v25, %v1144_v32  ;;  %v1146_v39 = vadd.f32 %v1145_v27, %v1093_v33  ;;  %v1097_v40 = vadd.f32 %v1096_v30, %v1008_v28  ;;  %v1174_v42 = vadd.f32 %v1167_v31, %v1166_v20 }
 0x219   : > { %v1098_v14 = vpop.f32.mrf.mxu0  ;;  %v1151_v43 = vpop.f32.mrf.mxu1  ;;  %v1191_v46 = vmul.f32 %v1167_v31, %v1167_v31 }
 0x21a   : > { %1216 = vst [vmem:[%s2354_s20 + $0x10] sm:$0xff] %v1168_v38  ;;  %v1169_v53 = vadd.f32 %v1161_v36, %v1146_v39  ;;  %v1150_v57 = vadd.f32 %v1149_v37, %v1097_v40  ;;  %v1099_v5 = vadd.f32 %v1098_v14, %v1008_v28  ;;  %1175 = vadd.xlane.f32.xlu0 %v1174_v42 }
 0x21b   : > { %v1100_v29 = vpop.f32.mrf.mxu0  ;;  %v1153_v58 = vpop.f32.mrf.mxu1  ;;  %v1198_v59 = vadd.f32 %v1191_v46, %v1190_v45  ;;  %v1192_v0 = vmul.f32 %v1168_v38, %v1168_v38 }
 0x21c   : > { %1217 = vst [vmem:[%s2354_s20 + $0x18] sm:$0xff] %v1169_v53  ;;  %v1170_v44 = vadd.f32 %v1162_v11, %v1150_v57  ;;  %v1152_v60 = vadd.f32 %v1151_v43, %v1099_v5  ;;  %v1101_v61 = vadd.f32 %v1100_v29, %v1013_v41  ;;  %v1193_v4 = vmul.f32 %v1169_v53, %v1169_v53 }
 0x21d   : > { %1199 = vadd.xlane.f32.xlu1 %v1198_v59  ;;  %v1102_v1 = vpop.f32.mrf.mxu0  ;;  %v1155_v8 = vpop.f32.mrf.mxu1  ;;  %v1177_v35 = vadd.f32 %v1169_v53, %v1168_v38 }
 0x21e   : > { %1218 = vst [vmem:[%s2354_s20 + $0x20] sm:$0xff] %v1170_v44  ;;  %v1171_v6 = vadd.f32 %v1163_v52, %v1152_v60  ;;  %v1154_v63 = vadd.f32 %v1153_v58, %v1101_v61  ;;  %v1103_v10 = vadd.f32 %v1102_v1, %v1013_v41  ;;  %v1201_v51 = vadd.f32 %v1193_v4, %v1192_v0 }
 0x21f   : > { %v1194_v21 = vmul.f32 %v1170_v44, %v1170_v44 }
 0x220   : > { %1219 = vst [vmem:[%s2354_s20 + $0x28] sm:$0xff] %v1171_v6  ;;  %v1172_v7 = vadd.f32 %v1164_v62, %v1154_v63  ;;  %v1156_v3 = vadd.f32 %v1155_v8, %v1103_v10  ;;  %v1195_v34 = vmul.f32 %v1171_v6, %v1171_v6  ;;  %1202 = vadd.xlane.f32.xlu0 %v1201_v51 }
 0x221   : > { %1178 = vadd.xlane.f32.xlu1 %v1177_v35  ;;  %v1180_v49 = vadd.f32 %v1171_v6, %v1170_v44 }
 0x222   : > { %1220 = vst [vmem:[%s2354_s20 + $0x30] sm:$0xff] %v1172_v7  ;;  %v1173_v48 = vadd.f32 %v1165_v22, %v1156_v3  ;;  %v1204_v47 = vadd.f32 %v1195_v34, %v1194_v21  ;;  %v1196_v54 = vmul.f32 %v1172_v7, %v1172_v7 }
 0x224   : > { %1221 = vst [vmem:[%s2354_s20 + $0x38] sm:$0xff] %v1173_v48  ;;  %1181 = vadd.xlane.f32.xlu0 %v1180_v49  ;;  %v1183_v50 = vadd.f32 %v1173_v48, %v1172_v7  ;;  %v1197_v2 = vmul.f32 %v1173_v48, %v1173_v48 }
 0x225   : > { %1205 = vadd.xlane.f32.xlu1 %v1204_v47 }
 0x226   : > { %v1207_v55 = vadd.f32 %v1197_v2, %v1196_v54 }
 0x228   : > { %1184 = vadd.xlane.f32.xlu0 %v1183_v50 }
 0x22c   : > { %1208 = vadd.xlane.f32.xlu0 %v1207_v55 }
 0x2a3   : > { %v1176_v56 = vpop.xlane.xlu0 %1175 }
 0x2a4   : > { %1186 = vst.msk [vmem:[%s399_s23] sm:$0xff] %vm2457_vm7, %v1176_v56 }
 0x2a6   : > { %v1200_v9 = vpop.xlane.xlu1 %1199 }
 0x2a7   : > { %1210 = vst.msk [vmem:[%s404_s26] sm:$0xff] %vm2458_vm1, %v1200_v9 }
 0x2a9   : > { %v1203_v13 = vpop.xlane.xlu0 %1202 }
 0x2aa   : > { %v1179_v12 = vpop.xlane.xlu1 %1178  ;;  %1211 = vst.msk [vmem:[%s404_s26 + $0x8] sm:$0xff] %vm2460_vm9, %v1203_v13 }
 0x2ab   : > { %1187 = vst.msk [vmem:[%s399_s23 + $0x8] sm:$0xff] %vm2459_vm8, %v1179_v12 }
 0x2ad   : > { %v1182_v16 = vpop.xlane.xlu0 %1181 }
 0x2ae   : > { %v1206_v15 = vpop.xlane.xlu1 %1205  ;;  %1188 = vst.msk [vmem:[%s399_s23 + $0x10] sm:$0xff] %vm2462_vm4, %v1182_v16 }
 0x2af   : > { %1212 = vst.msk [vmem:[%s404_s26 + $0x10] sm:$0xff] %vm2461_vm6, %v1206_v15 }
 0x2b1   : > { %v1185_v17 = vpop.xlane.xlu0 %1184 }
 0x2b2   : > { %1189 = vst.msk [vmem:[%s399_s23 + $0x18] sm:$0xff] %vm2463_vm5, %v1185_v17 }
 0x2b5   : > { %v1209_v18 = vpop.xlane.xlu0 %1208 }
 0x2b6   : > { %1213 = vst.msk [vmem:[%s404_s26 + $0x18] sm:$0xff] %vm2464_vm14, %v1209_v18 }
 0x2b7 PF: > { %s21_s13 = sadd.s32 1, %s1674_s13  }
 0x2b8   : > { %p18_p4 = scmp.ge.s32.totalorder %s21_s13, 4  }
 0x2ba   :  { %20 = sbr.rel (!%p18_p4) target bundleno = 1 (0x1), region = 109 }

// kernel: up_forward.8
= control target key start
LH: loop header
LB: loop body
LE: loop exit
PB: predicated region body
PF: predicated region fallthrough
CT: control target
= control target key end

     0   :  { %s1657_s30 = smov 0   ;;  %s2292_s0 = inlined_call_operand.vmem [shape: f32[2,32,256], index: 0, kind: input, shape index: {}]   ;;  %s2293_s1 = inlined_call_operand.vmem [shape: f32[32,1], index: 1, kind: input, shape index: {}]   ;;  %s2294_s2 = inlined_call_operand.vmem [shape: f32[32,1], index: 2, kind: input, shape index: {}]   ;;  %s2295_s3 = inlined_call_operand.vmem [shape: s32[1,256], index: 3, kind: input, shape index: {}]   ;;  %s2296_s4 = inlined_call_operand.vmem [shape: s32[1,256], index: 4, kind: input, shape index: {}]   ;;  %s2297_s5 = inlined_call_operand.vmem [shape: bf16[32,288], index: 5, kind: input, shape index: {}]   ;;  %s2298_s6 = inlined_call_operand.vmem [shape: f32[32,1], index: 6, kind: input, shape index: {}]   ;;  %s2299_s7 = inlined_call_operand.vmem [shape: f32[2,32,256], index: 7, kind: output, shape index: {0}]   ;;  %s2300_s8 = inlined_call_operand.vmem [shape: f32[2,32,1], index: 8, kind: output, shape index: {1}]   ;;  %s2301_s9 = inlined_call_operand.vmem [shape: f32[2,32,1], index: 9, kind: output, shape index: {2}]  }
   0x1 LB: > { %s1280_s10 = sadd.s32 4294967295, %s1596_s30   ;;  %p1284_p0 = scmp.ge.s32.totalorder %s1596_s30, 1  ;;  %s1596_s30 = sphi %s1657_s30, %s20_s30  }
   0x2   : > { %p292_p1 = scmp.lt.s32.totalorder %s1596_s30, 3 }
   0x4   : > { %p293_p2 = pnand %p1284_p0, %p292_p1 }
   0x5   : > { %p338_p3 = scmp.lt.s32.totalorder (!%p293_p2), %s1280_s10, 1  ;;  %s1599_s12 = smov (!%p293_p2), 1  }
   0x6   : > { %296 = sbr.rel (%p293_p2) target bundleno = 693 (0x2b5), region = 48  ;;  %s1600_s13 = smov (!%p293_p2), 15  }
   0x7   : > { %s1601_s14 = smov (!%p293_p2), 16   ;;  %s1602_s15 = smov (!%p293_p2), 17  }
   0x8   : > { %s1603_s16 = smov (!%p293_p2), 112   ;;  %s1604_s17 = smov (!%p293_p2), 113  }
   0x9   : > { %s1605_s18 = smov (!%p293_p2), 127   ;;  %s1606_s21 = smov (!%p293_p2), 111  }
   0xb   : > { %v401_v0 = vld [vmem:[%s2294_s2 + $0x10] sm:$0xff]  ;;  %v1598_v2 = vmov 0   ;;  %v402_v3 = vld [vmem:[%s2294_s2 + $0x18] sm:$0xff]  ;;  %v368_v5 = vld [vmem:[%s2293_s1 + $0x8] sm:$0xff]  ;;  %s2368_s10 = smov (!%p338_p3, %s1280_s10), 1  ;;  %vm2303_vm15 = vcmask 7168  }
   0xc   : > { %v369_v1 = vld [vmem:[%s2293_s1 + $0x10] sm:$0xff]  ;;  %1421 = vset.pattern.permute.xlu1 %v1598_v2  ;;  %1420 = vset.pattern.permute.xlu0 %v1598_v2  ;;  %v370_v4 = vld [vmem:[%s2293_s1 + $0x18] sm:$0xff]  ;;  %v367_v6 = vld [vmem:[%s2293_s1] sm:$0xff]  ;;  %s1399_s27 = sshll.u32 %s2368_s10, 6 }
   0xd   : > { %415 = vperm.xlu1 %1421, %v401_v0   ;;  %383 = vperm.xlu0 %1420, %v369_v1   ;;  %v400_v7 = vld [vmem:[%s2294_s2 + $0x8] sm:$0xff]  ;;  %v399_v8 = vld [vmem:[%s2294_s2] sm:$0xff]  ;;  %s342_s11 = scalar_lea.vmem %s2292_s0, %s1399_s27  ;;  %v947_v0 = vld [vmem:[%s2298_s6 + $0x18] sm:$0xff]  ;;  %s2264_s29 = scalar_lea.vmem %s2299_s7, %s1399_s27 }
   0xe   : > { %1090 = vmatprep.mubr.bf16.mxu1 %v1598_v2  ;;  %v363_v9 = vld [vmem:[%s342_s11 + $0x20] sm:$0xff]  ;;  %v364_v10 = vld [vmem:[%s342_s11 + $0x28] sm:$0xff]  ;;  %v365_v15 = vld [vmem:[%s342_s11 + $0x30] sm:$0xff]  ;;  %s1401_s27 = sshll.u32 %s2368_s10, 5 }
   0xf   : > { %v366_v16 = vld [vmem:[%s342_s11 + $0x38] sm:$0xff]  ;;  %v361_v27 = vld [vmem:[%s342_s11 + $0x10] sm:$0xff]  ;;  %v359_v32 = vld [vmem:[%s342_s11] sm:$0xff] }
  0x10   : > { %v362_v30 = vld [vmem:[%s342_s11 + $0x18] sm:$0xff]  ;;  %v360_v33 = vld [vmem:[%s342_s11 + $0x8] sm:$0xff]  ;;  %v1584_v61 = vld [vmem:[%s2297_s5 + $0x4] ss:$12 sps:$4 sm:$0xff]  }
  0x11   : > { %420 = vperm.xlu1 %1421, %v402_v3   ;;  %388 = vperm.xlu0 %1420, %v370_v4   ;;  %v945_v62 = vld [vmem:[%s2298_s6 + $0x8] sm:$0xff]  ;;  %v944_v63 = vld [vmem:[%s2298_s6] sm:$0xff]  ;;  %v946_v1 = vld [vmem:[%s2298_s6 + $0x10] sm:$0xff] }
  0x12   : > { %1037 = vmatprep.mubr.bf16.mxu0 %v1584_v61  ;;  %v1758_v3 = vld [vmem:[%s2296_s4] sm:$0x3] }
  0x13   : > { %v439_v4 = vld [vmem:[%s2295_s3] sm:$0x3]  ;;  %vm543_vm14 = vcmp.ge.s32.totalorder %v1758_v3, 0 }
  0x14   : > { %vm656_vm0 = vcmp.ge.s32.totalorder %v439_v4, 0  ;;  %vm657_vm1 = vcmp.lt.s32.totalorder %v439_v4, 16 }
  0x15   : > { %378 = vperm.xlu1 %1421, %v368_v5   ;;  %373 = vperm.xlu0 %1420, %v367_v6   ;;  %v1764_v5 = vadd.s32 4294967295, %v1758_v3  ;;  %v492_v6 = vlaneseq  ;;  %vm1767_vm3 = vmand %vm656_vm0, %vm657_vm1 }
  0x17   : > { %vm487_vm2 = vcmp.ge.s32.totalorder %v1764_v5, 0  ;;  %vm489_vm4 = vcmp.lt.s32.totalorder %v1764_v5, 16 }
  0x18   : > { %vm659_vm5 = vmand %vm1767_vm3, %vm487_vm2 }
  0x19   : > { %410 = vperm.xlu1 %1421, %v400_v7   ;;  %405 = vperm.xlu0 %1420, %v399_v8   ;;  %v482_v8 = vadd.s32 4294967295, %v439_v4  ;;  %vm660_vm8 = vmand %vm659_vm5, %vm489_vm4 }
  0x1b   : > { %vm483_vm6 = vcmp.ge.s32.totalorder %v482_v8, 0  ;;  %vm484_vm7 = vcmp.lt.s32.totalorder %v482_v8, 16 }
  0x1c   : > { %vm1784_vm10 = vmand %vm483_vm6, %vm484_vm7  ;;  %vm2305_vm6 = vcmp.lt.s32.totalorder %v1758_v3, 16 }
  0x1d   : > { %vm544_vm5 = vmand %vm1784_vm10, %vm543_vm14 }
  0x88   : > { %v416_v11 = vpop.permute.xlu1 %415  ;;  %v384_v12 = vpop.permute.xlu0 %383 }
  0x89   : > { %v395_v13 = vmul.f32 %v384_v12, %v363_v9  ;;  %v396_v14 = vmul.f32 %v384_v12, %v364_v10  ;;  %v493_v9 = vshrl.u32 %v492_v6, 7  ;;  %v1777_v10 = vadd.s32 1, %v1758_v3 }
  0x8b   : > { %v427_v17 = vadd.f32 %v416_v11, %v395_v13  ;;  %v428_v18 = vadd.f32 %v416_v11, %v396_v14  ;;  %v1781_v11 = vsub.s32 1, %v493_v9  ;;  %vm2304_vm9 = vcmp.ge.s32.totalorder %v1777_v10, 0 }
  0x8c   : > { %v421_v19 = vpop.permute.xlu1 %420  ;;  %v389_v20 = vpop.permute.xlu0 %388  ;;  %v661_v13 = vsel %vm660_vm8, 1, %v1598_v2  ;;  %v1789_v14 = vsub.s32 0, %v493_v9  ;;  %vm601_vm11 = vmand %vm1784_vm10, %vm2304_vm9  ;;  %vm2302_vm12 = vcmp.lt.s32.totalorder %v1777_v10, 16 }
  0x8d   : > { %v1700_v21 = vmax.f32 %v427_v17, 0.0  ;;  %v1702_v22 = vmax.f32 %v428_v18, 0.0  ;;  %v397_v23 = vmul.f32 %v389_v20, %v365_v15  ;;  %v398_v24 = vmul.f32 %v389_v20, %v366_v16  ;;  %vm603_vm13 = vmand %vm601_vm11, %vm2302_vm12 }
  0x8e   : > { %v669_v16 = vrot.slane %v661_v13, %v1781_v11  ;;  %v665_v17 = vrot.slane %v661_v13, %v1789_v14  ;;  %vm546_vm11 = vmand %vm544_vm5, %vm2305_vm6  ;;  %vm582_vm5 = vcmask 121856  }
  0x8f   : > { %v429_v25 = vadd.f32 %v421_v19, %v397_v23  ;;  %v430_v26 = vadd.f32 %v421_v19, %v398_v24  ;;  %v1422_v28 = vpack.i.bf16 %v1702_v22, %v1700_v21 }
  0x90   : > { %v379_v29 = vpop.permute.xlu1 %378  ;;  %v374_v31 = vpop.permute.xlu0 %373  ;;  %vm1801_vm0 = vcmp.eq.s32.totalorder %v669_v16, 1  ;;  %vm1805_vm1 = vcmp.eq.s32.totalorder %v665_v17, 1 }
  0x91   : > { %v1706_v34 = vmax.f32 %v429_v25, 0.0  ;;  %v1708_v35 = vmax.f32 %v430_v26, 0.0  ;;  %1423 = vrot.lane.b32.xlu0 %v1422_v28, %s1599_s12  ;;  %v393_v36 = vmul.f32 %v379_v29, %v361_v27  ;;  %v394_v37 = vmul.f32 %v379_v29, %v362_v30  ;;  %vm1299_vm7 = vmpackc.low %vm1801_vm0, %vm1801_vm0 }
  0x92   : > { %v391_v38 = vmul.f32 %v374_v31, %v359_v32  ;;  %v392_v39 = vmul.f32 %v374_v31, %v360_v33  ;;  %v604_v27 = vsel %vm603_vm13, 1, %v1598_v2  ;;  %vm1302_vm8 = vmpackc.low %vm1805_vm1, %vm1805_vm1 }
  0x93   : > { %v1427_v40 = vpack.i.bf16 %v1708_v35, %v1706_v34  ;;  %v927_v51 = vpack.c.bf16 %v1708_v35, %v1702_v22  ;;  %v926_v54 = vpack.c.bf16 %v1706_v34, %v1700_v21  ;;  %v1507_v57 = vpack.i.bf16 %v1706_v34, %v1700_v21  ;;  %v1582_v21 = vld [vmem:[%s2297_s5] ss:$12 sps:$4 sm:$0xff]   ;;  %v1585_v34 = vld [vmem:[%s2297_s5 + $0x8] ss:$12 sps:$4 sm:$0xff]  }
  0x94   : > { %v411_v41 = vpop.permute.xlu1 %410  ;;  %v406_v42 = vpop.permute.xlu0 %405  ;;  %v1502_v58 = vpack.i.bf16 %v1708_v35, %v1702_v22 }
  0x95   : > { %v425_v43 = vadd.f32 %v411_v41, %v393_v36  ;;  %v426_v44 = vadd.f32 %v411_v41, %v394_v37  ;;  %v423_v45 = vadd.f32 %v406_v42, %v391_v38  ;;  %v424_v46 = vadd.f32 %v406_v42, %v392_v39  ;;  %1428 = vrot.lane.b32.xlu1 %v1427_v40, %s1599_s12 }
  0x96   : > { %v612_v36 = vrot.slane %v604_v27, %v1781_v11  ;;  %v608_v39 = vrot.slane %v604_v27, %v1789_v14 }
  0x97   : > { %v1712_v47 = vmax.f32 %v425_v43, 0.0  ;;  %v1714_v48 = vmax.f32 %v426_v44, 0.0  ;;  %v1716_v49 = vmax.f32 %v423_v45, 0.0  ;;  %v1718_v50 = vmax.f32 %v424_v46, 0.0 }
  0x98   : > { %vm1839_vm13 = vcmp.eq.s32.totalorder %v612_v36, 1  ;;  %v547_v45 = vsel %vm546_vm11, 1, %v1598_v2  ;;  %v767_v46 = vadd.s32 1, %v439_v4  ;;  %vm1848_vm12 = vcmp.eq.s32.totalorder %v608_v39, 1  ;;  %vm1856_vm11 = vmand %vm1784_vm10, %vm487_vm2 }
  0x99   : > { %v1437_v52 = vpack.i.bf16 %v1714_v48, %v1712_v47  ;;  %v1432_v53 = vpack.i.bf16 %v1718_v50, %v1716_v49  ;;  %v925_v55 = vpack.c.bf16 %v1714_v48, %v1718_v50  ;;  %v924_v56 = vpack.c.bf16 %v1712_v47, %v1716_v49  ;;  %vm1314_vm10 = vmpackc.low %vm1848_vm12, %vm1848_vm12 }
  0x9a   : > { %v1517_v59 = vpack.i.bf16 %v1712_v47, %v1716_v49  ;;  %v1512_v60 = vpack.i.bf16 %v1714_v48, %v1718_v50  ;;  %v555_v9 = vrot.slane %v547_v45, %v1781_v11  ;;  %vm768_vm9 = vcmp.ge.s32.totalorder %v767_v46, 0  ;;  %vm1886_vm0 = vmand %vm1856_vm11, %vm489_vm4  ;;  %v1586_v48 = vld [vmem:[%s2297_s5 + $0x1c] ss:$12 sps:$4 sm:$0xff]   ;;  %v1588_v47 = vld [vmem:[%s2297_s5 + $0x18] ss:$12 sps:$4 sm:$0xff]  }
  0x9b   : > { %1438 = vrot.lane.b32.xlu1 %v1437_v52, %s1599_s12  ;;  %1433 = vrot.lane.b32.xlu0 %v1432_v53, %s1599_s12  ;;  %vm769_vm6 = vcmp.lt.s32.totalorder %v767_v46, 16  ;;  %v551_v23 = vrot.slane %v547_v45, %v1789_v14  ;;  %vm465_vm12 = vcmask 138240   ;;  %v1589_v49 = vld [vmem:[%s2297_s5 + $0x20] ss:$12 sps:$4 sm:$0xff]  }
  0x9c   : > { %vm1892_vm1 = vmand %vm768_vm9, %vm769_vm6 }
  0x9d   : > { %vm1914_vm9 = vcmp.eq.s32.totalorder %v551_v23, 1  ;;  %vm825_vm6 = vmand %vm1892_vm1, %vm543_vm14  ;;  %vm2328_vm14 = vcmp.lt.s32.totalorder %v1758_v3, 16 }
  0x9f   : > { %1448 = vrot.lane.b32.xlu1 %v1427_v40, %s1600_s13  ;;  %1443 = vrot.lane.b32.xlu0 %v1422_v28, %s1600_s13 }
  0xa3   : > { %1458 = vrot.lane.b32.xlu1 %v1437_v52, %s1600_s13  ;;  %1453 = vrot.lane.b32.xlu0 %v1432_v53, %s1600_s13  ;;  %s352_s13 = scalar_lea.vmem %s2300_s8, %s1401_s27 }
  0xa7   : > { %1468 = vrot.lane.b32.xlu1 %v1427_v40, %s1601_s14  ;;  %1463 = vrot.lane.b32.xlu0 %v1422_v28, %s1601_s14 }
  0xab   : > { %1478 = vrot.lane.b32.xlu1 %v1437_v52, %s1601_s14  ;;  %1473 = vrot.lane.b32.xlu0 %v1432_v53, %s1601_s14 }
  0xaf   : > { %1488 = vrot.lane.b32.xlu1 %v1427_v40, %s1602_s15  ;;  %1483 = vrot.lane.b32.xlu0 %v1422_v28, %s1602_s15 }
  0xb3   : > { %1498 = vrot.lane.b32.xlu1 %v1437_v52, %s1602_s15  ;;  %1493 = vrot.lane.b32.xlu0 %v1432_v53, %s1602_s15 }
  0xb7   : > { %1508 = vrot.lane.b32.xlu1 %v1507_v57, %s1603_s16  ;;  %1503 = vrot.lane.b32.xlu0 %v1502_v58, %s1603_s16 }
  0xbb   : > { %1518 = vrot.lane.b32.xlu1 %v1517_v59, %s1603_s16  ;;  %1513 = vrot.lane.b32.xlu0 %v1512_v60, %s1603_s16  ;;  %s357_s16 = scalar_lea.vmem %s2301_s9, %s1401_s27 }
  0xbf   : > { %1528 = vrot.lane.b32.xlu1 %v1507_v57, %s1604_s17  ;;  %1523 = vrot.lane.b32.xlu0 %v1502_v58, %s1604_s17 }
  0xc3   : > { %1538 = vrot.lane.b32.xlu1 %v1517_v59, %s1604_s17  ;;  %1533 = vrot.lane.b32.xlu0 %v1512_v60, %s1604_s17 }
  0xc7   : > { %1548 = vrot.lane.b32.xlu1 %v1507_v57, %s1605_s18  ;;  %1543 = vrot.lane.b32.xlu0 %v1502_v58, %s1605_s18 }
  0xcb   : > { %1558 = vrot.lane.b32.xlu1 %v1517_v59, %s1605_s18  ;;  %1553 = vrot.lane.b32.xlu0 %v1512_v60, %s1605_s18 }
  0xcf   : > { %1568 = vrot.lane.b32.xlu1 %v1507_v57, %s1606_s21  ;;  %1563 = vrot.lane.b32.xlu0 %v1502_v58, %s1606_s21 }
  0xd3   : > { %1578 = vrot.lane.b32.xlu1 %v1517_v59, %s1606_s21  ;;  %1573 = vrot.lane.b32.xlu0 %v1512_v60, %s1606_s21 }
  0xd7   : > { %955 = vperm.xlu1 %1421, %v945_v62   ;;  %950 = vperm.xlu0 %1420, %v944_v63  }
  0xdb   : > { %965 = vperm.xlu1 %1421, %v947_v0   ;;  %960 = vperm.xlu0 %1420, %v946_v1  }
 0x103   : > { %v1424_v15 = vpop.permute.xlu0 %1423 }
 0x104   : > { %v1426_v18 = vunpack.i.h.bf16 %v1424_v15  ;;  %v1425_v19 = vunpack.i.l.bf16 %v1424_v15 }
 0x106   : > { %v654_v28 = vsel %vm2303_vm15, 0.0, %v1425_v19  ;;  %v642_v30 = vsel %vm2303_vm15, %v1425_v19, %v1426_v18 }
 0x107   : > { %v1429_v20 = vpop.permute.xlu1 %1428 }
 0x108   : > { %v1431_v24 = vunpack.i.h.bf16 %v1429_v20  ;;  %v1430_v25 = vunpack.i.l.bf16 %v1429_v20 }
 0x10a   : > { %v655_v29 = vsel %vm2303_vm15, 0.0, %v1430_v25  ;;  %v643_v31 = vsel %vm2303_vm15, %v1430_v25, %v1431_v24 }
 0x10b   : > { %v1300_v32 = vpack.c.bf16 %v643_v31, %v642_v30  ;;  %v1303_v33 = vpack.c.bf16 %v655_v29, %v654_v28 }
 0x10d   : > { %1301 = vmatprep.subr.msk.bf16.mxu0 %vm1299_vm7, %v1300_v32  ;;  %v1439_v37 = vpop.permute.xlu1 %1438  ;;  %v1434_v38 = vpop.permute.xlu0 %1433 }
 0x10e   : > { %v1441_v40 = vunpack.i.h.bf16 %v1439_v37  ;;  %v1440_v41 = vunpack.i.l.bf16 %v1439_v37  ;;  %v1436_v42 = vunpack.i.h.bf16 %v1434_v38  ;;  %v1435_v43 = vunpack.i.l.bf16 %v1434_v38  ;;  %1304 = vmatpush1.bf16.msk.msra.mxu0 %vm1302_vm8, %v1303_v33 }
 0x110   : > { %v641_v52 = vsel %vm2303_vm15, %v1440_v41, %v1441_v40  ;;  %v653_v53 = vsel %vm2303_vm15, 0.0, %v1440_v41  ;;  %v640_v57 = vsel %vm2303_vm15, %v1435_v43, %v1436_v42  ;;  %v652_v58 = vsel %vm2303_vm15, 0.0, %v1435_v43  ;;  %vm1311_vm15 = vmpackc.low %vm1839_vm13, %vm1839_vm13 }
 0x111   : > { %v1306_v59 = vpack.c.bf16 %v641_v52, %v640_v57  ;;  %v1309_v60 = vpack.c.bf16 %v653_v53, %v652_v58  ;;  %v1449_v61 = vpop.permute.xlu1 %1448  ;;  %v1444_v62 = vpop.permute.xlu0 %1443  ;;  %v491_v42 = vsel %vm1886_vm0, 1, %v1598_v2  ;;  %vm1326_vm13 = vmpackc.low %vm1914_vm9, %vm1914_vm9  ;;  %vm808_vm9 = vcmask 916480  }
 0x112   : > { %v1451_v0 = vunpack.i.h.bf16 %v1449_v61  ;;  %v1450_v1 = vunpack.i.l.bf16 %v1449_v61  ;;  %v1446_v4 = vunpack.i.h.bf16 %v1444_v62  ;;  %v1445_v6 = vunpack.i.l.bf16 %v1444_v62  ;;  %vm1982_vm0 = vmand %vm1892_vm1, %vm487_vm2 }
 0x113   : > { %1307 = vmatprep.subr.msk.bf16.mxu0 %vm1299_vm7, %v1306_v59  ;;  %vm526_vm7 = vcmask 130048  }
 0x114   : > { %v586_v12 = vsel %vm582_vm5, %v1450_v1, %v1451_v0  ;;  %v598_v13 = vsel %vm582_vm5, 0.0, %v1450_v1  ;;  %v585_v15 = vsel %vm582_vm5, %v1445_v6, %v1446_v4  ;;  %v597_v16 = vsel %vm582_vm5, 0.0, %v1445_v6  ;;  %1310 = vmatpush1.bf16.msk.msra.mxu0 %vm1302_vm8, %v1309_v60 }
 0x115   : > { %v1312_v17 = vpack.c.bf16 %v586_v12, %v585_v15  ;;  %v1315_v18 = vpack.c.bf16 %v598_v13, %v597_v16  ;;  %v1459_v19 = vpop.permute.xlu1 %1458  ;;  %v1454_v20 = vpop.permute.xlu0 %1453  ;;  %vm1901_vm8 = vcmp.eq.s32.totalorder %v555_v9, 1  ;;  %v499_v0 = vrot.slane %v491_v42, %v1781_v11 }
 0x116   : > { %v1461_v25 = vunpack.i.h.bf16 %v1459_v19  ;;  %v1460_v26 = vunpack.i.l.bf16 %v1459_v19  ;;  %v1456_v27 = vunpack.i.h.bf16 %v1454_v20  ;;  %v1455_v28 = vunpack.i.l.bf16 %v1454_v20 }
 0x117   : > { %1313 = vmatprep.subr.msk.bf16.mxu0 %vm1311_vm15, %v1312_v17  ;;  %v495_v1 = vrot.slane %v491_v42, %v1789_v14  ;;  %vm1964_vm11 = vcmp.eq.s32.totalorder %v499_v0, 1 }
 0x118   : > { %v584_v31 = vsel %vm582_vm5, %v1460_v26, %v1461_v25  ;;  %v596_v32 = vsel %vm582_vm5, 0.0, %v1460_v26  ;;  %v583_v33 = vsel %vm582_vm5, %v1455_v28, %v1456_v27  ;;  %v595_v36 = vsel %vm582_vm5, 0.0, %v1455_v28  ;;  %1316 = vmatpush1.bf16.msk.msra.mxu0 %vm1314_vm10, %v1315_v18  ;;  %vm1323_vm5 = vmpackc.low %vm1901_vm8, %vm1901_vm8 }
 0x119   : > { %v1318_v37 = vpack.c.bf16 %v584_v31, %v583_v33  ;;  %v1321_v38 = vpack.c.bf16 %v596_v32, %v595_v36  ;;  %v1469_v39 = vpop.permute.xlu1 %1468  ;;  %v1464_v40 = vpop.permute.xlu0 %1463  ;;  %vm1335_vm2 = vmpackc.low %vm1964_vm11, %vm1964_vm11  ;;  %vm750_vm11 = vcmask 924672  }
 0x11a   : > { %v1471_v43 = vunpack.i.h.bf16 %v1469_v39  ;;  %v1470_v45 = vunpack.i.l.bf16 %v1469_v39  ;;  %v1466_v46 = vunpack.i.h.bf16 %v1464_v40  ;;  %v1465_v52 = vunpack.i.l.bf16 %v1464_v40  ;;  %vm772_vm8 = vmand %vm1982_vm0, %vm489_vm4 }
 0x11b   : > { %1319 = vmatprep.subr.msk.bf16.mxu0 %vm1311_vm15, %v1318_v37  ;;  %vm826_vm15 = vmand %vm825_vm6, %vm2328_vm14  ;;  %vm2337_vm4 = vcmp.ge.s32.totalorder %v1777_v10, 0 }
 0x11c   : > { %v530_v53 = vsel %vm526_vm7, %v1470_v45, %v1471_v43  ;;  %v542_v57 = vsel %vm526_vm7, 0.0, %v1470_v45  ;;  %v529_v58 = vsel %vm526_vm7, %v1465_v52, %v1466_v46  ;;  %v541_v59 = vsel %vm526_vm7, 0.0, %v1465_v52  ;;  %1322 = vmatpush1.bf16.msk.msra.mxu0 %vm1314_vm10, %v1321_v38 }
 0x11d   : > { %v1324_v44 = vpack.c.bf16 %v530_v53, %v529_v58  ;;  %v1327_v60 = vpack.c.bf16 %v542_v57, %v541_v59  ;;  %v1479_v61 = vpop.permute.xlu1 %1478  ;;  %v1474_v62 = vpop.permute.xlu0 %1473  ;;  %v827_v3 = vsel %vm826_vm15, 1, %v1598_v2  ;;  %vm1968_vm10 = vcmp.eq.s32.totalorder %v495_v1, 1 }
 0x11e   : > { %v1481_v4 = vunpack.i.h.bf16 %v1479_v61  ;;  %v1480_v6 = vunpack.i.l.bf16 %v1479_v61  ;;  %v1476_v63 = vunpack.i.h.bf16 %v1474_v62  ;;  %v1475_v8 = vunpack.i.l.bf16 %v1474_v62 }
 0x11f   : > { %1325 = vmatprep.subr.msk.bf16.mxu0 %vm1323_vm5, %v1324_v44  ;;  %v835_v28 = vrot.slane %v827_v3, %v1781_v11  ;;  %v831_v42 = vrot.slane %v827_v3, %v1789_v14  ;;  %v773_v1 = vsel %vm772_vm8, 1, %v1598_v2  ;;  %vm2342_vm15 = vcmp.lt.s32.totalorder %v1777_v10, 16 }
 0x120   : > { %v528_v9 = vsel %vm526_vm7, %v1480_v6, %v1481_v4  ;;  %v540_v12 = vsel %vm526_vm7, 0.0, %v1480_v6  ;;  %v527_v13 = vsel %vm526_vm7, %v1475_v8, %v1476_v63  ;;  %v539_v15 = vsel %vm526_vm7, 0.0, %v1475_v8  ;;  %1328 = vmatpush1.bf16.msk.msra.mxu0 %vm1326_vm13, %v1327_v60  ;;  %vm1338_vm7 = vmpackc.low %vm1968_vm10, %vm1968_vm10 }
 0x121   : > { %v1330_v16 = vpack.c.bf16 %v528_v9, %v527_v13  ;;  %v1333_v17 = vpack.c.bf16 %v540_v12, %v539_v15  ;;  %v1489_v18 = vpop.permute.xlu1 %1488  ;;  %v1484_v19 = vpop.permute.xlu0 %1483  ;;  %vm2011_vm6 = vcmp.eq.s32.totalorder %v835_v28, 1  ;;  %vm2032_vm14 = vcmp.eq.s32.totalorder %v831_v42, 1 }
 0x122   : > { %v1491_v24 = vunpack.i.h.bf16 %v1489_v18  ;;  %v1490_v25 = vunpack.i.l.bf16 %v1489_v18  ;;  %v1486_v26 = vunpack.i.h.bf16 %v1484_v19  ;;  %v1485_v27 = vunpack.i.l.bf16 %v1484_v19 }
 0x123   : > { %1331 = vmatprep.subr.msk.bf16.mxu0 %vm1323_vm5, %v1330_v16  ;;  %vm2028_vm5 = vmand %vm1767_vm3, %vm2337_vm4  ;;  %v781_v18 = vrot.slane %v773_v1, %v1781_v11  ;;  %v777_v19 = vrot.slane %v773_v1, %v1789_v14 }
 0x124   : > { %v469_v32 = vsel %vm465_vm12, %v1490_v25, %v1491_v24  ;;  %v481_v33 = vsel %vm465_vm12, 0.0, %v1490_v25  ;;  %v468_v36 = vsel %vm465_vm12, %v1485_v27, %v1486_v26  ;;  %v480_v30 = vsel %vm465_vm12, 0.0, %v1485_v27  ;;  %1334 = vmatpush1.bf16.msk.msra.mxu0 %vm1326_vm13, %v1333_v17  ;;  %vm1347_vm3 = vmpackc.low %vm2011_vm6, %vm2011_vm6 }
 0x125   : > { %v1336_v37 = vpack.c.bf16 %v469_v32, %v468_v36  ;;  %v1339_v38 = vpack.c.bf16 %v481_v33, %v480_v30  ;;  %v1499_v39 = vpop.permute.xlu1 %1498  ;;  %v1494_v40 = vpop.permute.xlu0 %1493  ;;  %vm714_vm13 = vmand %vm2028_vm5, %vm2342_vm15  ;;  %vm2078_vm10 = vcmp.eq.s32.totalorder %v781_v18, 1  ;;  %vm2082_vm0 = vcmp.eq.s32.totalorder %v777_v19, 1 }
 0x126   : > { %v1501_v43 = vunpack.i.h.bf16 %v1499_v39  ;;  %v1500_v45 = vunpack.i.l.bf16 %v1499_v39  ;;  %v1496_v46 = vunpack.i.h.bf16 %v1494_v40  ;;  %v1495_v41 = vunpack.i.l.bf16 %v1494_v40  ;;  %vm1362_vm8 = vmpackc.low %vm2082_vm0, %vm2082_vm0 }
 0x127   : > { %1337 = vmatprep.subr.msk.bf16.mxu0 %vm1335_vm2, %v1336_v37  ;;  %v715_v26 = vsel %vm714_vm13, 1, %v1598_v2  ;;  %vm862_vm13 = vcmask 908288  }
 0x128   : > { %v467_v53 = vsel %vm465_vm12, %v1500_v45, %v1501_v43  ;;  %v479_v57 = vsel %vm465_vm12, 0.0, %v1500_v45  ;;  %v466_v5 = vsel %vm465_vm12, %v1495_v41, %v1496_v46  ;;  %v478_v58 = vsel %vm465_vm12, 0.0, %v1495_v41  ;;  %1340 = vmatpush1.bf16.msk.msra.mxu0 %vm1338_vm7, %v1339_v38  ;;  %vm1350_vm12 = vmpackc.low %vm2032_vm14, %vm2032_vm14 }
 0x129   : > { %v1342_v44 = vpack.c.bf16 %v467_v53, %v466_v5  ;;  %v1345_v60 = vpack.c.bf16 %v479_v57, %v478_v58  ;;  %v1509_v61 = vpop.permute.xlu1 %1508  ;;  %v1504_v62 = vpop.permute.xlu0 %1503  ;;  %v723_v46 = vrot.slane %v715_v26, %v1781_v11 }
 0x12a   : > { %v1511_v4 = vunpack.i.h.bf16 %v1509_v61  ;;  %v1510_v6 = vunpack.i.l.bf16 %v1509_v61  ;;  %v1506_v63 = vunpack.i.h.bf16 %v1504_v62  ;;  %v1505_v8 = vunpack.i.l.bf16 %v1504_v62 }
 0x12b   : > { %1343 = vmatprep.subr.msk.bf16.mxu0 %vm1335_vm2, %v1342_v44  ;;  %vm2347_vm2 = vmmov %vm2337_vm4  ;;  %vm696_vm4 = vcmask 1039360   ;;  %vm2125_vm5 = vcmp.eq.s32.totalorder %v723_v46, 1 }
 0x12c   : > { %v812_v7 = vsel %vm808_vm9, %v1511_v4, %v1506_v63  ;;  %v824_v3 = vsel %vm808_vm9, %v1506_v63, 0.0  ;;  %v811_v9 = vsel %vm808_vm9, %v1510_v6, %v1505_v8  ;;  %v823_v12 = vsel %vm808_vm9, %v1505_v8, 0.0  ;;  %1346 = vmatpush1.bf16.msk.msra.mxu0 %vm1338_vm7, %v1345_v60  ;;  %vm2096_vm7 = vmand %vm1892_vm1, %vm2347_vm2 }
 0x12d   : > { %v1348_v13 = vpack.c.bf16 %v824_v3, %v823_v12  ;;  %v1351_v15 = vpack.c.bf16 %v812_v7, %v811_v9  ;;  %v1519_v16 = vpop.permute.xlu1 %1518  ;;  %v1514_v17 = vpop.permute.xlu0 %1513  ;;  %vm1359_vm1 = vmpackc.low %vm2078_vm10, %vm2078_vm10  ;;  %v719_v60 = vrot.slane %v715_v26, %v1789_v14  ;;  %vm998_vm2 = vcmask 261120  }
 0x12e   : > { %v1521_v20 = vunpack.i.h.bf16 %v1519_v16  ;;  %v1520_v23 = vunpack.i.l.bf16 %v1519_v16  ;;  %v1516_v24 = vunpack.i.h.bf16 %v1514_v17  ;;  %v1515_v25 = vunpack.i.l.bf16 %v1514_v17 }
 0x12f   : > { %1349 = vmatprep.subr.msk.bf16.mxu0 %vm1347_vm3, %v1348_v13  ;;  %vm2138_vm14 = vcmp.eq.s32.totalorder %v719_v60, 1 }
 0x130   : > { %v810_v27 = vsel %vm808_vm9, %v1521_v20, %v1516_v24  ;;  %v822_v28 = vsel %vm808_vm9, %v1516_v24, 0.0  ;;  %v809_v31 = vsel %vm808_vm9, %v1520_v23, %v1515_v25  ;;  %v821_v32 = vsel %vm808_vm9, %v1515_v25, 0.0  ;;  %1352 = vmatpush2.bf16.msk.msra.mxu0 %vm1350_vm12, %v1351_v15  ;;  %vm2350_vm9 = vmmov %vm2342_vm15 }
 0x131   : > { %v1354_v33 = vpack.c.bf16 %v822_v28, %v821_v32  ;;  %v1357_v36 = vpack.c.bf16 %v810_v27, %v809_v31  ;;  %v1529_v30 = vpop.permute.xlu1 %1528  ;;  %v1524_v37 = vpop.permute.xlu0 %1523  ;;  %vm880_vm6 = vmand %vm2096_vm7, %vm2350_vm9  ;;  %vm2359_vm7 = vcmask 7168  }
 0x132   : > { %v1531_v40 = vunpack.i.h.bf16 %v1529_v30  ;;  %v1530_v42 = vunpack.i.l.bf16 %v1529_v30  ;;  %v1526_v43 = vunpack.i.h.bf16 %v1524_v37  ;;  %v1525_v45 = vunpack.i.l.bf16 %v1524_v37  ;;  %vm1374_vm15 = vmpackc.low %vm2138_vm14, %vm2138_vm14 }
 0x133   : > { %1355 = vmatprep.subr.msk.bf16.mxu0 %vm1347_vm3, %v1354_v33  ;;  %v881_v15 = vsel %vm880_vm6, 1, %v1598_v2  ;;  %vm1371_vm3 = vmpackc.low %vm2125_vm5, %vm2125_vm5 }
 0x134   : > { %v754_v53 = vsel %vm750_vm11, %v1531_v40, %v1526_v43  ;;  %v766_v57 = vsel %vm750_vm11, %v1526_v43, 0.0  ;;  %v753_v5 = vsel %vm750_vm11, %v1530_v42, %v1525_v45  ;;  %v765_v52 = vsel %vm750_vm11, %v1525_v45, 0.0  ;;  %1358 = vmatpush2.bf16.msk.msra.mxu0 %vm1350_vm12, %v1357_v36 }
 0x135   : > { %v1360_v29 = vpack.c.bf16 %v766_v57, %v765_v52  ;;  %v1363_v58 = vpack.c.bf16 %v754_v53, %v753_v5  ;;  %v1539_v59 = vpop.permute.xlu1 %1538  ;;  %v1534_v44 = vpop.permute.xlu0 %1533  ;;  %v889_v32 = vrot.slane %v881_v15, %v1781_v11  ;;  %v885_v33 = vrot.slane %v881_v15, %v1789_v14 }
 0x136   : > { %v1541_v61 = vunpack.i.h.bf16 %v1539_v59  ;;  %v1540_v62 = vunpack.i.l.bf16 %v1539_v59  ;;  %v1536_v1 = vunpack.i.h.bf16 %v1534_v44  ;;  %v1535_v0 = vunpack.i.l.bf16 %v1534_v44 }
 0x137   : > { %1361 = vmatprep.subr.msk.bf16.mxu0 %vm1359_vm1, %v1360_v29  ;;  %vm2179_vm12 = vcmp.eq.s32.totalorder %v889_v32, 1 }
 0x138   : > { %v752_v6 = vsel %vm750_vm11, %v1541_v61, %v1536_v1  ;;  %v764_v63 = vsel %vm750_vm11, %v1536_v1, 0.0  ;;  %v751_v10 = vsel %vm750_vm11, %v1540_v62, %v1535_v0  ;;  %v763_v8 = vsel %vm750_vm11, %v1535_v0, 0.0  ;;  %1364 = vmatpush2.bf16.msk.msra.mxu0 %vm1362_vm8, %v1363_v58  ;;  %vm1383_vm10 = vmpackc.low %vm2179_vm12, %vm2179_vm12 }
 0x139   : > { %v1366_v7 = vpack.c.bf16 %v764_v63, %v763_v8  ;;  %v1369_v3 = vpack.c.bf16 %v752_v6, %v751_v10  ;;  %v1549_v9 = vpop.permute.xlu1 %1548  ;;  %v1544_v12 = vpop.permute.xlu0 %1543  ;;  %vm2183_vm11 = vcmp.eq.s32.totalorder %v885_v33, 1 }
 0x13a   : > { %v1551_v16 = vunpack.i.h.bf16 %v1549_v9  ;;  %v1550_v17 = vunpack.i.l.bf16 %v1549_v9  ;;  %v1546_v18 = vunpack.i.h.bf16 %v1544_v12  ;;  %v1545_v19 = vunpack.i.l.bf16 %v1544_v12  ;;  %vm1386_vm0 = vmpackc.low %vm2183_vm11, %vm2183_vm11 }
 0x13b   : > { %1367 = vmatprep.subr.msk.bf16.mxu0 %vm1359_vm1, %v1366_v7  ;;  %vm2360_vm1 = vmmov %vm2359_vm7 }
 0x13c   : > { %v700_v20 = vsel %vm696_vm4, %v1551_v16, %v1546_v18  ;;  %v712_v23 = vsel %vm696_vm4, %v1546_v18, 0.0  ;;  %v699_v24 = vsel %vm696_vm4, %v1550_v17, %v1545_v19  ;;  %v711_v25 = vsel %vm696_vm4, %v1545_v19, 0.0  ;;  %1370 = vmatpush2.bf16.msk.msra.mxu0 %vm1362_vm8, %v1369_v3  ;;  %vm2361_vm8 = vmmov %vm2360_vm1 }
 0x13d   : > { %v1372_v26 = vpack.c.bf16 %v712_v23, %v711_v25  ;;  %v1375_v27 = vpack.c.bf16 %v700_v20, %v699_v24  ;;  %v1559_v28 = vpop.permute.xlu1 %1558  ;;  %v1554_v31 = vpop.permute.xlu0 %1553  ;;  %vm2362_vm9 = vmmov %vm2360_vm1 }
 0x13e   : > { %v1561_v36 = vunpack.i.h.bf16 %v1559_v28  ;;  %v1560_v30 = vunpack.i.l.bf16 %v1559_v28  ;;  %v1556_v37 = vunpack.i.h.bf16 %v1554_v31  ;;  %v1555_v38 = vunpack.i.l.bf16 %v1554_v31  ;;  %vm2363_vm6 = vmmov %vm2360_vm1 }
 0x13f   : > { %1373 = vmatprep.subr.msk.bf16.mxu0 %vm1371_vm3, %v1372_v26  ;;  %vm2365_vm5 = vmmov %vm2360_vm1 }
 0x140   : > { %v698_v39 = vsel %vm696_vm4, %v1561_v36, %v1556_v37  ;;  %v710_v40 = vsel %vm696_vm4, %v1556_v37, 0.0  ;;  %v697_v42 = vsel %vm696_vm4, %v1560_v30, %v1555_v38  ;;  %v709_v11 = vsel %vm696_vm4, %v1555_v38, 0.0  ;;  %1376 = vmatpush2.bf16.msk.msra.mxu0 %vm1374_vm15, %v1375_v27  ;;  %vm2364_vm4 = vmmov %vm2360_vm1 }
 0x141   : > { %v1378_v14 = vpack.c.bf16 %v710_v40, %v709_v11  ;;  %v1381_v43 = vpack.c.bf16 %v698_v39, %v697_v42  ;;  %v1569_v45 = vpop.permute.xlu1 %1568  ;;  %v1564_v46 = vpop.permute.xlu0 %1563  ;;  %vm2366_vm14 = vmmov %vm2360_vm1 }
 0x142   : > { %v1571_v57 = vunpack.i.h.bf16 %v1569_v45  ;;  %v1570_v5 = vunpack.i.l.bf16 %v1569_v45  ;;  %v1566_v52 = vunpack.i.h.bf16 %v1564_v46  ;;  %v1565_v29 = vunpack.i.l.bf16 %v1564_v46 }
 0x143   : > { %1379 = vmatprep.subr.msk.bf16.mxu0 %vm1371_vm3, %v1378_v14 }
 0x144   : > { %1382 = vmatpush2.bf16.msk.msra.mxu0 %vm1374_vm15, %v1381_v43  ;;  %v877_v58 = vsel %vm862_vm13, %v1565_v29, 0.0  ;;  %v878_v59 = vsel %vm862_vm13, %v1566_v52, 0.0  ;;  %v865_v44 = vsel %vm862_vm13, %v1570_v5, %v1565_v29  ;;  %v866_v60 = vsel %vm862_vm13, %v1571_v57, %v1566_v52 }
 0x145   : > { %v1579_v61 = vpop.permute.xlu1 %1578  ;;  %v1574_v62 = vpop.permute.xlu0 %1573  ;;  %1033 = vmatprep.subr.bf16.mxu0 %v927_v51  ;;  %v1384_v1 = vpack.c.bf16 %v878_v59, %v877_v58  ;;  %v1387_v0 = vpack.c.bf16 %v866_v60, %v865_v44 }
 0x146   : > { %v1581_v4 = vunpack.i.h.bf16 %v1579_v61  ;;  %v1580_v6 = vunpack.i.l.bf16 %v1579_v61  ;;  %v1576_v63 = vunpack.i.h.bf16 %v1574_v62  ;;  %v1575_v10 = vunpack.i.l.bf16 %v1574_v62 }
 0x147   : > { %1385 = vmatprep.subr.msk.bf16.mxu1 %vm1383_vm10, %v1384_v1 }
 0x148   : > { %v864_v8 = vsel %vm862_vm13, %v1581_v4, %v1576_v63  ;;  %v876_v22 = vsel %vm862_vm13, %v1576_v63, 0.0  ;;  %v863_v35 = vsel %vm862_vm13, %v1580_v6, %v1575_v10  ;;  %v875_v51 = vsel %vm862_vm13, %v1575_v10, 0.0  ;;  %1034 = vmatpush2.bf16.msra.mxu0 %v926_v54  ;;  %1388 = vmatpush1.bf16.msk.msra.mxu1 %vm1386_vm0, %v1387_v0 }
 0x149   : > { %v1390_v7 = vpack.c.bf16 %v876_v22, %v875_v51  ;;  %v1393_v3 = vpack.c.bf16 %v864_v8, %v863_v35  ;;  %1035 = vmatprep.subr.bf16.mxu0 %v925_v55 }
 0x14b   : > { %1391 = vmatprep.subr.msk.bf16.mxu1 %vm1383_vm10, %v1390_v7 }
 0x14c   : > { %1036 = vmatpush2.bf16.msra.mxu0 %v924_v56  ;;  %1394 = vmatpush1.bf16.msk.msra.mxu1 %vm1386_vm0, %v1393_v3 }
 0x14f   : > { %1038 = vmatmul.mubr.bf16.vlgmr.msra.gmra.mxu0 %v1582_v21  ;;  %1395 = vmatmul.mubr.msk.bf16.vlgmr.msra.gmra.mxu1 %vm998_vm2, %v1585_v34 }
 0x150   : > { %1047 = vmatprep.mubr.bf16.mxu0 %v1586_v48  ;;  %1100 = vmatprep.mubr.bf16.mxu1 %v1598_v2 }
 0x152   : > { %v951_v50 = vpop.permute.xlu0 %950  ;;  %v956_v12 = vpop.permute.xlu1 %955 }
 0x156   : > { %v961_v25 = vpop.permute.xlu0 %960  ;;  %v966_v40 = vpop.permute.xlu1 %965 }
 0x157   : > { %1048 = vmatmul.mubr.bf16.gmra.mxu0 %v1588_v47  ;;  %1396 = vmatmul.mubr.msk.bf16.gmra.mxu1 %vm998_vm2, %v1589_v49 }
 0x20f   : > { %v1039_v54 = vpop.f32.mrf.mxu0  ;;  %v1092_v55 = vpop.f32.mrf.mxu1 }
 0x210   : > { %v1040_v56 = vadd.f32 %v1039_v54, %v951_v50 }
 0x211   : > { %v1041_v2 = vpop.f32.mrf.mxu0  ;;  %v1094_v9 = vpop.f32.mrf.mxu1 }
 0x212   : > { %v1093_v13 = vadd.f32 %v1092_v55, %v1040_v56  ;;  %v1042_v15 = vadd.f32 %v1041_v2, %v951_v50 }
 0x213   : > { %v1043_v16 = vpop.f32.mrf.mxu0  ;;  %v1096_v17 = vpop.f32.mrf.mxu1 }
 0x214   : > { %1151 = vst [vmem:[%s2264_s29] sm:$0xff] %v1093_v13  ;;  %v1095_v18 = vadd.f32 %v1094_v9, %v1042_v15  ;;  %v1044_v19 = vadd.f32 %v1043_v16, %v956_v12  ;;  %v1127_v24 = vmul.f32 %v1093_v13, %v1093_v13 }
 0x215   : > { %v1045_v20 = vpop.f32.mrf.mxu0  ;;  %v1098_v23 = vpop.f32.mrf.mxu1 }
 0x216   : > { %1152 = vst [vmem:[%s2264_s29 + $0x8] sm:$0xff] %v1095_v18  ;;  %v1097_v26 = vadd.f32 %v1096_v17, %v1044_v19  ;;  %v1046_v27 = vadd.f32 %v1045_v20, %v956_v12  ;;  %v1111_v28 = vadd.f32 %v1095_v18, %v1093_v13  ;;  %v1128_v31 = vmul.f32 %v1095_v18, %v1095_v18 }
 0x217   : > { %v1049_v32 = vpop.f32.mrf.mxu0  ;;  %v1102_v33 = vpop.f32.mrf.mxu1 }
 0x218   : > { %1153 = vst [vmem:[%s2264_s29 + $0x10] sm:$0xff] %v1097_v26  ;;  %v1099_v36 = vadd.f32 %v1098_v23, %v1046_v27  ;;  %v1050_v30 = vadd.f32 %v1049_v32, %v961_v25  ;;  %1112 = vadd.xlane.f32.xlu0 %v1111_v28  ;;  %v1135_v37 = vadd.f32 %v1128_v31, %v1127_v24 }
 0x219   : > { %v1051_v38 = vpop.f32.mrf.mxu0  ;;  %v1104_v39 = vpop.f32.mrf.mxu1  ;;  %v1129_v14 = vmul.f32 %v1097_v26, %v1097_v26 }
 0x21a   : > { %1154 = vst [vmem:[%s2264_s29 + $0x18] sm:$0xff] %v1099_v36  ;;  %v1103_v42 = vadd.f32 %v1102_v33, %v1050_v30  ;;  %v1052_v11 = vadd.f32 %v1051_v38, %v961_v25  ;;  %1136 = vadd.xlane.f32.xlu1 %v1135_v37  ;;  %v1130_v43 = vmul.f32 %v1099_v36, %v1099_v36 }
 0x21b   : > { %v1053_v45 = vpop.f32.mrf.mxu0  ;;  %v1106_v46 = vpop.f32.mrf.mxu1  ;;  %v1114_v57 = vadd.f32 %v1099_v36, %v1097_v26 }
 0x21c   : > { %1155 = vst [vmem:[%s2264_s29 + $0x20] sm:$0xff] %v1103_v42  ;;  %v1105_v41 = vadd.f32 %v1104_v39, %v1052_v11  ;;  %v1054_v53 = vadd.f32 %v1053_v45, %v966_v40  ;;  %v1138_v5 = vadd.f32 %v1130_v43, %v1129_v14  ;;  %v1131_v29 = vmul.f32 %v1103_v42, %v1103_v42 }
 0x21d   : > { %v1055_v52 = vpop.f32.mrf.mxu0  ;;  %v1108_v60 = vpop.f32.mrf.mxu1 }
 0x21e   : > { %1156 = vst [vmem:[%s2264_s29 + $0x28] sm:$0xff] %v1105_v41  ;;  %v1107_v58 = vadd.f32 %v1106_v46, %v1054_v53  ;;  %v1056_v59 = vadd.f32 %v1055_v52, %v966_v40  ;;  %1115 = vadd.xlane.f32.xlu1 %v1114_v57  ;;  %1139 = vadd.xlane.f32.xlu0 %v1138_v5 }
 0x21f   : > { %v1132_v44 = vmul.f32 %v1105_v41, %v1105_v41  ;;  %v1117_v1 = vadd.f32 %v1105_v41, %v1103_v42 }
 0x220   : > { %1157 = vst [vmem:[%s2264_s29 + $0x30] sm:$0xff] %v1107_v58  ;;  %v1109_v61 = vadd.f32 %v1108_v60, %v1056_v59  ;;  %v1133_v6 = vmul.f32 %v1107_v58, %v1107_v58 }
 0x221   : > { %v1141_v62 = vadd.f32 %v1132_v44, %v1131_v29 }
 0x222   : > { %1158 = vst [vmem:[%s2264_s29 + $0x38] sm:$0xff] %v1109_v61  ;;  %1118 = vadd.xlane.f32.xlu0 %v1117_v1  ;;  %v1120_v0 = vadd.f32 %v1109_v61, %v1107_v58  ;;  %v1134_v4 = vmul.f32 %v1109_v61, %v1109_v61 }
 0x223   : > { %1142 = vadd.xlane.f32.xlu1 %v1141_v62 }
 0x224   : > { %v1144_v63 = vadd.f32 %v1134_v4, %v1133_v6 }
 0x226   : > { %1121 = vadd.xlane.f32.xlu0 %v1120_v0 }
 0x22a   : > { %1145 = vadd.xlane.f32.xlu0 %v1144_v63 }
 0x2a1   : > { %v1113_v10 = vpop.xlane.xlu0 %1112 }
 0x2a2   : > { %1123 = vst.msk [vmem:[%s352_s13] sm:$0xff] %vm2359_vm7, %v1113_v10 }
 0x2a3   : > { %v1137_v8 = vpop.xlane.xlu1 %1136 }
 0x2a4   : > { %1147 = vst.msk [vmem:[%s357_s16] sm:$0xff] %vm2360_vm1, %v1137_v8 }
 0x2a7   : > { %v1116_v22 = vpop.xlane.xlu1 %1115  ;;  %v1140_v35 = vpop.xlane.xlu0 %1139 }
 0x2a8   : > { %1124 = vst.msk [vmem:[%s352_s13 + $0x8] sm:$0xff] %vm2361_vm8, %v1116_v22 }
 0x2a9   : > { %1148 = vst.msk [vmem:[%s357_s16 + $0x8] sm:$0xff] %vm2362_vm9, %v1140_v35 }
 0x2ab   : > { %v1119_v7 = vpop.xlane.xlu0 %1118 }
 0x2ac   : > { %v1143_v51 = vpop.xlane.xlu1 %1142  ;;  %1125 = vst.msk [vmem:[%s352_s13 + $0x10] sm:$0xff] %vm2364_vm4, %v1119_v7 }
 0x2ad   : > { %1149 = vst.msk [vmem:[%s357_s16 + $0x10] sm:$0xff] %vm2363_vm6, %v1143_v51 }
 0x2af   : > { %v1122_v3 = vpop.xlane.xlu0 %1121 }
 0x2b0   : > { %1126 = vst.msk [vmem:[%s352_s13 + $0x18] sm:$0xff] %vm2365_vm5, %v1122_v3 }
 0x2b3   : > { %v1146_v21 = vpop.xlane.xlu0 %1145 }
 0x2b4   : > { %1150 = vst.msk [vmem:[%s357_s16 + $0x18] sm:$0xff] %vm2366_vm14, %v1146_v21 }
 0x2b5 PF: > { %s20_s30 = sadd.s32 1, %s1596_s30  }
 0x2b6   : > { %p17_p4 = scmp.ge.s32.totalorder %s20_s30, 4  }
 0x2b8   :  { %19 = sbr.rel (!%p17_p4) target bundleno = 1 (0x1), region = 102 }

// kernel: up_forward.9
= control target key start
LH: loop header
LB: loop body
LE: loop exit
PB: predicated region body
PF: predicated region fallthrough
CT: control target
= control target key end

     0   :  { %s1539_s27 = smov 0   ;;  %s2170_s0 = inlined_call_operand.vmem [shape: f32[2,32,256], index: 0, kind: input, shape index: {}]   ;;  %s2171_s1 = inlined_call_operand.vmem [shape: f32[32,1], index: 1, kind: input, shape index: {}]   ;;  %s2172_s2 = inlined_call_operand.vmem [shape: f32[32,1], index: 2, kind: input, shape index: {}]   ;;  %s2173_s3 = inlined_call_operand.vmem [shape: s32[1,256], index: 3, kind: input, shape index: {}]   ;;  %s2174_s4 = inlined_call_operand.vmem [shape: s32[1,256], index: 4, kind: input, shape index: {}]   ;;  %s2175_s5 = inlined_call_operand.vmem [shape: bf16[32,288], index: 5, kind: input, shape index: {}]   ;;  %s2176_s6 = inlined_call_operand.vmem [shape: f32[32,1], index: 6, kind: input, shape index: {}]   ;;  %s2177_s7 = inlined_call_operand.vmem [shape: f32[2,32,256], index: 7, kind: input, shape index: {}]   ;;  %s2178_s8 = inlined_call_operand.vmem [shape: f32[2,32,256], index: 8, kind: output, shape index: {}]  }
   0x1 LB: > { %s1170_s28 = sadd.s32 4294967295, %s1483_s27   ;;  %p1174_p0 = scmp.ge.s32.totalorder %s1483_s27, 1  ;;  %s1483_s27 = sphi %s1539_s27, %s18_s27  }
   0x2   : > { %p272_p1 = scmp.lt.s32.totalorder %s1483_s27, 3 }
   0x4   : > { %p273_p2 = pnand %p1174_p0, %p272_p1 }
   0x5   : > { %p311_p3 = scmp.lt.s32.totalorder (!%p273_p2), %s1170_s28, 1  ;;  %s1487_s29 = smov (!%p273_p2), 15  }
   0x6   : > { %276 = sbr.rel (%p273_p2) target bundleno = 549 (0x225), region = 52  ;;  %s1488_s30 = smov (!%p273_p2), 16  }
   0x7   : > { %s1489_s9 = smov (!%p273_p2), 17   ;;  %s1490_s10 = smov (!%p273_p2), 112  }
   0x8   : > { %s1491_s11 = smov (!%p273_p2), 113   ;;  %s1492_s12 = smov (!%p273_p2), 127  }
   0x9   : > { %s1493_s15 = smov (!%p273_p2), 111  }
   0xb   : > { %v369_v0 = vld [vmem:[%s2172_s2 + $0x10] sm:$0xff]  ;;  %v1485_v2 = vmov 0   ;;  %v370_v3 = vld [vmem:[%s2172_s2 + $0x18] sm:$0xff]  ;;  %v336_v5 = vld [vmem:[%s2171_s1 + $0x8] sm:$0xff]  ;;  %s2236_s28 = smov (!%p311_p3, %s1170_s28), 1  ;;  %vm607_vm15 = vcmask 7168  }
   0xc   : > { %v337_v1 = vld [vmem:[%s2171_s1 + $0x10] sm:$0xff]  ;;  %1308 = vset.pattern.permute.xlu1 %v1485_v2  ;;  %1307 = vset.pattern.permute.xlu0 %v1485_v2  ;;  %v338_v4 = vld [vmem:[%s2171_s1 + $0x18] sm:$0xff]  ;;  %v335_v6 = vld [vmem:[%s2171_s1] sm:$0xff]  ;;  %s1574_s23 = sshll.u32 %s2236_s28, 6  ;;  %s1486_s28 = smov 1  }
   0xd   : > { %383 = vperm.xlu1 %1308, %v369_v0   ;;  %351 = vperm.xlu0 %1307, %v337_v1   ;;  %v368_v7 = vld [vmem:[%s2172_s2 + $0x8] sm:$0xff]  ;;  %v367_v8 = vld [vmem:[%s2172_s2] sm:$0xff]  ;;  %s315_s26 = scalar_lea.vmem %s2170_s0, %s1574_s23  ;;  %v915_v0 = vld [vmem:[%s2176_s6 + $0x18] sm:$0xff]  ;;  %s2143_s20 = scalar_lea.vmem %s2177_s7, %s1574_s23 }
   0xe   : > { %1058 = vmatprep.mubr.bf16.mxu1 %v1485_v2  ;;  %v331_v9 = vld [vmem:[%s315_s26 + $0x20] sm:$0xff]  ;;  %v332_v10 = vld [vmem:[%s315_s26 + $0x28] sm:$0xff]  ;;  %v333_v15 = vld [vmem:[%s315_s26 + $0x30] sm:$0xff]  ;;  %s2150_s24 = scalar_lea.vmem %s2178_s8, %s1574_s23 }
   0xf   : > { %v334_v16 = vld [vmem:[%s315_s26 + $0x38] sm:$0xff]  ;;  %v329_v27 = vld [vmem:[%s315_s26 + $0x10] sm:$0xff]  ;;  %v327_v32 = vld [vmem:[%s315_s26] sm:$0xff] }
  0x10   : > { %v330_v30 = vld [vmem:[%s315_s26 + $0x18] sm:$0xff]  ;;  %v328_v33 = vld [vmem:[%s315_s26 + $0x8] sm:$0xff]  ;;  %v1471_v61 = vld [vmem:[%s2175_s5 + $0x4] ss:$12 sps:$4 sm:$0xff]  }
  0x11   : > { %388 = vperm.xlu1 %1308, %v370_v3   ;;  %356 = vperm.xlu0 %1307, %v338_v4   ;;  %v913_v62 = vld [vmem:[%s2176_s6 + $0x8] sm:$0xff]  ;;  %v912_v63 = vld [vmem:[%s2176_s6] sm:$0xff]  ;;  %v914_v1 = vld [vmem:[%s2176_s6 + $0x10] sm:$0xff] }
  0x12   : > { %1005 = vmatprep.mubr.bf16.mxu0 %v1471_v61  ;;  %v1638_v3 = vld [vmem:[%s2174_s4] sm:$0x3] }
  0x13   : > { %v407_v4 = vld [vmem:[%s2173_s3] sm:$0x3]  ;;  %vm511_vm14 = vcmp.ge.s32.totalorder %v1638_v3, 0 }
  0x14   : > { %vm624_vm0 = vcmp.ge.s32.totalorder %v407_v4, 0  ;;  %vm625_vm1 = vcmp.lt.s32.totalorder %v407_v4, 16 }
  0x15   : > { %346 = vperm.xlu1 %1308, %v336_v5   ;;  %341 = vperm.xlu0 %1307, %v335_v6   ;;  %v1644_v5 = vadd.s32 4294967295, %v1638_v3  ;;  %v460_v6 = vlaneseq  ;;  %vm1647_vm3 = vmand %vm624_vm0, %vm625_vm1 }
  0x17   : > { %vm455_vm2 = vcmp.ge.s32.totalorder %v1644_v5, 0  ;;  %vm457_vm4 = vcmp.lt.s32.totalorder %v1644_v5, 16 }
  0x18   : > { %vm627_vm5 = vmand %vm1647_vm3, %vm455_vm2 }
  0x19   : > { %378 = vperm.xlu1 %1308, %v368_v7   ;;  %373 = vperm.xlu0 %1307, %v367_v8   ;;  %v450_v8 = vadd.s32 4294967295, %v407_v4  ;;  %vm628_vm8 = vmand %vm627_vm5, %vm457_vm4 }
  0x1b   : > { %vm451_vm6 = vcmp.ge.s32.totalorder %v450_v8, 0  ;;  %vm452_vm7 = vcmp.lt.s32.totalorder %v450_v8, 16 }
  0x1c   : > { %vm1664_vm10 = vmand %vm451_vm6, %vm452_vm7  ;;  %vm2181_vm6 = vcmp.lt.s32.totalorder %v1638_v3, 16 }
  0x1d   : > { %vm512_vm5 = vmand %vm1664_vm10, %vm511_vm14 }
  0x88   : > { %v384_v11 = vpop.permute.xlu1 %383  ;;  %v352_v12 = vpop.permute.xlu0 %351 }
  0x89   : > { %v363_v13 = vmul.f32 %v352_v12, %v331_v9  ;;  %v364_v14 = vmul.f32 %v352_v12, %v332_v10  ;;  %v461_v9 = vshrl.u32 %v460_v6, 7  ;;  %v1657_v10 = vadd.s32 1, %v1638_v3 }
  0x8b   : > { %v395_v17 = vadd.f32 %v384_v11, %v363_v13  ;;  %v396_v18 = vadd.f32 %v384_v11, %v364_v14  ;;  %v1661_v11 = vsub.s32 1, %v461_v9  ;;  %vm2180_vm9 = vcmp.ge.s32.totalorder %v1657_v10, 0 }
  0x8c   : > { %v389_v19 = vpop.permute.xlu1 %388  ;;  %v357_v20 = vpop.permute.xlu0 %356  ;;  %v629_v13 = vsel %vm628_vm8, 1, %v1485_v2  ;;  %v1669_v14 = vsub.s32 0, %v461_v9  ;;  %vm569_vm11 = vmand %vm1664_vm10, %vm2180_vm9  ;;  %vm2179_vm12 = vcmp.lt.s32.totalorder %v1657_v10, 16 }
  0x8d   : > { %v1580_v21 = vmax.f32 %v395_v17, 0.0  ;;  %v1582_v22 = vmax.f32 %v396_v18, 0.0  ;;  %v365_v23 = vmul.f32 %v357_v20, %v333_v15  ;;  %v366_v24 = vmul.f32 %v357_v20, %v334_v16  ;;  %vm571_vm13 = vmand %vm569_vm11, %vm2179_vm12 }
  0x8e   : > { %v637_v16 = vrot.slane %v629_v13, %v1661_v11  ;;  %v633_v17 = vrot.slane %v629_v13, %v1669_v14  ;;  %vm514_vm11 = vmand %vm512_vm5, %vm2181_vm6  ;;  %vm550_vm5 = vcmask 121856  }
  0x8f   : > { %v397_v25 = vadd.f32 %v389_v19, %v365_v23  ;;  %v398_v26 = vadd.f32 %v389_v19, %v366_v24  ;;  %v1309_v28 = vpack.i.bf16 %v1582_v22, %v1580_v21 }
  0x90   : > { %v347_v29 = vpop.permute.xlu1 %346  ;;  %v342_v31 = vpop.permute.xlu0 %341  ;;  %vm1681_vm0 = vcmp.eq.s32.totalorder %v637_v16, 1  ;;  %vm1685_vm1 = vcmp.eq.s32.totalorder %v633_v17, 1 }
  0x91   : > { %v1586_v34 = vmax.f32 %v397_v25, 0.0  ;;  %v1588_v35 = vmax.f32 %v398_v26, 0.0  ;;  %1310 = vrot.lane.b32.xlu0 %v1309_v28, %s1486_s28  ;;  %v361_v36 = vmul.f32 %v347_v29, %v329_v27  ;;  %v362_v37 = vmul.f32 %v347_v29, %v330_v30  ;;  %vm1187_vm7 = vmpackc.low %vm1681_vm0, %vm1681_vm0 }
  0x92   : > { %v359_v38 = vmul.f32 %v342_v31, %v327_v32  ;;  %v360_v39 = vmul.f32 %v342_v31, %v328_v33  ;;  %v572_v27 = vsel %vm571_vm13, 1, %v1485_v2  ;;  %vm1190_vm8 = vmpackc.low %vm1685_vm1, %vm1685_vm1 }
  0x93   : > { %v1314_v40 = vpack.i.bf16 %v1588_v35, %v1586_v34  ;;  %v895_v51 = vpack.c.bf16 %v1588_v35, %v1582_v22  ;;  %v894_v54 = vpack.c.bf16 %v1586_v34, %v1580_v21  ;;  %v1394_v57 = vpack.i.bf16 %v1586_v34, %v1580_v21  ;;  %v1469_v21 = vld [vmem:[%s2175_s5] ss:$12 sps:$4 sm:$0xff]   ;;  %v1472_v34 = vld [vmem:[%s2175_s5 + $0x8] ss:$12 sps:$4 sm:$0xff]  }
  0x94   : > { %v379_v41 = vpop.permute.xlu1 %378  ;;  %v374_v42 = vpop.permute.xlu0 %373  ;;  %v1389_v58 = vpack.i.bf16 %v1588_v35, %v1582_v22 }
  0x95   : > { %v393_v43 = vadd.f32 %v379_v41, %v361_v36  ;;  %v394_v44 = vadd.f32 %v379_v41, %v362_v37  ;;  %v391_v45 = vadd.f32 %v374_v42, %v359_v38  ;;  %v392_v46 = vadd.f32 %v374_v42, %v360_v39  ;;  %1315 = vrot.lane.b32.xlu1 %v1314_v40, %s1486_s28 }
  0x96   : > { %v580_v36 = vrot.slane %v572_v27, %v1661_v11  ;;  %v576_v39 = vrot.slane %v572_v27, %v1669_v14 }
  0x97   : > { %v1592_v47 = vmax.f32 %v393_v43, 0.0  ;;  %v1594_v48 = vmax.f32 %v394_v44, 0.0  ;;  %v1596_v49 = vmax.f32 %v391_v45, 0.0  ;;  %v1598_v50 = vmax.f32 %v392_v46, 0.0 }
  0x98   : > { %vm1719_vm13 = vcmp.eq.s32.totalorder %v580_v36, 1  ;;  %v515_v45 = vsel %vm514_vm11, 1, %v1485_v2  ;;  %v735_v46 = vadd.s32 1, %v407_v4  ;;  %vm1728_vm12 = vcmp.eq.s32.totalorder %v576_v39, 1  ;;  %vm1736_vm11 = vmand %vm1664_vm10, %vm455_vm2 }
  0x99   : > { %v1324_v52 = vpack.i.bf16 %v1594_v48, %v1592_v47  ;;  %v1319_v53 = vpack.i.bf16 %v1598_v50, %v1596_v49  ;;  %v893_v55 = vpack.c.bf16 %v1594_v48, %v1598_v50  ;;  %v892_v56 = vpack.c.bf16 %v1592_v47, %v1596_v49  ;;  %vm1202_vm10 = vmpackc.low %vm1728_vm12, %vm1728_vm12 }
  0x9a   : > { %v1404_v59 = vpack.i.bf16 %v1592_v47, %v1596_v49  ;;  %v1399_v60 = vpack.i.bf16 %v1594_v48, %v1598_v50  ;;  %v523_v9 = vrot.slane %v515_v45, %v1661_v11  ;;  %vm736_vm9 = vcmp.ge.s32.totalorder %v735_v46, 0  ;;  %vm1766_vm0 = vmand %vm1736_vm11, %vm457_vm4  ;;  %v1473_v48 = vld [vmem:[%s2175_s5 + $0x1c] ss:$12 sps:$4 sm:$0xff]   ;;  %v1475_v47 = vld [vmem:[%s2175_s5 + $0x18] ss:$12 sps:$4 sm:$0xff]  }
  0x9b   : > { %1325 = vrot.lane.b32.xlu1 %v1324_v52, %s1486_s28  ;;  %1320 = vrot.lane.b32.xlu0 %v1319_v53, %s1486_s28  ;;  %vm737_vm6 = vcmp.lt.s32.totalorder %v735_v46, 16  ;;  %v519_v23 = vrot.slane %v515_v45, %v1669_v14  ;;  %vm433_vm12 = vcmask 138240   ;;  %v1476_v49 = vld [vmem:[%s2175_s5 + $0x20] ss:$12 sps:$4 sm:$0xff]  }
  0x9c   : > { %vm1772_vm1 = vmand %vm736_vm9, %vm737_vm6 }
  0x9d   : > { %vm1794_vm9 = vcmp.eq.s32.totalorder %v519_v23, 1  ;;  %vm793_vm6 = vmand %vm1772_vm1, %vm511_vm14  ;;  %vm2204_vm14 = vcmp.lt.s32.totalorder %v1638_v3, 16 }
  0x9e   : > { %vm1214_vm11 = vmpackc.low %vm1794_vm9, %vm1794_vm9  ;;  %vm776_vm9 = vcmask 916480  }
  0x9f   : > { %1335 = vrot.lane.b32.xlu1 %v1314_v40, %s1487_s29  ;;  %1330 = vrot.lane.b32.xlu0 %v1309_v28, %s1487_s29 }
  0xa3   : > { %1345 = vrot.lane.b32.xlu1 %v1324_v52, %s1487_s29  ;;  %1340 = vrot.lane.b32.xlu0 %v1319_v53, %s1487_s29 }
  0xa7   : > { %1355 = vrot.lane.b32.xlu1 %v1314_v40, %s1488_s30  ;;  %1350 = vrot.lane.b32.xlu0 %v1309_v28, %s1488_s30 }
  0xab   : > { %1365 = vrot.lane.b32.xlu1 %v1324_v52, %s1488_s30  ;;  %1360 = vrot.lane.b32.xlu0 %v1319_v53, %s1488_s30 }
  0xaf   : > { %1375 = vrot.lane.b32.xlu1 %v1314_v40, %s1489_s9  ;;  %1370 = vrot.lane.b32.xlu0 %v1309_v28, %s1489_s9 }
  0xb3   : > { %1385 = vrot.lane.b32.xlu1 %v1324_v52, %s1489_s9  ;;  %1380 = vrot.lane.b32.xlu0 %v1319_v53, %s1489_s9 }
  0xb7   : > { %1395 = vrot.lane.b32.xlu1 %v1394_v57, %s1490_s10  ;;  %1390 = vrot.lane.b32.xlu0 %v1389_v58, %s1490_s10 }
  0xbb   : > { %1405 = vrot.lane.b32.xlu1 %v1404_v59, %s1490_s10  ;;  %1400 = vrot.lane.b32.xlu0 %v1399_v60, %s1490_s10 }
  0xbf   : > { %1415 = vrot.lane.b32.xlu1 %v1394_v57, %s1491_s11  ;;  %1410 = vrot.lane.b32.xlu0 %v1389_v58, %s1491_s11 }
  0xc3   : > { %1425 = vrot.lane.b32.xlu1 %v1404_v59, %s1491_s11  ;;  %1420 = vrot.lane.b32.xlu0 %v1399_v60, %s1491_s11 }
  0xc7   : > { %1435 = vrot.lane.b32.xlu1 %v1394_v57, %s1492_s12  ;;  %1430 = vrot.lane.b32.xlu0 %v1389_v58, %s1492_s12 }
  0xcb   : > { %1445 = vrot.lane.b32.xlu1 %v1404_v59, %s1492_s12  ;;  %1440 = vrot.lane.b32.xlu0 %v1399_v60, %s1492_s12 }
  0xcf   : > { %1455 = vrot.lane.b32.xlu1 %v1394_v57, %s1493_s15  ;;  %1450 = vrot.lane.b32.xlu0 %v1389_v58, %s1493_s15 }
  0xd3   : > { %1465 = vrot.lane.b32.xlu1 %v1404_v59, %s1493_s15  ;;  %1460 = vrot.lane.b32.xlu0 %v1399_v60, %s1493_s15 }
  0xd7   : > { %923 = vperm.xlu1 %1308, %v913_v62   ;;  %918 = vperm.xlu0 %1307, %v912_v63  }
  0xdb   : > { %933 = vperm.xlu1 %1308, %v915_v0   ;;  %928 = vperm.xlu0 %1307, %v914_v1  }
 0x103   : > { %v1311_v15 = vpop.permute.xlu0 %1310 }
 0x104   : > { %v1313_v18 = vunpack.i.h.bf16 %v1311_v15  ;;  %v1312_v19 = vunpack.i.l.bf16 %v1311_v15 }
 0x106   : > { %v622_v28 = vsel %vm607_vm15, 0.0, %v1312_v19  ;;  %v610_v30 = vsel %vm607_vm15, %v1312_v19, %v1313_v18 }
 0x107   : > { %v1316_v20 = vpop.permute.xlu1 %1315 }
 0x108   : > { %v1318_v24 = vunpack.i.h.bf16 %v1316_v20  ;;  %v1317_v25 = vunpack.i.l.bf16 %v1316_v20 }
 0x10a   : > { %v623_v29 = vsel %vm607_vm15, 0.0, %v1317_v25  ;;  %v611_v31 = vsel %vm607_vm15, %v1317_v25, %v1318_v24 }
 0x10b   : > { %v1188_v32 = vpack.c.bf16 %v611_v31, %v610_v30  ;;  %v1191_v33 = vpack.c.bf16 %v623_v29, %v622_v28 }
 0x10d   : > { %1189 = vmatprep.subr.msk.bf16.mxu0 %vm1187_vm7, %v1188_v32  ;;  %v1326_v37 = vpop.permute.xlu1 %1325  ;;  %v1321_v38 = vpop.permute.xlu0 %1320 }
 0x10e   : > { %v1328_v40 = vunpack.i.h.bf16 %v1326_v37  ;;  %v1327_v41 = vunpack.i.l.bf16 %v1326_v37  ;;  %v1323_v42 = vunpack.i.h.bf16 %v1321_v38  ;;  %v1322_v43 = vunpack.i.l.bf16 %v1321_v38  ;;  %1192 = vmatpush1.bf16.msk.msra.mxu0 %vm1190_vm8, %v1191_v33 }
 0x110   : > { %v609_v52 = vsel %vm607_vm15, %v1327_v41, %v1328_v40  ;;  %v621_v53 = vsel %vm607_vm15, 0.0, %v1327_v41  ;;  %v608_v57 = vsel %vm607_vm15, %v1322_v43, %v1323_v42  ;;  %v620_v58 = vsel %vm607_vm15, 0.0, %v1322_v43  ;;  %vm1199_vm15 = vmpackc.low %vm1719_vm13, %vm1719_vm13 }
 0x111   : > { %v1194_v59 = vpack.c.bf16 %v609_v52, %v608_v57  ;;  %v1197_v60 = vpack.c.bf16 %v621_v53, %v620_v58  ;;  %v1336_v61 = vpop.permute.xlu1 %1335  ;;  %v1331_v62 = vpop.permute.xlu0 %1330  ;;  %v459_v42 = vsel %vm1766_vm0, 1, %v1485_v2  ;;  %vm794_vm13 = vmand %vm793_vm6, %vm2204_vm14 }
 0x112   : > { %v1338_v0 = vunpack.i.h.bf16 %v1336_v61  ;;  %v1337_v1 = vunpack.i.l.bf16 %v1336_v61  ;;  %v1333_v4 = vunpack.i.h.bf16 %v1331_v62  ;;  %v1332_v6 = vunpack.i.l.bf16 %v1331_v62  ;;  %vm1862_vm0 = vmand %vm1772_vm1, %vm455_vm2 }
 0x113   : > { %1195 = vmatprep.subr.msk.bf16.mxu0 %vm1187_vm7, %v1194_v59  ;;  %vm494_vm7 = vcmask 130048   ;;  %v795_v3 = vsel %vm794_vm13, 1, %v1485_v2  ;;  %vm2218_vm13 = vcmp.lt.s32.totalorder %v1657_v10, 16 }
 0x114   : > { %v554_v12 = vsel %vm550_vm5, %v1337_v1, %v1338_v0  ;;  %v566_v13 = vsel %vm550_vm5, 0.0, %v1337_v1  ;;  %v553_v15 = vsel %vm550_vm5, %v1332_v6, %v1333_v4  ;;  %v565_v16 = vsel %vm550_vm5, 0.0, %v1332_v6  ;;  %1198 = vmatpush1.bf16.msk.msra.mxu0 %vm1190_vm8, %v1197_v60 }
 0x115   : > { %v1200_v17 = vpack.c.bf16 %v554_v12, %v553_v15  ;;  %v1203_v18 = vpack.c.bf16 %v566_v13, %v565_v16  ;;  %v1346_v19 = vpop.permute.xlu1 %1345  ;;  %v1341_v20 = vpop.permute.xlu0 %1340  ;;  %vm1781_vm8 = vcmp.eq.s32.totalorder %v523_v9, 1  ;;  %v467_v0 = vrot.slane %v459_v42, %v1661_v11 }
 0x116   : > { %v1348_v25 = vunpack.i.h.bf16 %v1346_v19  ;;  %v1347_v26 = vunpack.i.l.bf16 %v1346_v19  ;;  %v1343_v27 = vunpack.i.h.bf16 %v1341_v20  ;;  %v1342_v28 = vunpack.i.l.bf16 %v1341_v20 }
 0x117   : > { %1201 = vmatprep.subr.msk.bf16.mxu0 %vm1199_vm15, %v1200_v17  ;;  %v463_v1 = vrot.slane %v459_v42, %v1669_v14  ;;  %v799_v42 = vrot.slane %v795_v3, %v1669_v14 }
 0x118   : > { %v552_v31 = vsel %vm550_vm5, %v1347_v26, %v1348_v25  ;;  %v564_v32 = vsel %vm550_vm5, 0.0, %v1347_v26  ;;  %v551_v33 = vsel %vm550_vm5, %v1342_v28, %v1343_v27  ;;  %v563_v36 = vsel %vm550_vm5, 0.0, %v1342_v28  ;;  %1204 = vmatpush1.bf16.msk.msra.mxu0 %vm1202_vm10, %v1203_v18  ;;  %vm1211_vm5 = vmpackc.low %vm1781_vm8, %vm1781_vm8 }
 0x119   : > { %v1206_v37 = vpack.c.bf16 %v552_v31, %v551_v33  ;;  %v1209_v38 = vpack.c.bf16 %v564_v32, %v563_v36  ;;  %v1356_v39 = vpop.permute.xlu1 %1355  ;;  %v1351_v40 = vpop.permute.xlu0 %1350  ;;  %v803_v28 = vrot.slane %v795_v3, %v1661_v11  ;;  %vm740_vm8 = vmand %vm1862_vm0, %vm457_vm4  ;;  %vm2213_vm4 = vcmp.ge.s32.totalorder %v1657_v10, 0 }
 0x11a   : > { %v1358_v43 = vunpack.i.h.bf16 %v1356_v39  ;;  %v1357_v45 = vunpack.i.l.bf16 %v1356_v39  ;;  %v1353_v46 = vunpack.i.h.bf16 %v1351_v40  ;;  %v1352_v52 = vunpack.i.l.bf16 %v1351_v40 }
 0x11b   : > { %1207 = vmatprep.subr.msk.bf16.mxu0 %vm1199_vm15, %v1206_v37  ;;  %vm1844_vm15 = vcmp.eq.s32.totalorder %v467_v0, 1  ;;  %vm1891_vm6 = vcmp.eq.s32.totalorder %v803_v28, 1  ;;  %vm1912_vm14 = vcmp.eq.s32.totalorder %v799_v42, 1 }
 0x11c   : > { %v498_v53 = vsel %vm494_vm7, %v1357_v45, %v1358_v43  ;;  %v510_v57 = vsel %vm494_vm7, 0.0, %v1357_v45  ;;  %v497_v58 = vsel %vm494_vm7, %v1352_v52, %v1353_v46  ;;  %v509_v59 = vsel %vm494_vm7, 0.0, %v1352_v52  ;;  %1210 = vmatpush1.bf16.msk.msra.mxu0 %vm1202_vm10, %v1209_v38  ;;  %vm1223_vm2 = vmpackc.low %vm1844_vm15, %vm1844_vm15 }
 0x11d   : > { %v1212_v44 = vpack.c.bf16 %v498_v53, %v497_v58  ;;  %v1215_v60 = vpack.c.bf16 %v510_v57, %v509_v59  ;;  %v1366_v61 = vpop.permute.xlu1 %1365  ;;  %v1361_v62 = vpop.permute.xlu0 %1360  ;;  %vm1848_vm10 = vcmp.eq.s32.totalorder %v463_v1, 1  ;;  %v741_v1 = vsel %vm740_vm8, 1, %v1485_v2 }
 0x11e   : > { %v1368_v4 = vunpack.i.h.bf16 %v1366_v61  ;;  %v1367_v6 = vunpack.i.l.bf16 %v1366_v61  ;;  %v1363_v63 = vunpack.i.h.bf16 %v1361_v62  ;;  %v1362_v8 = vunpack.i.l.bf16 %v1361_v62 }
 0x11f   : > { %1213 = vmatprep.subr.msk.bf16.mxu0 %vm1211_vm5, %v1212_v44  ;;  %vm718_vm15 = vcmask 924672  }
 0x120   : > { %v496_v9 = vsel %vm494_vm7, %v1367_v6, %v1368_v4  ;;  %v508_v12 = vsel %vm494_vm7, 0.0, %v1367_v6  ;;  %v495_v13 = vsel %vm494_vm7, %v1362_v8, %v1363_v63  ;;  %v507_v15 = vsel %vm494_vm7, 0.0, %v1362_v8  ;;  %1216 = vmatpush1.bf16.msk.msra.mxu0 %vm1214_vm11, %v1215_v60  ;;  %vm1226_vm7 = vmpackc.low %vm1848_vm10, %vm1848_vm10 }
 0x121   : > { %v1218_v16 = vpack.c.bf16 %v496_v9, %v495_v13  ;;  %v1221_v17 = vpack.c.bf16 %v508_v12, %v507_v15  ;;  %v1376_v18 = vpop.permute.xlu1 %1375  ;;  %v1371_v19 = vpop.permute.xlu0 %1370 }
 0x122   : > { %v1378_v24 = vunpack.i.h.bf16 %v1376_v18  ;;  %v1377_v25 = vunpack.i.l.bf16 %v1376_v18  ;;  %v1373_v26 = vunpack.i.h.bf16 %v1371_v19  ;;  %v1372_v27 = vunpack.i.l.bf16 %v1371_v19 }
 0x123   : > { %1219 = vmatprep.subr.msk.bf16.mxu0 %vm1211_vm5, %v1218_v16  ;;  %vm1908_vm5 = vmand %vm1647_vm3, %vm2213_vm4  ;;  %v749_v18 = vrot.slane %v741_v1, %v1661_v11  ;;  %v745_v19 = vrot.slane %v741_v1, %v1669_v14 }
 0x124   : > { %v437_v32 = vsel %vm433_vm12, %v1377_v25, %v1378_v24  ;;  %v449_v33 = vsel %vm433_vm12, 0.0, %v1377_v25  ;;  %v436_v36 = vsel %vm433_vm12, %v1372_v27, %v1373_v26  ;;  %v448_v30 = vsel %vm433_vm12, 0.0, %v1372_v27  ;;  %1222 = vmatpush1.bf16.msk.msra.mxu0 %vm1214_vm11, %v1221_v17  ;;  %vm1235_vm3 = vmpackc.low %vm1891_vm6, %vm1891_vm6 }
 0x125   : > { %v1224_v37 = vpack.c.bf16 %v437_v32, %v436_v36  ;;  %v1227_v38 = vpack.c.bf16 %v449_v33, %v448_v30  ;;  %v1386_v39 = vpop.permute.xlu1 %1385  ;;  %v1381_v40 = vpop.permute.xlu0 %1380  ;;  %vm682_vm11 = vmand %vm1908_vm5, %vm2218_vm13  ;;  %vm1958_vm10 = vcmp.eq.s32.totalorder %v749_v18, 1  ;;  %vm1962_vm0 = vcmp.eq.s32.totalorder %v745_v19, 1 }
 0x126   : > { %v1388_v43 = vunpack.i.h.bf16 %v1386_v39  ;;  %v1387_v45 = vunpack.i.l.bf16 %v1386_v39  ;;  %v1383_v46 = vunpack.i.h.bf16 %v1381_v40  ;;  %v1382_v41 = vunpack.i.l.bf16 %v1381_v40  ;;  %vm1250_vm8 = vmpackc.low %vm1962_vm0, %vm1962_vm0 }
 0x127   : > { %1225 = vmatprep.subr.msk.bf16.mxu0 %vm1223_vm2, %v1224_v37  ;;  %v683_v26 = vsel %vm682_vm11, 1, %v1485_v2  ;;  %vm830_vm11 = vcmask 908288  }
 0x128   : > { %v435_v53 = vsel %vm433_vm12, %v1387_v45, %v1388_v43  ;;  %v447_v57 = vsel %vm433_vm12, 0.0, %v1387_v45  ;;  %v434_v5 = vsel %vm433_vm12, %v1382_v41, %v1383_v46  ;;  %v446_v58 = vsel %vm433_vm12, 0.0, %v1382_v41  ;;  %1228 = vmatpush1.bf16.msk.msra.mxu0 %vm1226_vm7, %v1227_v38  ;;  %vm1238_vm12 = vmpackc.low %vm1912_vm14, %vm1912_vm14 }
 0x129   : > { %v1230_v44 = vpack.c.bf16 %v435_v53, %v434_v5  ;;  %v1233_v60 = vpack.c.bf16 %v447_v57, %v446_v58  ;;  %v1396_v61 = vpop.permute.xlu1 %1395  ;;  %v1391_v62 = vpop.permute.xlu0 %1390  ;;  %v691_v46 = vrot.slane %v683_v26, %v1661_v11 }
 0x12a   : > { %v1398_v4 = vunpack.i.h.bf16 %v1396_v61  ;;  %v1397_v6 = vunpack.i.l.bf16 %v1396_v61  ;;  %v1393_v63 = vunpack.i.h.bf16 %v1391_v62  ;;  %v1392_v8 = vunpack.i.l.bf16 %v1391_v62 }
 0x12b   : > { %1231 = vmatprep.subr.msk.bf16.mxu0 %vm1223_vm2, %v1230_v44  ;;  %vm2223_vm2 = vmmov %vm2213_vm4  ;;  %vm664_vm4 = vcmask 1039360   ;;  %vm2005_vm5 = vcmp.eq.s32.totalorder %v691_v46, 1 }
 0x12c   : > { %v780_v7 = vsel %vm776_vm9, %v1398_v4, %v1393_v63  ;;  %v792_v3 = vsel %vm776_vm9, %v1393_v63, 0.0  ;;  %v779_v9 = vsel %vm776_vm9, %v1397_v6, %v1392_v8  ;;  %v791_v12 = vsel %vm776_vm9, %v1392_v8, 0.0  ;;  %1234 = vmatpush1.bf16.msk.msra.mxu0 %vm1226_vm7, %v1233_v60  ;;  %vm1976_vm7 = vmand %vm1772_vm1, %vm2223_vm2 }
 0x12d   : > { %v1236_v13 = vpack.c.bf16 %v792_v3, %v791_v12  ;;  %v1239_v15 = vpack.c.bf16 %v780_v7, %v779_v9  ;;  %v1406_v16 = vpop.permute.xlu1 %1405  ;;  %v1401_v17 = vpop.permute.xlu0 %1400  ;;  %vm1247_vm1 = vmpackc.low %vm1958_vm10, %vm1958_vm10  ;;  %v687_v60 = vrot.slane %v683_v26, %v1669_v14  ;;  %vm966_vm2 = vcmask 261120  }
 0x12e   : > { %v1408_v20 = vunpack.i.h.bf16 %v1406_v16  ;;  %v1407_v23 = vunpack.i.l.bf16 %v1406_v16  ;;  %v1403_v24 = vunpack.i.h.bf16 %v1401_v17  ;;  %v1402_v25 = vunpack.i.l.bf16 %v1401_v17 }
 0x12f   : > { %1237 = vmatprep.subr.msk.bf16.mxu0 %vm1235_vm3, %v1236_v13  ;;  %vm2018_vm14 = vcmp.eq.s32.totalorder %v687_v60, 1 }
 0x130   : > { %v778_v27 = vsel %vm776_vm9, %v1408_v20, %v1403_v24  ;;  %v790_v28 = vsel %vm776_vm9, %v1403_v24, 0.0  ;;  %v777_v31 = vsel %vm776_vm9, %v1407_v23, %v1402_v25  ;;  %v789_v32 = vsel %vm776_vm9, %v1402_v25, 0.0  ;;  %1240 = vmatpush2.bf16.msk.msra.mxu0 %vm1238_vm12, %v1239_v15  ;;  %vm2226_vm9 = vmmov %vm2218_vm13 }
 0x131   : > { %v1242_v33 = vpack.c.bf16 %v790_v28, %v789_v32  ;;  %v1245_v36 = vpack.c.bf16 %v778_v27, %v777_v31  ;;  %v1416_v30 = vpop.permute.xlu1 %1415  ;;  %v1411_v37 = vpop.permute.xlu0 %1410  ;;  %vm848_vm6 = vmand %vm1976_vm7, %vm2226_vm9 }
 0x132   : > { %v1418_v40 = vunpack.i.h.bf16 %v1416_v30  ;;  %v1417_v42 = vunpack.i.l.bf16 %v1416_v30  ;;  %v1413_v43 = vunpack.i.h.bf16 %v1411_v37  ;;  %v1412_v45 = vunpack.i.l.bf16 %v1411_v37  ;;  %vm1262_vm13 = vmpackc.low %vm2018_vm14, %vm2018_vm14 }
 0x133   : > { %1243 = vmatprep.subr.msk.bf16.mxu0 %vm1235_vm3, %v1242_v33  ;;  %v849_v15 = vsel %vm848_vm6, 1, %v1485_v2  ;;  %vm1259_vm3 = vmpackc.low %vm2005_vm5, %vm2005_vm5 }
 0x134   : > { %v722_v53 = vsel %vm718_vm15, %v1418_v40, %v1413_v43  ;;  %v734_v57 = vsel %vm718_vm15, %v1413_v43, 0.0  ;;  %v721_v5 = vsel %vm718_vm15, %v1417_v42, %v1412_v45  ;;  %v733_v52 = vsel %vm718_vm15, %v1412_v45, 0.0  ;;  %1246 = vmatpush2.bf16.msk.msra.mxu0 %vm1238_vm12, %v1245_v36 }
 0x135   : > { %v1248_v29 = vpack.c.bf16 %v734_v57, %v733_v52  ;;  %v1251_v58 = vpack.c.bf16 %v722_v53, %v721_v5  ;;  %v1426_v59 = vpop.permute.xlu1 %1425  ;;  %v1421_v44 = vpop.permute.xlu0 %1420  ;;  %v857_v32 = vrot.slane %v849_v15, %v1661_v11  ;;  %v853_v33 = vrot.slane %v849_v15, %v1669_v14  ;;  %v1084_v53 = vld [vmem:[%s2143_s20 + $0x28] sm:$0xff] }
 0x136   : > { %v1428_v61 = vunpack.i.h.bf16 %v1426_v59  ;;  %v1427_v62 = vunpack.i.l.bf16 %v1426_v59  ;;  %v1423_v1 = vunpack.i.h.bf16 %v1421_v44  ;;  %v1422_v0 = vunpack.i.l.bf16 %v1421_v44 }
 0x137   : > { %1249 = vmatprep.subr.msk.bf16.mxu0 %vm1247_vm1, %v1248_v29  ;;  %vm2059_vm12 = vcmp.eq.s32.totalorder %v857_v32, 1 }
 0x138   : > { %v720_v6 = vsel %vm718_vm15, %v1428_v61, %v1423_v1  ;;  %v732_v63 = vsel %vm718_vm15, %v1423_v1, 0.0  ;;  %v719_v10 = vsel %vm718_vm15, %v1427_v62, %v1422_v0  ;;  %v731_v8 = vsel %vm718_vm15, %v1422_v0, 0.0  ;;  %1252 = vmatpush2.bf16.msk.msra.mxu0 %vm1250_vm8, %v1251_v58  ;;  %vm1271_vm10 = vmpackc.low %vm2059_vm12, %vm2059_vm12 }
 0x139   : > { %v1254_v7 = vpack.c.bf16 %v732_v63, %v731_v8  ;;  %v1257_v3 = vpack.c.bf16 %v720_v6, %v719_v10  ;;  %v1436_v9 = vpop.permute.xlu1 %1435  ;;  %v1431_v12 = vpop.permute.xlu0 %1430  ;;  %vm2063_vm15 = vcmp.eq.s32.totalorder %v853_v33, 1 }
 0x13a   : > { %v1438_v16 = vunpack.i.h.bf16 %v1436_v9  ;;  %v1437_v17 = vunpack.i.l.bf16 %v1436_v9  ;;  %v1433_v18 = vunpack.i.h.bf16 %v1431_v12  ;;  %v1432_v19 = vunpack.i.l.bf16 %v1431_v12  ;;  %vm1274_vm0 = vmpackc.low %vm2063_vm15, %vm2063_vm15 }
 0x13b   : > { %1255 = vmatprep.subr.msk.bf16.mxu0 %vm1247_vm1, %v1254_v7 }
 0x13c   : > { %v668_v20 = vsel %vm664_vm4, %v1438_v16, %v1433_v18  ;;  %v680_v23 = vsel %vm664_vm4, %v1433_v18, 0.0  ;;  %v667_v24 = vsel %vm664_vm4, %v1437_v17, %v1432_v19  ;;  %v679_v25 = vsel %vm664_vm4, %v1432_v19, 0.0  ;;  %1258 = vmatpush2.bf16.msk.msra.mxu0 %vm1250_vm8, %v1257_v3  ;;  %v1080_v17 = vld [vmem:[%s2143_s20 + $0x8] sm:$0xff] }
 0x13d   : > { %v1260_v26 = vpack.c.bf16 %v680_v23, %v679_v25  ;;  %v1263_v27 = vpack.c.bf16 %v668_v20, %v667_v24  ;;  %v1446_v28 = vpop.permute.xlu1 %1445  ;;  %v1441_v31 = vpop.permute.xlu0 %1440  ;;  %v1081_v25 = vld [vmem:[%s2143_s20 + $0x10] sm:$0xff] }
 0x13e   : > { %v1448_v36 = vunpack.i.h.bf16 %v1446_v28  ;;  %v1447_v30 = vunpack.i.l.bf16 %v1446_v28  ;;  %v1443_v37 = vunpack.i.h.bf16 %v1441_v31  ;;  %v1442_v38 = vunpack.i.l.bf16 %v1441_v31 }
 0x13f   : > { %1261 = vmatprep.subr.msk.bf16.mxu0 %vm1259_vm3, %v1260_v26 }
 0x140   : > { %v666_v39 = vsel %vm664_vm4, %v1448_v36, %v1443_v37  ;;  %v678_v40 = vsel %vm664_vm4, %v1443_v37, 0.0  ;;  %v665_v42 = vsel %vm664_vm4, %v1447_v30, %v1442_v38  ;;  %v677_v11 = vsel %vm664_vm4, %v1442_v38, 0.0  ;;  %1264 = vmatpush2.bf16.msk.msra.mxu0 %vm1262_vm13, %v1263_v27  ;;  %v1082_v36 = vld [vmem:[%s2143_s20 + $0x18] sm:$0xff] }
 0x141   : > { %v1266_v14 = vpack.c.bf16 %v678_v40, %v677_v11  ;;  %v1269_v43 = vpack.c.bf16 %v666_v39, %v665_v42  ;;  %v1456_v45 = vpop.permute.xlu1 %1455  ;;  %v1451_v46 = vpop.permute.xlu0 %1450  ;;  %v1083_v42 = vld [vmem:[%s2143_s20 + $0x20] sm:$0xff] }
 0x142   : > { %v1458_v57 = vunpack.i.h.bf16 %v1456_v45  ;;  %v1457_v5 = vunpack.i.l.bf16 %v1456_v45  ;;  %v1453_v52 = vunpack.i.h.bf16 %v1451_v46  ;;  %v1452_v29 = vunpack.i.l.bf16 %v1451_v46 }
 0x143   : > { %1267 = vmatprep.subr.msk.bf16.mxu0 %vm1259_vm3, %v1266_v14 }
 0x144   : > { %1270 = vmatpush2.bf16.msk.msra.mxu0 %vm1262_vm13, %v1269_v43  ;;  %v845_v58 = vsel %vm830_vm11, %v1452_v29, 0.0  ;;  %v846_v59 = vsel %vm830_vm11, %v1453_v52, 0.0  ;;  %v833_v44 = vsel %vm830_vm11, %v1457_v5, %v1452_v29  ;;  %v834_v60 = vsel %vm830_vm11, %v1458_v57, %v1453_v52 }
 0x145   : > { %v1466_v61 = vpop.permute.xlu1 %1465  ;;  %v1461_v62 = vpop.permute.xlu0 %1460  ;;  %1001 = vmatprep.subr.bf16.mxu0 %v895_v51  ;;  %v1272_v1 = vpack.c.bf16 %v846_v59, %v845_v58  ;;  %v1275_v0 = vpack.c.bf16 %v834_v60, %v833_v44  ;;  %v1085_v59 = vld [vmem:[%s2143_s20 + $0x30] sm:$0xff] }
 0x146   : > { %v1468_v4 = vunpack.i.h.bf16 %v1466_v61  ;;  %v1467_v6 = vunpack.i.l.bf16 %v1466_v61  ;;  %v1463_v63 = vunpack.i.h.bf16 %v1461_v62  ;;  %v1462_v10 = vunpack.i.l.bf16 %v1461_v62 }
 0x147   : > { %1273 = vmatprep.subr.msk.bf16.mxu1 %vm1271_vm10, %v1272_v1 }
 0x148   : > { %v832_v8 = vsel %vm830_vm11, %v1468_v4, %v1463_v63  ;;  %v844_v22 = vsel %vm830_vm11, %v1463_v63, 0.0  ;;  %v831_v35 = vsel %vm830_vm11, %v1467_v6, %v1462_v10  ;;  %v843_v51 = vsel %vm830_vm11, %v1462_v10, 0.0  ;;  %1002 = vmatpush2.bf16.msra.mxu0 %v894_v54  ;;  %1276 = vmatpush1.bf16.msk.msra.mxu1 %vm1274_vm0, %v1275_v0  ;;  %v1086_v0 = vld [vmem:[%s2143_s20 + $0x38] sm:$0xff] }
 0x149   : > { %v1278_v7 = vpack.c.bf16 %v844_v22, %v843_v51  ;;  %v1281_v3 = vpack.c.bf16 %v832_v8, %v831_v35  ;;  %1003 = vmatprep.subr.bf16.mxu0 %v893_v55 }
 0x14b   : > { %1279 = vmatprep.subr.msk.bf16.mxu1 %vm1271_vm10, %v1278_v7 }
 0x14c   : > { %1004 = vmatpush2.bf16.msra.mxu0 %v892_v56  ;;  %1282 = vmatpush1.bf16.msk.msra.mxu1 %vm1274_vm0, %v1281_v3  ;;  %v1079_v56 = vld [vmem:[%s2143_s20] sm:$0xff] }
 0x14f   : > { %1006 = vmatmul.mubr.bf16.vlgmr.msra.gmra.mxu0 %v1469_v21  ;;  %1283 = vmatmul.mubr.msk.bf16.vlgmr.msra.gmra.mxu1 %vm966_vm2, %v1472_v34 }
 0x150   : > { %1015 = vmatprep.mubr.bf16.mxu0 %v1473_v48  ;;  %1068 = vmatprep.mubr.bf16.mxu1 %v1485_v2 }
 0x152   : > { %v919_v50 = vpop.permute.xlu0 %918  ;;  %v924_v13 = vpop.permute.xlu1 %923 }
 0x156   : > { %v929_v28 = vpop.permute.xlu0 %928  ;;  %v934_v43 = vpop.permute.xlu1 %933 }
 0x157   : > { %1016 = vmatmul.mubr.bf16.gmra.mxu0 %v1475_v47  ;;  %1284 = vmatmul.mubr.msk.bf16.gmra.mxu1 %vm966_vm2, %v1476_v49 }
 0x20f   : > { %v1007_v2 = vpop.f32.mrf.mxu0  ;;  %v1060_v54 = vpop.f32.mrf.mxu1 }
 0x210   : > { %v1008_v55 = vadd.f32 %v1007_v2, %v919_v50 }
 0x211   : > { %v1009_v9 = vpop.f32.mrf.mxu0  ;;  %v1062_v12 = vpop.f32.mrf.mxu1 }
 0x212   : > { %v1061_v15 = vadd.f32 %v1060_v54, %v1008_v55  ;;  %v1010_v16 = vadd.f32 %v1009_v9, %v919_v50 }
 0x213   : > { %v1011_v18 = vpop.f32.mrf.mxu0  ;;  %v1064_v19 = vpop.f32.mrf.mxu1 }
 0x214   : > { %v1087_v20 = vadd.f32 %v1079_v56, %v1061_v15  ;;  %v1063_v23 = vadd.f32 %v1062_v12, %v1010_v16  ;;  %v1012_v24 = vadd.f32 %v1011_v18, %v924_v13 }
 0x215   : > { %v1013_v26 = vpop.f32.mrf.mxu0  ;;  %v1066_v27 = vpop.f32.mrf.mxu1 }
 0x216   : > { %1095 = vst [vmem:[%s2150_s24] sm:$0xff] %v1087_v20  ;;  %v1088_v31 = vadd.f32 %v1080_v17, %v1063_v23  ;;  %v1065_v32 = vadd.f32 %v1064_v19, %v1012_v24  ;;  %v1014_v33 = vadd.f32 %v1013_v26, %v924_v13 }
 0x217   : > { %v1017_v30 = vpop.f32.mrf.mxu0  ;;  %v1070_v37 = vpop.f32.mrf.mxu1 }
 0x218   : > { %1096 = vst [vmem:[%s2150_s24 + $0x8] sm:$0xff] %v1088_v31  ;;  %v1089_v38 = vadd.f32 %v1081_v25, %v1065_v32  ;;  %v1067_v39 = vadd.f32 %v1066_v27, %v1014_v33  ;;  %v1018_v40 = vadd.f32 %v1017_v30, %v929_v28 }
 0x219   : > { %v1019_v11 = vpop.f32.mrf.mxu0  ;;  %v1072_v14 = vpop.f32.mrf.mxu1 }
 0x21a   : > { %1097 = vst [vmem:[%s2150_s24 + $0x10] sm:$0xff] %v1089_v38  ;;  %v1090_v45 = vadd.f32 %v1082_v36, %v1067_v39  ;;  %v1071_v46 = vadd.f32 %v1070_v37, %v1018_v40  ;;  %v1020_v41 = vadd.f32 %v1019_v11, %v929_v28 }
 0x21b   : > { %v1021_v57 = vpop.f32.mrf.mxu0  ;;  %v1074_v5 = vpop.f32.mrf.mxu1 }
 0x21c   : > { %1098 = vst [vmem:[%s2150_s24 + $0x18] sm:$0xff] %v1090_v45  ;;  %v1091_v52 = vadd.f32 %v1083_v42, %v1071_v46  ;;  %v1073_v29 = vadd.f32 %v1072_v14, %v1020_v41  ;;  %v1022_v58 = vadd.f32 %v1021_v57, %v934_v43 }
 0x21d   : > { %v1023_v44 = vpop.f32.mrf.mxu0  ;;  %v1076_v1 = vpop.f32.mrf.mxu1 }
 0x21e   : > { %1099 = vst [vmem:[%s2150_s24 + $0x20] sm:$0xff] %v1091_v52  ;;  %v1092_v60 = vadd.f32 %v1084_v53, %v1073_v29  ;;  %v1075_v61 = vadd.f32 %v1074_v5, %v1022_v58  ;;  %v1024_v62 = vadd.f32 %v1023_v44, %v934_v43 }
 0x220   : > { %1100 = vst [vmem:[%s2150_s24 + $0x28] sm:$0xff] %v1092_v60  ;;  %v1093_v4 = vadd.f32 %v1085_v59, %v1075_v61  ;;  %v1077_v6 = vadd.f32 %v1076_v1, %v1024_v62 }
 0x222   : > { %1101 = vst [vmem:[%s2150_s24 + $0x30] sm:$0xff] %v1093_v4  ;;  %v1094_v63 = vadd.f32 %v1086_v0, %v1077_v6 }
 0x224   : > { %1102 = vst [vmem:[%s2150_s24 + $0x38] sm:$0xff] %v1094_v63 }
 0x225 PF: > { %s18_s27 = sadd.s32 1, %s1483_s27  }
 0x226   : > { %p15_p4 = scmp.ge.s32.totalorder %s18_s27, 4  }
 0x228   :  { %17 = sbr.rel (!%p15_p4) target bundleno = 1 (0x1), region = 85 }

</bundles_post_ra>
